<compile_context>
chip_gen: v6e
topology: v6e:2x2x1
jax: 0.10.0
libtpu: 0.0.40
codegen_flags: <defaults>
</compile_context>

<pallas_src>
import functools

import numpy as np
import jax
import jax.numpy as jnp
from jax import lax
from jax.experimental import pallas as pl
from jax.experimental.pallas import tpu as pltpu


# ----------------------------- in-kernel helpers -----------------------------

def _hardswish(x):
    # torch.nn.Hardswish: x * relu6(x + 3) / 6
    return x * jnp.clip(x + 3.0, 0.0, 6.0) * (1.0 / 6.0)


def _layernorm(x, g, b, eps=1e-5):
    mu = jnp.mean(x, axis=-1, keepdims=True)
    var = jnp.mean(jnp.square(x - mu), axis=-1, keepdims=True)
    return (x - mu) * lax.rsqrt(var + eps) * g + b


# ----------------------------- fused transformer kernel -----------------------------

def _transformer_kernel(x_ref, mask_ref,
                        ln1g_ref, ln1b_ref, wqkv_ref, wo_ref, bo_ref,
                        ln2g_ref, ln2b_ref, wup_ref, bup_ref, wdw_ref, bdw_ref,
                        wpw_ref, bpw_ref, wdn_ref, bdn_ref,
                        o_ref, pad_ref, *,
                        depth, heads, dim_head, pad_rows, offsets):
    n_rows = x_ref.shape[0]                      # N = 1 (cls) + ph*pw patch tokens
    scale = dim_head ** (-0.5)

    x = x_ref[...].astype(jnp.float32)           # (N, dim) residual stream, kept f32

    # Row-0 (cls) selector and the 9 per-row depthwise tap-validity masks (loaded once).
    is_cls = lax.broadcasted_iota(jnp.int32, (n_rows, 1), 0) == 0
    tap_masks = [mask_ref[t] for t in range(len(offsets))]      # each (N, 1) f32

    # Zero the padded depthwise scratch once; centre rows are rewritten every layer.
    pad_ref[...] = jnp.zeros_like(pad_ref)

    for l in range(depth):                       # static unroll over layers
        # ---------------- Residual(PreNorm(Attention)) ----------------
        y = _layernorm(x, ln1g_ref[l], ln1b_ref[l])                          # (N, dim)
        yb = jnp.broadcast_to(y.astype(jnp.bfloat16), (heads,) + y.shape)    # (h, N, dim)
        q = jnp.einsum('hnd,hdk->hnk', yb, wqkv_ref[3 * l + 0],
                       preferred_element_type=jnp.float32)                   # (h, N, dh)
        k = jnp.einsum('hnd,hdk->hnk', yb, wqkv_ref[3 * l + 1],
                       preferred_element_type=jnp.float32)
        v = jnp.einsum('hnd,hdk->hnk', yb, wqkv_ref[3 * l + 2],
                       preferred_element_type=jnp.float32)
        s = jnp.einsum('hnd,hmd->hnm', q.astype(jnp.bfloat16), k.astype(jnp.bfloat16),
                       preferred_element_type=jnp.float32) * scale           # (h, N, N)
        s = s - jnp.max(s, axis=-1, keepdims=True)
        p = jnp.exp(s)
        p = p * pl.reciprocal(jnp.sum(p, axis=-1, keepdims=True), approx=True)
        o_h = jnp.einsum('hnm,hmd->hnd', p.astype(jnp.bfloat16), v.astype(jnp.bfloat16),
                         preferred_element_type=jnp.float32)                 # (h, N, dh)
        proj = jnp.einsum('hnd,hdk->hnk', o_h.astype(jnp.bfloat16), wo_ref[l],
                          preferred_element_type=jnp.float32)                # (h, N, dim)
        x = x + jnp.sum(proj, axis=0) + bo_ref[l]                            # concat-heads @ Wo + b

        # ---------------- Residual(PreNorm(ConvFF)), cls row passthrough ----------------
        z = _layernorm(x, ln2g_ref[l], ln2b_ref[l])                          # all N rows
        u = jnp.dot(z.astype(jnp.bfloat16), wup_ref[l],
                    preferred_element_type=jnp.float32) + bup_ref[l]
        u = _hardswish(u)                                                    # (N, sd)

        # Depthwise 3x3 conv (padding=1, groups=C) on the flat token layout:
        # shifted slice-loads from a zero-padded VMEM scratch + per-row validity masks.
        # Masks guarantee the cls row (row 0) never contributes to any patch token.
        pad_ref[pl.ds(pad_rows, n_rows), :] = u
        acc = jnp.zeros_like(u) + bdw_ref[l]
        for t, off in enumerate(offsets):
            tap = pad_ref[pl.ds(pad_rows + off, n_rows), :]                  # (N, sd)
            acc = acc + (tap * tap_masks[t]) * wdw_ref[l, t]

        # 1x1 conv + Hardswish, then 1x1 down-projection (+Dropout no-op)
        pw1 = jnp.dot(acc.astype(jnp.bfloat16), wpw_ref[l],
                      preferred_element_type=jnp.float32) + bpw_ref[l]
        pw1 = _hardswish(pw1)
        d = jnp.dot(pw1.astype(jnp.bfloat16), wdn_ref[l],
                    preferred_element_type=jnp.float32) + bdn_ref[l]

        x = jnp.where(is_cls, x, x + d)          # cls token unchanged, patches get residual

    o_ref[...] = x.astype(o_ref.dtype)           # single dense (N, dim) store


# ----------------------------- wrapper -----------------------------

def make_depthwise_masks(ph, pw):
    """Per-row validity of each 3x3 tap on the flat (cls + ph*pw token) layout.
    Returns masks of shape (9, 1+ph*pw, 1) and the flat token offset of each tap."""
    n_rows = ph * pw + 1
    taps = [(dy, dx) for dy in (-1, 0, 1) for dx in (-1, 0, 1)]   # torch Conv2d tap order
    m = np.zeros((len(taps), n_rows, 1), np.float32)
    for t, (dy, dx) in enumerate(taps):
        for r in range(1, n_rows):                                # row 0 = cls: always masked
            y, x = (r - 1) // pw, (r - 1) % pw
            if 0 <= y + dy < ph and 0 <= x + dx < pw:
                m[t, r, 0] = 1.0
    offsets = tuple(dy * pw + dx for dy, dx in taps)
    return jnp.asarray(m), offsets


def transformer_forward(x, params, masks, cfg, offsets):
    B, N, dim = x.shape
    depth, heads, dh = cfg["depth"], cfg["heads"], cfg["dim_head"]
    pw = cfg["patch_width"]
    sd = dim * cfg["scale"]
    pad_rows = max(pw + 1, 8)

    tok_spec = pl.BlockSpec((None, N, dim), lambda b: (b, 0, 0))

    def full(arr):
        zeros = (0,) * arr.ndim
        return pl.BlockSpec(arr.shape, lambda b: zeros)

    weight_args = (params["ln1_g"], params["ln1_b"], params["wqkv"], params["wo"],
                   params["bo"], params["ln2_g"], params["ln2_b"], params["w_up"],
                   params["b_up"], params["w_dw"], params["b_dw"], params["w_pw"],
                   params["b_pw"], params["w_down"], params["b_down"])

    kernel = functools.partial(_transformer_kernel, depth=depth, heads=heads,
                               dim_head=dh, pad_rows=pad_rows, offsets=offsets)

    return pl.pallas_call(
        kernel,
        grid=(B,),
        in_specs=[tok_spec, full(masks)] + [full(w) for w in weight_args],
        out_specs=tok_spec,
        out_shape=jax.ShapeDtypeStruct((B, N, dim), x.dtype),
        scratch_shapes=[pltpu.VMEM((N + 2 * pad_rows, sd), jnp.float32)],
        compiler_params=pltpu.CompilerParams(dimension_semantics=("parallel",)),
    )(x, masks, *weight_args)


# ----------------------------- parameters -----------------------------

def init_params(key, cfg):
    dim, depth = cfg["dim"], cfg["depth"]
    heads, dh = cfg["heads"], cfg["dim_head"]
    sd = dim * cfg["scale"]
    ks = iter(jax.random.split(key, 16))

    def rnd(shape, s, dtype):
        return (jax.random.normal(next(ks), shape, jnp.float32) * s).astype(dtype)

    return {
        "ln1_g": jnp.ones((depth, 1, dim), jnp.float32),
        "ln1_b": jnp.zeros((depth, 1, dim), jnp.float32),
        "wqkv": rnd((depth * 3, heads, dim, dh), 0.05, jnp.bfloat16),   # to_qkv (bias=False), head-major
        "wo": rnd((depth, heads, dh, dim), 0.05, jnp.bfloat16),         # to_out weight, per-head slabs
        "bo": rnd((depth, 1, dim), 0.02, jnp.float32),                  # to_out bias
        "ln2_g": jnp.ones((depth, 1, dim), jnp.float32),
        "ln2_b": jnp.zeros((depth, 1, dim), jnp.float32),
        "w_up": rnd((depth, dim, sd), 0.05, jnp.bfloat16),              # 1x1 up conv
        "b_up": rnd((depth, 1, sd), 0.02, jnp.float32),
        "w_dw": rnd((depth, 9, 1, sd), 0.2, jnp.float32),               # depthwise 3x3, tap-major (ky*3+kx)
        "b_dw": rnd((depth, 1, sd), 0.02, jnp.float32),
        "w_pw": rnd((depth, sd, sd), 0.05, jnp.bfloat16),               # 1x1 pointwise conv
        "b_pw": rnd((depth, 1, sd), 0.02, jnp.float32),
        "w_down": rnd((depth, sd, dim), 0.05, jnp.bfloat16),            # 1x1 down conv
        "b_down": rnd((depth, 1, dim), 0.02, jnp.float32),
    }


# ----------------------------- pure-JAX reference (f32) -----------------------------

def ref_forward(x, params, cfg):
    depth, dh = cfg["depth"], cfg["dim_head"]
    ph, pw = cfg["patch_height"], cfg["patch_width"]
    scale = dh ** (-0.5)
    f32 = lambda a: a.astype(jnp.float32)

    def ln(v, g, b):
        mu = jnp.mean(v, axis=-1, keepdims=True)
        var = jnp.mean(jnp.square(v - mu), axis=-1, keepdims=True)
        return (v - mu) * lax.rsqrt(var + 1e-5) * g + b

    hsw = lambda v: v * jnp.clip(v + 3.0, 0.0, 6.0) / 6.0
    taps = [(dy, dx) for dy in (-1, 0, 1) for dx in (-1, 0, 1)]

    for l in range(depth):
        y = ln(x, params["ln1_g"][l], params["ln1_b"][l])
        q = jnp.einsum('bnd,hdk->bhnk', y, f32(params["wqkv"][3 * l + 0]))
        k = jnp.einsum('bnd,hdk->bhnk', y, f32(params["wqkv"][3 * l + 1]))
        v = jnp.einsum('bnd,hdk->bhnk', y, f32(params["wqkv"][3 * l + 2]))
        s = jnp.einsum('bhnk,bhmk->bhnm', q, k) * scale
        p = jax.nn.softmax(s, axis=-1)
        o = jnp.einsum('bhnm,bhmk->bhnk', p, v)
        x = x + jnp.einsum('bhnk,hkd->bnd', o, f32(params["wo"][l])) + params["bo"][l]

        cls, t = x[:, :1], x[:, 1:]
        z = ln(t, params["ln2_g"][l], params["ln2_b"][l])
        u = hsw(jnp.einsum('bnc,cs->bns', z, f32(params["w_up"][l])) + params["b_up"][l])
        B, _, sd = u.shape
        img = jnp.pad(u.reshape(B, ph, pw, sd), ((0, 0), (1, 1), (1, 1), (0, 0)))
        acc = jnp.zeros((B, ph, pw, sd), jnp.float32) + params["b_dw"][l]
        for ti, (dy, dx) in enumerate(taps):
            acc = acc + img[:, 1 + dy:1 + dy + ph, 1 + dx:1 + dx + pw, :] * params["w_dw"][l, ti]
        conv = acc.reshape(B, ph * pw, sd)
        pw1 = hsw(jnp.einsum('bns,st->bnt', conv, f32(params["w_pw"][l])) + params["b_pw"][l])
        d = jnp.einsum('bns,sc->bnc', pw1, f32(params["w_down"][l])) + params["b_down"][l]
        x = jnp.concatenate([cls, t + d], axis=1)
    return x


# ----------------------------- main -----------------------------

if __name__ == "__main__":
    cfg = dict(dim=32, depth=2, heads=2, dim_head=16,
               patch_height=4, patch_width=4, scale=4)
    B = 2
    N = cfg["patch_height"] * cfg["patch_width"] + 1    # cls + patch tokens

    key = jax.random.PRNGKey(0)
    kx, kp = jax.random.split(key)
    x = jax.random.normal(kx, (B, N, cfg["dim"]), jnp.float32)
    params = init_params(kp, cfg)
    masks, offsets = make_depthwise_masks(cfg["patch_height"], cfg["patch_width"])

    fwd = jax.jit(functools.partial(transformer_forward, cfg=cfg, offsets=offsets))
    out = fwd(x, params, masks)
    jax.block_until_ready(out)

    ref = ref_forward(x, params, cfg)
    err = float(jnp.max(jnp.abs(out - ref)))

    assert out.shape == (B, N, cfg["dim"])
    assert bool(jnp.all(jnp.isfinite(out)))
    assert err < 7.5e-2, f"max abs err vs reference: {err}"
    print("KERNEL_OK")
</pallas_src>

<mosaic_0001>
module attributes {stable_mosaic.version = 11 : i64} {
  func.func @_transformer_kernel(%arg0: i32, %arg1: memref<1x17x32xf32, #tpu.memory_space<vmem>>, %arg2: memref<9x17x1xf32, #tpu.memory_space<vmem>>, %arg3: memref<2x1x32xf32, #tpu.memory_space<vmem>>, %arg4: memref<2x1x32xf32, #tpu.memory_space<vmem>>, %arg5: memref<6x2x32x16xbf16, #tpu.memory_space<vmem>>, %arg6: memref<2x2x16x32xbf16, #tpu.memory_space<vmem>>, %arg7: memref<2x1x32xf32, #tpu.memory_space<vmem>>, %arg8: memref<2x1x32xf32, #tpu.memory_space<vmem>>, %arg9: memref<2x1x32xf32, #tpu.memory_space<vmem>>, %arg10: memref<2x32x128xbf16, #tpu.memory_space<vmem>>, %arg11: memref<2x1x128xf32, #tpu.memory_space<vmem>>, %arg12: memref<2x9x1x128xf32, #tpu.memory_space<vmem>>, %arg13: memref<2x1x128xf32, #tpu.memory_space<vmem>>, %arg14: memref<2x128x128xbf16, #tpu.memory_space<vmem>>, %arg15: memref<2x1x128xf32, #tpu.memory_space<vmem>>, %arg16: memref<2x128x32xbf16, #tpu.memory_space<vmem>>, %arg17: memref<2x1x32xf32, #tpu.memory_space<vmem>>, %arg18: memref<1x17x32xf32, #tpu.memory_space<vmem>>, %arg19: memref<33x128xf32, #tpu.memory_space<vmem>>) attributes {dimension_semantics = [#tpu.dimension_semantics<parallel>], iteration_bounds = array<i64: 2>, scalar_prefetch = 0 : i64, scratch_operands = 1 : i64, tpu.core_type = #tpu.core_type<tc>, window_params = [{transform_indices = @transform_0, window_bounds = array<i64: 1, 17, 32>}, {pipeline_mode = #tpu.pipeline_mode<synchronous>, transform_indices = @transform_1, window_bounds = array<i64: 9, 17, 1>}, {pipeline_mode = #tpu.pipeline_mode<synchronous>, transform_indices = @transform_2, window_bounds = array<i64: 2, 1, 32>}, {pipeline_mode = #tpu.pipeline_mode<synchronous>, transform_indices = @transform_3, window_bounds = array<i64: 2, 1, 32>}, {pipeline_mode = #tpu.pipeline_mode<synchronous>, transform_indices = @transform_4, window_bounds = array<i64: 6, 2, 32, 16>}, {pipeline_mode = #tpu.pipeline_mode<synchronous>, transform_indices = @transform_5, window_bounds = array<i64: 2, 2, 16, 32>}, {pipeline_mode = #tpu.pipeline_mode<synchronous>, transform_indices = @transform_6, window_bounds = array<i64: 2, 1, 32>}, {pipeline_mode = #tpu.pipeline_mode<synchronous>, transform_indices = @transform_7, window_bounds = array<i64: 2, 1, 32>}, {pipeline_mode = #tpu.pipeline_mode<synchronous>, transform_indices = @transform_8, window_bounds = array<i64: 2, 1, 32>}, {pipeline_mode = #tpu.pipeline_mode<synchronous>, transform_indices = @transform_9, window_bounds = array<i64: 2, 32, 128>}, {pipeline_mode = #tpu.pipeline_mode<synchronous>, transform_indices = @transform_10, window_bounds = array<i64: 2, 1, 128>}, {pipeline_mode = #tpu.pipeline_mode<synchronous>, transform_indices = @transform_11, window_bounds = array<i64: 2, 9, 1, 128>}, {pipeline_mode = #tpu.pipeline_mode<synchronous>, transform_indices = @transform_12, window_bounds = array<i64: 2, 1, 128>}, {pipeline_mode = #tpu.pipeline_mode<synchronous>, transform_indices = @transform_13, window_bounds = array<i64: 2, 128, 128>}, {pipeline_mode = #tpu.pipeline_mode<synchronous>, transform_indices = @transform_14, window_bounds = array<i64: 2, 1, 128>}, {pipeline_mode = #tpu.pipeline_mode<synchronous>, transform_indices = @transform_15, window_bounds = array<i64: 2, 128, 32>}, {pipeline_mode = #tpu.pipeline_mode<synchronous>, transform_indices = @transform_16, window_bounds = array<i64: 2, 1, 32>}, {transform_indices = @transform_17, window_bounds = array<i64: 1, 17, 32>}]} {
    %c0 = arith.constant 0 : index
    %c0_0 = arith.constant 0 : index
    %c0_1 = arith.constant 0 : index
    %0 = vector.load %arg1[%c0, %c0_0, %c0_1] : memref<1x17x32xf32, #tpu.memory_space<vmem>>, vector<1x17x32xf32>
    %1 = vector.shape_cast %0 : vector<1x17x32xf32> to vector<17x32xf32>
    %2 = tpu.iota {dimensions = array<i32: 0>} : vector<17x1xi32>
    %c0_i32 = arith.constant 0 : i32
    %3 = vector.broadcast %c0_i32 : i32 to vector<17x1xi32>
    %4 = arith.cmpi eq, %2, %3 : vector<17x1xi32>
    %c0_2 = arith.constant 0 : index
    %c0_3 = arith.constant 0 : index
    %c0_4 = arith.constant 0 : index
    %5 = vector.load %arg2[%c0_2, %c0_3, %c0_4] : memref<9x17x1xf32, #tpu.memory_space<vmem>>, vector<1x17x1xf32>
    %6 = vector.shape_cast %5 : vector<1x17x1xf32> to vector<17x1xf32>
    %c1 = arith.constant 1 : index
    %c0_5 = arith.constant 0 : index
    %c0_6 = arith.constant 0 : index
    %7 = vector.load %arg2[%c1, %c0_5, %c0_6] : memref<9x17x1xf32, #tpu.memory_space<vmem>>, vector<1x17x1xf32>
    %8 = vector.shape_cast %7 : vector<1x17x1xf32> to vector<17x1xf32>
    %c2 = arith.constant 2 : index
    %c0_7 = arith.constant 0 : index
    %c0_8 = arith.constant 0 : index
    %9 = vector.load %arg2[%c2, %c0_7, %c0_8] : memref<9x17x1xf32, #tpu.memory_space<vmem>>, vector<1x17x1xf32>
    %10 = vector.shape_cast %9 : vector<1x17x1xf32> to vector<17x1xf32>
    %c3 = arith.constant 3 : index
    %c0_9 = arith.constant 0 : index
    %c0_10 = arith.constant 0 : index
    %11 = vector.load %arg2[%c3, %c0_9, %c0_10] : memref<9x17x1xf32, #tpu.memory_space<vmem>>, vector<1x17x1xf32>
    %12 = vector.shape_cast %11 : vector<1x17x1xf32> to vector<17x1xf32>
    %c4 = arith.constant 4 : index
    %c0_11 = arith.constant 0 : index
    %c0_12 = arith.constant 0 : index
    %13 = vector.load %arg2[%c4, %c0_11, %c0_12] : memref<9x17x1xf32, #tpu.memory_space<vmem>>, vector<1x17x1xf32>
    %14 = vector.shape_cast %13 : vector<1x17x1xf32> to vector<17x1xf32>
    %c5 = arith.constant 5 : index
    %c0_13 = arith.constant 0 : index
    %c0_14 = arith.constant 0 : index
    %15 = vector.load %arg2[%c5, %c0_13, %c0_14] : memref<9x17x1xf32, #tpu.memory_space<vmem>>, vector<1x17x1xf32>
    %16 = vector.shape_cast %15 : vector<1x17x1xf32> to vector<17x1xf32>
    %c6 = arith.constant 6 : index
    %c0_15 = arith.constant 0 : index
    %c0_16 = arith.constant 0 : index
    %17 = vector.load %arg2[%c6, %c0_15, %c0_16] : memref<9x17x1xf32, #tpu.memory_space<vmem>>, vector<1x17x1xf32>
    %18 = vector.shape_cast %17 : vector<1x17x1xf32> to vector<17x1xf32>
    %c7 = arith.constant 7 : index
    %c0_17 = arith.constant 0 : index
    %c0_18 = arith.constant 0 : index
    %19 = vector.load %arg2[%c7, %c0_17, %c0_18] : memref<9x17x1xf32, #tpu.memory_space<vmem>>, vector<1x17x1xf32>
    %20 = vector.shape_cast %19 : vector<1x17x1xf32> to vector<17x1xf32>
    %c8 = arith.constant 8 : index
    %c0_19 = arith.constant 0 : index
    %c0_20 = arith.constant 0 : index
    %21 = vector.load %arg2[%c8, %c0_19, %c0_20] : memref<9x17x1xf32, #tpu.memory_space<vmem>>, vector<1x17x1xf32>
    %22 = vector.shape_cast %21 : vector<1x17x1xf32> to vector<17x1xf32>
    %cst = arith.constant 0.000000e+00 : f32
    %23 = vector.broadcast %cst : f32 to vector<33x128xf32>
    %c0_21 = arith.constant 0 : index
    %c0_22 = arith.constant 0 : index
    %24 = vector.load %arg19[%c0_21, %c0_22] : memref<33x128xf32, #tpu.memory_space<vmem>>, vector<33x128xf32>
    tpu.vector_store %arg19[%c0_21, %c0_22], %23 {strides = array<i32>} : memref<33x128xf32, #tpu.memory_space<vmem>>, vector<33x128xf32>,
    %c0_23 = arith.constant 0 : index
    %c0_24 = arith.constant 0 : index
    %c0_25 = arith.constant 0 : index
    %25 = vector.load %arg3[%c0_23, %c0_24, %c0_25] : memref<2x1x32xf32, #tpu.memory_space<vmem>>, vector<1x1x32xf32>
    %26 = vector.shape_cast %25 : vector<1x1x32xf32> to vector<1x32xf32>
    %c0_26 = arith.constant 0 : index
    %c0_27 = arith.constant 0 : index
    %c0_28 = arith.constant 0 : index
    %27 = vector.load %arg4[%c0_26, %c0_27, %c0_28] : memref<2x1x32xf32, #tpu.memory_space<vmem>>, vector<1x1x32xf32>
    %28 = vector.shape_cast %27 : vector<1x1x32xf32> to vector<1x32xf32>
    %cst_29 = arith.constant dense<0.000000e+00> : vector<17xf32>
    %29 = vector.multi_reduction <add>, %1, %cst_29 [1] : vector<17x32xf32> to vector<17xf32>
    %30 = vector.shape_cast %29 : vector<17xf32> to vector<17x1xf32>
    %cst_30 = arith.constant 3.200000e+01 : f32
    %31 = vector.broadcast %cst_30 : f32 to vector<17x1xf32>
    %32 = arith.divf %30, %31 : vector<17x1xf32>
    %33 = vector.broadcast %32 : vector<17x1xf32> to vector<17x32xf32>
    %34 = arith.subf %1, %33 : vector<17x32xf32>
    %35 = arith.mulf %34, %34 : vector<17x32xf32>
    %cst_31 = arith.constant dense<0.000000e+00> : vector<17xf32>
    %36 = vector.multi_reduction <add>, %35, %cst_31 [1] : vector<17x32xf32> to vector<17xf32>
    %37 = vector.shape_cast %36 : vector<17xf32> to vector<17x1xf32>
    %cst_32 = arith.constant 3.200000e+01 : f32
    %38 = vector.broadcast %cst_32 : f32 to vector<17x1xf32>
    %39 = arith.divf %37, %38 : vector<17x1xf32>
    %40 = vector.broadcast %32 : vector<17x1xf32> to vector<17x32xf32>
    %41 = arith.subf %1, %40 : vector<17x32xf32>
    %cst_33 = arith.constant 9.99999974E-6 : f32
    %42 = vector.broadcast %cst_33 : f32 to vector<17x1xf32>
    %43 = arith.addf %39, %42 : vector<17x1xf32>
    %44 = math.rsqrt %43 : vector<17x1xf32>
    %45 = vector.broadcast %44 : vector<17x1xf32> to vector<17x32xf32>
    %46 = arith.mulf %41, %45 : vector<17x32xf32>
    %47 = vector.broadcast %26 : vector<1x32xf32> to vector<17x32xf32>
    %48 = arith.mulf %46, %47 : vector<17x32xf32>
    %49 = vector.broadcast %28 : vector<1x32xf32> to vector<17x32xf32>
    %50 = arith.addf %48, %49 : vector<17x32xf32>
    %51 = arith.truncf %50 : vector<17x32xf32> to vector<17x32xbf16>
    %52 = vector.shape_cast %51 : vector<17x32xbf16> to vector<1x17x32xbf16>
    %53 = vector.broadcast %52 : vector<1x17x32xbf16> to vector<2x17x32xbf16>
    %c0_34 = arith.constant 0 : index
    %c0_35 = arith.constant 0 : index
    %c0_36 = arith.constant 0 : index
    %c0_37 = arith.constant 0 : index
    %54 = vector.load %arg5[%c0_34, %c0_35, %c0_36, %c0_37] : memref<6x2x32x16xbf16, #tpu.memory_space<vmem>>, vector<1x2x32x16xbf16>
    %55 = vector.shape_cast %54 : vector<1x2x32x16xbf16> to vector<2x32x16xbf16>
    "tpu.trace_start"() <{level = 10 : i32, message = "hnd,hdk->hnk"}> : () -> ()
    %cst_38 = arith.constant dense<0.000000e+00> : vector<2x17x16xf32>
    %56 = tpu.matmul %53, %55, %cst_38 {dimension_numbers = #tpu.dot_dimension_numbers<[2], [1], [1], [2], [0, 0, 0, 1, 1, 2], [0], [0]>} : vector<2x17x32xbf16>, vector<2x32x16xbf16>, vector<2x17x16xf32> -> vector<2x17x16xf32>
    "tpu.trace_stop"() : () -> ()
    %c1_39 = arith.constant 1 : index
    %c0_40 = arith.constant 0 : index
    %c0_41 = arith.constant 0 : index
    %c0_42 = arith.constant 0 : index
    %57 = vector.load %arg5[%c1_39, %c0_40, %c0_41, %c0_42] : memref<6x2x32x16xbf16, #tpu.memory_space<vmem>>, vector<1x2x32x16xbf16>
    %58 = vector.shape_cast %57 : vector<1x2x32x16xbf16> to vector<2x32x16xbf16>
    "tpu.trace_start"() <{level = 10 : i32, message = "hnd,hdk->hnk"}> : () -> ()
    %cst_43 = arith.constant dense<0.000000e+00> : vector<2x17x16xf32>
    %59 = tpu.matmul %53, %58, %cst_43 {dimension_numbers = #tpu.dot_dimension_numbers<[2], [1], [1], [2], [0, 0, 0, 1, 1, 2], [0], [0]>} : vector<2x17x32xbf16>, vector<2x32x16xbf16>, vector<2x17x16xf32> -> vector<2x17x16xf32>
    "tpu.trace_stop"() : () -> ()
    %c2_44 = arith.constant 2 : index
    %c0_45 = arith.constant 0 : index
    %c0_46 = arith.constant 0 : index
    %c0_47 = arith.constant 0 : index
    %60 = vector.load %arg5[%c2_44, %c0_45, %c0_46, %c0_47] : memref<6x2x32x16xbf16, #tpu.memory_space<vmem>>, vector<1x2x32x16xbf16>
    %61 = vector.shape_cast %60 : vector<1x2x32x16xbf16> to vector<2x32x16xbf16>
    "tpu.trace_start"() <{level = 10 : i32, message = "hnd,hdk->hnk"}> : () -> ()
    %cst_48 = arith.constant dense<0.000000e+00> : vector<2x17x16xf32>
    %62 = tpu.matmul %53, %61, %cst_48 {dimension_numbers = #tpu.dot_dimension_numbers<[2], [1], [1], [2], [0, 0, 0, 1, 1, 2], [0], [0]>} : vector<2x17x32xbf16>, vector<2x32x16xbf16>, vector<2x17x16xf32> -> vector<2x17x16xf32>
    "tpu.trace_stop"() : () -> ()
    %63 = arith.truncf %56 : vector<2x17x16xf32> to vector<2x17x16xbf16>
    %64 = arith.truncf %59 : vector<2x17x16xf32> to vector<2x17x16xbf16>
    "tpu.trace_start"() <{level = 10 : i32, message = "hnd,hmd->hnm"}> : () -> ()
    %cst_49 = arith.constant dense<0.000000e+00> : vector<2x17x17xf32>
    %65 = tpu.matmul %63, %64, %cst_49 {dimension_numbers = #tpu.dot_dimension_numbers<[2], [2], [1], [1], [0, 0, 0, 1, 1, 1], [0], [0]>} : vector<2x17x16xbf16>, vector<2x17x16xbf16>, vector<2x17x17xf32> -> vector<2x17x17xf32>
    "tpu.trace_stop"() : () -> ()
    %cst_50 = arith.constant 2.500000e-01 : f32
    %66 = vector.broadcast %cst_50 : f32 to vector<2x17x17xf32>
    %67 = arith.mulf %65, %66 : vector<2x17x17xf32>
    %cst_51 = arith.constant dense<0xFF800000> : vector<2x17xf32>
    %68 = vector.multi_reduction <maximumf>, %67, %cst_51 [2] : vector<2x17x17xf32> to vector<2x17xf32>
    %69 = vector.shape_cast %68 : vector<2x17xf32> to vector<2x17x1xf32>
    %70 = vector.broadcast %69 : vector<2x17x1xf32> to vector<2x17x17xf32>
    %71 = arith.subf %67, %70 : vector<2x17x17xf32>
    %72 = math.exp %71 : vector<2x17x17xf32>
    %cst_52 = arith.constant dense<0.000000e+00> : vector<2x17xf32>
    %73 = vector.multi_reduction <add>, %72, %cst_52 [2] : vector<2x17x17xf32> to vector<2x17xf32>
    %74 = vector.shape_cast %73 : vector<2x17xf32> to vector<2x17x1xf32>
    %75 = tpu.reciprocal %74 {approx = true} : vector<2x17x1xf32> -> vector<2x17x1xf32>
    %76 = vector.broadcast %75 : vector<2x17x1xf32> to vector<2x17x17xf32>
    %77 = arith.mulf %72, %76 : vector<2x17x17xf32>
    %78 = arith.truncf %77 : vector<2x17x17xf32> to vector<2x17x17xbf16>
    %79 = arith.truncf %62 : vector<2x17x16xf32> to vector<2x17x16xbf16>
    "tpu.trace_start"() <{level = 10 : i32, message = "hnm,hmd->hnd"}> : () -> ()
    %cst_53 = arith.constant dense<0.000000e+00> : vector<2x17x16xf32>
    %80 = tpu.matmul %78, %79, %cst_53 {dimension_numbers = #tpu.dot_dimension_numbers<[2], [1], [1], [2], [0, 0, 0, 1, 1, 2], [0], [0]>} : vector<2x17x17xbf16>, vector<2x17x16xbf16>, vector<2x17x16xf32> -> vector<2x17x16xf32>
    "tpu.trace_stop"() : () -> ()
    %81 = arith.truncf %80 : vector<2x17x16xf32> to vector<2x17x16xbf16>
    %c0_54 = arith.constant 0 : index
    %c0_55 = arith.constant 0 : index
    %c0_56 = arith.constant 0 : index
    %c0_57 = arith.constant 0 : index
    %82 = vector.load %arg6[%c0_54, %c0_55, %c0_56, %c0_57] : memref<2x2x16x32xbf16, #tpu.memory_space<vmem>>, vector<1x2x16x32xbf16>
    %83 = vector.shape_cast %82 : vector<1x2x16x32xbf16> to vector<2x16x32xbf16>
    "tpu.trace_start"() <{level = 10 : i32, message = "hnd,hdk->hnk"}> : () -> ()
    %cst_58 = arith.constant dense<0.000000e+00> : vector<2x17x32xf32>
    %84 = tpu.matmul %81, %83, %cst_58 {dimension_numbers = #tpu.dot_dimension_numbers<[2], [1], [1], [2], [0, 0, 0, 1, 1, 2], [0], [0]>} : vector<2x17x16xbf16>, vector<2x16x32xbf16>, vector<2x17x32xf32> -> vector<2x17x32xf32>
    "tpu.trace_stop"() : () -> ()
    %cst_59 = arith.constant dense<0.000000e+00> : vector<17x32xf32>
    %85 = vector.multi_reduction <add>, %84, %cst_59 [0] : vector<2x17x32xf32> to vector<17x32xf32>
    %86 = arith.addf %1, %85 : vector<17x32xf32>
    %c0_60 = arith.constant 0 : index
    %c0_61 = arith.constant 0 : index
    %c0_62 = arith.constant 0 : index
    %87 = vector.load %arg7[%c0_60, %c0_61, %c0_62] : memref<2x1x32xf32, #tpu.memory_space<vmem>>, vector<1x1x32xf32>
    %88 = vector.shape_cast %87 : vector<1x1x32xf32> to vector<1x32xf32>
    %89 = vector.broadcast %88 : vector<1x32xf32> to vector<17x32xf32>
    %90 = arith.addf %86, %89 : vector<17x32xf32>
    %c0_63 = arith.constant 0 : index
    %c0_64 = arith.constant 0 : index
    %c0_65 = arith.constant 0 : index
    %91 = vector.load %arg8[%c0_63, %c0_64, %c0_65] : memref<2x1x32xf32, #tpu.memory_space<vmem>>, vector<1x1x32xf32>
    %92 = vector.shape_cast %91 : vector<1x1x32xf32> to vector<1x32xf32>
    %c0_66 = arith.constant 0 : index
    %c0_67 = arith.constant 0 : index
    %c0_68 = arith.constant 0 : index
    %93 = vector.load %arg9[%c0_66, %c0_67, %c0_68] : memref<2x1x32xf32, #tpu.memory_space<vmem>>, vector<1x1x32xf32>
    %94 = vector.shape_cast %93 : vector<1x1x32xf32> to vector<1x32xf32>
    %cst_69 = arith.constant dense<0.000000e+00> : vector<17xf32>
    %95 = vector.multi_reduction <add>, %90, %cst_69 [1] : vector<17x32xf32> to vector<17xf32>
    %96 = vector.shape_cast %95 : vector<17xf32> to vector<17x1xf32>
    %cst_70 = arith.constant 3.200000e+01 : f32
    %97 = vector.broadcast %cst_70 : f32 to vector<17x1xf32>
    %98 = arith.divf %96, %97 : vector<17x1xf32>
    %99 = vector.broadcast %98 : vector<17x1xf32> to vector<17x32xf32>
    %100 = arith.subf %90, %99 : vector<17x32xf32>
    %101 = arith.mulf %100, %100 : vector<17x32xf32>
    %cst_71 = arith.constant dense<0.000000e+00> : vector<17xf32>
    %102 = vector.multi_reduction <add>, %101, %cst_71 [1] : vector<17x32xf32> to vector<17xf32>
    %103 = vector.shape_cast %102 : vector<17xf32> to vector<17x1xf32>
    %cst_72 = arith.constant 3.200000e+01 : f32
    %104 = vector.broadcast %cst_72 : f32 to vector<17x1xf32>
    %105 = arith.divf %103, %104 : vector<17x1xf32>
    %106 = vector.broadcast %98 : vector<17x1xf32> to vector<17x32xf32>
    %107 = arith.subf %90, %106 : vector<17x32xf32>
    %cst_73 = arith.constant 9.99999974E-6 : f32
    %108 = vector.broadcast %cst_73 : f32 to vector<17x1xf32>
    %109 = arith.addf %105, %108 : vector<17x1xf32>
    %110 = math.rsqrt %109 : vector<17x1xf32>
    %111 = vector.broadcast %110 : vector<17x1xf32> to vector<17x32xf32>
    %112 = arith.mulf %107, %111 : vector<17x32xf32>
    %113 = vector.broadcast %92 : vector<1x32xf32> to vector<17x32xf32>
    %114 = arith.mulf %112, %113 : vector<17x32xf32>
    %115 = vector.broadcast %94 : vector<1x32xf32> to vector<17x32xf32>
    %116 = arith.addf %114, %115 : vector<17x32xf32>
    %117 = arith.truncf %116 : vector<17x32xf32> to vector<17x32xbf16>
    %c0_74 = arith.constant 0 : index
    %c0_75 = arith.constant 0 : index
    %c0_76 = arith.constant 0 : index
    %118 = vector.load %arg10[%c0_74, %c0_75, %c0_76] : memref<2x32x128xbf16, #tpu.memory_space<vmem>>, vector<1x32x128xbf16>
    %119 = vector.shape_cast %118 : vector<1x32x128xbf16> to vector<32x128xbf16>
    %cst_77 = arith.constant dense<0.000000e+00> : vector<17x128xf32>
    %120 = tpu.matmul %117, %119, %cst_77 {dimension_numbers = #tpu.dot_dimension_numbers<[1], [0], [0], [1], [0, 0, 1, 1], [], []>} : vector<17x32xbf16>, vector<32x128xbf16>, vector<17x128xf32> -> vector<17x128xf32>
    %c0_78 = arith.constant 0 : index
    %c0_79 = arith.constant 0 : index
    %c0_80 = arith.constant 0 : index
    %121 = vector.load %arg11[%c0_78, %c0_79, %c0_80] : memref<2x1x128xf32, #tpu.memory_space<vmem>>, vector<1x1x128xf32>
    %122 = vector.shape_cast %121 : vector<1x1x128xf32> to vector<1x128xf32>
    %123 = vector.broadcast %122 : vector<1x128xf32> to vector<17x128xf32>
    %124 = arith.addf %120, %123 : vector<17x128xf32>
    %cst_81 = arith.constant 3.000000e+00 : f32
    %125 = vector.broadcast %cst_81 : f32 to vector<17x128xf32>
    %126 = arith.addf %124, %125 : vector<17x128xf32>
    %cst_82 = arith.constant 0.000000e+00 : f32
    %cst_83 = arith.constant 6.000000e+00 : f32
    %127 = vector.broadcast %cst_82 : f32 to vector<17x128xf32>
    %128 = arith.maximumf %127, %126 : vector<17x128xf32>
    %129 = vector.broadcast %cst_83 : f32 to vector<17x128xf32>
    %130 = arith.minimumf %129, %128 : vector<17x128xf32>
    %131 = arith.mulf %124, %130 : vector<17x128xf32>
    %cst_84 = arith.constant 0.166666672 : f32
    %132 = vector.broadcast %cst_84 : f32 to vector<17x128xf32>
    %133 = arith.mulf %131, %132 : vector<17x128xf32>
    %c8_85 = arith.constant 8 : index
    %c0_86 = arith.constant 0 : index
    %134 = vector.load %arg19[%c8_85, %c0_86] : memref<33x128xf32, #tpu.memory_space<vmem>>, vector<17x128xf32>
    tpu.vector_store %arg19[%c8_85, %c0_86], %133 {strides = array<i32>} : memref<33x128xf32, #tpu.memory_space<vmem>>, vector<17x128xf32>,
    %cst_87 = arith.constant 0.000000e+00 : f32
    %135 = vector.broadcast %cst_87 : f32 to vector<17x128xf32>
    %c0_88 = arith.constant 0 : index
    %c0_89 = arith.constant 0 : index
    %c0_90 = arith.constant 0 : index
    %136 = vector.load %arg13[%c0_88, %c0_89, %c0_90] : memref<2x1x128xf32, #tpu.memory_space<vmem>>, vector<1x1x128xf32>
    %137 = vector.shape_cast %136 : vector<1x1x128xf32> to vector<1x128xf32>
    %138 = vector.broadcast %137 : vector<1x128xf32> to vector<17x128xf32>
    %139 = arith.addf %135, %138 : vector<17x128xf32>
    %c3_91 = arith.constant 3 : index
    %c0_92 = arith.constant 0 : index
    %140 = vector.load %arg19[%c3_91, %c0_92] : memref<33x128xf32, #tpu.memory_space<vmem>>, vector<17x128xf32>
    %141 = vector.broadcast %6 : vector<17x1xf32> to vector<17x128xf32>
    %142 = arith.mulf %140, %141 : vector<17x128xf32>
    %c0_93 = arith.constant 0 : index
    %c0_94 = arith.constant 0 : index
    %c0_95 = arith.constant 0 : index
    %c0_96 = arith.constant 0 : index
    %143 = vector.load %arg12[%c0_93, %c0_94, %c0_95, %c0_96] : memref<2x9x1x128xf32, #tpu.memory_space<vmem>>, vector<1x1x1x128xf32>
    %144 = vector.shape_cast %143 : vector<1x1x1x128xf32> to vector<1x128xf32>
    %145 = vector.broadcast %144 : vector<1x128xf32> to vector<17x128xf32>
    %146 = arith.mulf %142, %145 : vector<17x128xf32>
    %147 = arith.addf %139, %146 : vector<17x128xf32>
    %c4_97 = arith.constant 4 : index
    %c0_98 = arith.constant 0 : index
    %148 = vector.load %arg19[%c4_97, %c0_98] : memref<33x128xf32, #tpu.memory_space<vmem>>, vector<17x128xf32>
    %149 = vector.broadcast %8 : vector<17x1xf32> to vector<17x128xf32>
    %150 = arith.mulf %148, %149 : vector<17x128xf32>
    %c0_99 = arith.constant 0 : index
    %c1_100 = arith.constant 1 : index
    %c0_101 = arith.constant 0 : index
    %c0_102 = arith.constant 0 : index
    %151 = vector.load %arg12[%c0_99, %c1_100, %c0_101, %c0_102] : memref<2x9x1x128xf32, #tpu.memory_space<vmem>>, vector<1x1x1x128xf32>
    %152 = vector.shape_cast %151 : vector<1x1x1x128xf32> to vector<1x128xf32>
    %153 = vector.broadcast %152 : vector<1x128xf32> to vector<17x128xf32>
    %154 = arith.mulf %150, %153 : vector<17x128xf32>
    %155 = arith.addf %147, %154 : vector<17x128xf32>
    %c5_103 = arith.constant 5 : index
    %c0_104 = arith.constant 0 : index
    %156 = vector.load %arg19[%c5_103, %c0_104] : memref<33x128xf32, #tpu.memory_space<vmem>>, vector<17x128xf32>
    %157 = vector.broadcast %10 : vector<17x1xf32> to vector<17x128xf32>
    %158 = arith.mulf %156, %157 : vector<17x128xf32>
    %c0_105 = arith.constant 0 : index
    %c2_106 = arith.constant 2 : index
    %c0_107 = arith.constant 0 : index
    %c0_108 = arith.constant 0 : index
    %159 = vector.load %arg12[%c0_105, %c2_106, %c0_107, %c0_108] : memref<2x9x1x128xf32, #tpu.memory_space<vmem>>, vector<1x1x1x128xf32>
    %160 = vector.shape_cast %159 : vector<1x1x1x128xf32> to vector<1x128xf32>
    %161 = vector.broadcast %160 : vector<1x128xf32> to vector<17x128xf32>
    %162 = arith.mulf %158, %161 : vector<17x128xf32>
    %163 = arith.addf %155, %162 : vector<17x128xf32>
    %c7_109 = arith.constant 7 : index
    %c0_110 = arith.constant 0 : index
    %164 = vector.load %arg19[%c7_109, %c0_110] : memref<33x128xf32, #tpu.memory_space<vmem>>, vector<17x128xf32>
    %165 = vector.broadcast %12 : vector<17x1xf32> to vector<17x128xf32>
    %166 = arith.mulf %164, %165 : vector<17x128xf32>
    %c0_111 = arith.constant 0 : index
    %c3_112 = arith.constant 3 : index
    %c0_113 = arith.constant 0 : index
    %c0_114 = arith.constant 0 : index
    %167 = vector.load %arg12[%c0_111, %c3_112, %c0_113, %c0_114] : memref<2x9x1x128xf32, #tpu.memory_space<vmem>>, vector<1x1x1x128xf32>
    %168 = vector.shape_cast %167 : vector<1x1x1x128xf32> to vector<1x128xf32>
    %169 = vector.broadcast %168 : vector<1x128xf32> to vector<17x128xf32>
    %170 = arith.mulf %166, %169 : vector<17x128xf32>
    %171 = arith.addf %163, %170 : vector<17x128xf32>
    %c8_115 = arith.constant 8 : index
    %c0_116 = arith.constant 0 : index
    %172 = vector.load %arg19[%c8_115, %c0_116] : memref<33x128xf32, #tpu.memory_space<vmem>>, vector<17x128xf32>
    %173 = vector.broadcast %14 : vector<17x1xf32> to vector<17x128xf32>
    %174 = arith.mulf %172, %173 : vector<17x128xf32>
    %c0_117 = arith.constant 0 : index
    %c4_118 = arith.constant 4 : index
    %c0_119 = arith.constant 0 : index
    %c0_120 = arith.constant 0 : index
    %175 = vector.load %arg12[%c0_117, %c4_118, %c0_119, %c0_120] : memref<2x9x1x128xf32, #tpu.memory_space<vmem>>, vector<1x1x1x128xf32>
    %176 = vector.shape_cast %175 : vector<1x1x1x128xf32> to vector<1x128xf32>
    %177 = vector.broadcast %176 : vector<1x128xf32> to vector<17x128xf32>
    %178 = arith.mulf %174, %177 : vector<17x128xf32>
    %179 = arith.addf %171, %178 : vector<17x128xf32>
    %c9 = arith.constant 9 : index
    %c0_121 = arith.constant 0 : index
    %180 = vector.load %arg19[%c9, %c0_121] : memref<33x128xf32, #tpu.memory_space<vmem>>, vector<17x128xf32>
    %181 = vector.broadcast %16 : vector<17x1xf32> to vector<17x128xf32>
    %182 = arith.mulf %180, %181 : vector<17x128xf32>
    %c0_122 = arith.constant 0 : index
    %c5_123 = arith.constant 5 : index
    %c0_124 = arith.constant 0 : index
    %c0_125 = arith.constant 0 : index
    %183 = vector.load %arg12[%c0_122, %c5_123, %c0_124, %c0_125] : memref<2x9x1x128xf32, #tpu.memory_space<vmem>>, vector<1x1x1x128xf32>
    %184 = vector.shape_cast %183 : vector<1x1x1x128xf32> to vector<1x128xf32>
    %185 = vector.broadcast %184 : vector<1x128xf32> to vector<17x128xf32>
    %186 = arith.mulf %182, %185 : vector<17x128xf32>
    %187 = arith.addf %179, %186 : vector<17x128xf32>
    %c11 = arith.constant 11 : index
    %c0_126 = arith.constant 0 : index
    %188 = vector.load %arg19[%c11, %c0_126] : memref<33x128xf32, #tpu.memory_space<vmem>>, vector<17x128xf32>
    %189 = vector.broadcast %18 : vector<17x1xf32> to vector<17x128xf32>
    %190 = arith.mulf %188, %189 : vector<17x128xf32>
    %c0_127 = arith.constant 0 : index
    %c6_128 = arith.constant 6 : index
    %c0_129 = arith.constant 0 : index
    %c0_130 = arith.constant 0 : index
    %191 = vector.load %arg12[%c0_127, %c6_128, %c0_129, %c0_130] : memref<2x9x1x128xf32, #tpu.memory_space<vmem>>, vector<1x1x1x128xf32>
    %192 = vector.shape_cast %191 : vector<1x1x1x128xf32> to vector<1x128xf32>
    %193 = vector.broadcast %192 : vector<1x128xf32> to vector<17x128xf32>
    %194 = arith.mulf %190, %193 : vector<17x128xf32>
    %195 = arith.addf %187, %194 : vector<17x128xf32>
    %c12 = arith.constant 12 : index
    %c0_131 = arith.constant 0 : index
    %196 = vector.load %arg19[%c12, %c0_131] : memref<33x128xf32, #tpu.memory_space<vmem>>, vector<17x128xf32>
    %197 = vector.broadcast %20 : vector<17x1xf32> to vector<17x128xf32>
    %198 = arith.mulf %196, %197 : vector<17x128xf32>
    %c0_132 = arith.constant 0 : index
    %c7_133 = arith.constant 7 : index
    %c0_134 = arith.constant 0 : index
    %c0_135 = arith.constant 0 : index
    %199 = vector.load %arg12[%c0_132, %c7_133, %c0_134, %c0_135] : memref<2x9x1x128xf32, #tpu.memory_space<vmem>>, vector<1x1x1x128xf32>
    %200 = vector.shape_cast %199 : vector<1x1x1x128xf32> to vector<1x128xf32>
    %201 = vector.broadcast %200 : vector<1x128xf32> to vector<17x128xf32>
    %202 = arith.mulf %198, %201 : vector<17x128xf32>
    %203 = arith.addf %195, %202 : vector<17x128xf32>
    %c13 = arith.constant 13 : index
    %c0_136 = arith.constant 0 : index
    %204 = vector.load %arg19[%c13, %c0_136] : memref<33x128xf32, #tpu.memory_space<vmem>>, vector<17x128xf32>
    %205 = vector.broadcast %22 : vector<17x1xf32> to vector<17x128xf32>
    %206 = arith.mulf %204, %205 : vector<17x128xf32>
    %c0_137 = arith.constant 0 : index
    %c8_138 = arith.constant 8 : index
    %c0_139 = arith.constant 0 : index
    %c0_140 = arith.constant 0 : index
    %207 = vector.load %arg12[%c0_137, %c8_138, %c0_139, %c0_140] : memref<2x9x1x128xf32, #tpu.memory_space<vmem>>, vector<1x1x1x128xf32>
    %208 = vector.shape_cast %207 : vector<1x1x1x128xf32> to vector<1x128xf32>
    %209 = vector.broadcast %208 : vector<1x128xf32> to vector<17x128xf32>
    %210 = arith.mulf %206, %209 : vector<17x128xf32>
    %211 = arith.addf %203, %210 : vector<17x128xf32>
    %212 = arith.truncf %211 : vector<17x128xf32> to vector<17x128xbf16>
    %c0_141 = arith.constant 0 : index
    %c0_142 = arith.constant 0 : index
    %c0_143 = arith.constant 0 : index
    %213 = vector.load %arg14[%c0_141, %c0_142, %c0_143] : memref<2x128x128xbf16, #tpu.memory_space<vmem>>, vector<1x128x128xbf16>
    %214 = vector.shape_cast %213 : vector<1x128x128xbf16> to vector<128x128xbf16>
    %cst_144 = arith.constant dense<0.000000e+00> : vector<17x128xf32>
    %215 = tpu.matmul %212, %214, %cst_144 {dimension_numbers = #tpu.dot_dimension_numbers<[1], [0], [0], [1], [0, 0, 1, 1], [], []>} : vector<17x128xbf16>, vector<128x128xbf16>, vector<17x128xf32> -> vector<17x128xf32>
    %c0_145 = arith.constant 0 : index
    %c0_146 = arith.constant 0 : index
    %c0_147 = arith.constant 0 : index
    %216 = vector.load %arg15[%c0_145, %c0_146, %c0_147] : memref<2x1x128xf32, #tpu.memory_space<vmem>>, vector<1x1x128xf32>
    %217 = vector.shape_cast %216 : vector<1x1x128xf32> to vector<1x128xf32>
    %218 = vector.broadcast %217 : vector<1x128xf32> to vector<17x128xf32>
    %219 = arith.addf %215, %218 : vector<17x128xf32>
    %cst_148 = arith.constant 3.000000e+00 : f32
    %220 = vector.broadcast %cst_148 : f32 to vector<17x128xf32>
    %221 = arith.addf %219, %220 : vector<17x128xf32>
    %cst_149 = arith.constant 0.000000e+00 : f32
    %cst_150 = arith.constant 6.000000e+00 : f32
    %222 = vector.broadcast %cst_149 : f32 to vector<17x128xf32>
    %223 = arith.maximumf %222, %221 : vector<17x128xf32>
    %224 = vector.broadcast %cst_150 : f32 to vector<17x128xf32>
    %225 = arith.minimumf %224, %223 : vector<17x128xf32>
    %226 = arith.mulf %219, %225 : vector<17x128xf32>
    %cst_151 = arith.constant 0.166666672 : f32
    %227 = vector.broadcast %cst_151 : f32 to vector<17x128xf32>
    %228 = arith.mulf %226, %227 : vector<17x128xf32>
    %229 = arith.truncf %228 : vector<17x128xf32> to vector<17x128xbf16>
    %c0_152 = arith.constant 0 : index
    %c0_153 = arith.constant 0 : index
    %c0_154 = arith.constant 0 : index
    %230 = vector.load %arg16[%c0_152, %c0_153, %c0_154] : memref<2x128x32xbf16, #tpu.memory_space<vmem>>, vector<1x128x32xbf16>
    %231 = vector.shape_cast %230 : vector<1x128x32xbf16> to vector<128x32xbf16>
    %cst_155 = arith.constant dense<0.000000e+00> : vector<17x32xf32>
    %232 = tpu.matmul %229, %231, %cst_155 {dimension_numbers = #tpu.dot_dimension_numbers<[1], [0], [0], [1], [0, 0, 1, 1], [], []>} : vector<17x128xbf16>, vector<128x32xbf16>, vector<17x32xf32> -> vector<17x32xf32>
    %c0_156 = arith.constant 0 : index
    %c0_157 = arith.constant 0 : index
    %c0_158 = arith.constant 0 : index
    %233 = vector.load %arg17[%c0_156, %c0_157, %c0_158] : memref<2x1x32xf32, #tpu.memory_space<vmem>>, vector<1x1x32xf32>
    %234 = vector.shape_cast %233 : vector<1x1x32xf32> to vector<1x32xf32>
    %235 = vector.broadcast %234 : vector<1x32xf32> to vector<17x32xf32>
    %236 = arith.addf %232, %235 : vector<17x32xf32>
    %237 = arith.addf %90, %236 : vector<17x32xf32>
    %238 = vector.shape_cast %4 : vector<17x1xi1> to vector<17x1xi1>
    %239 = vector.broadcast %238 : vector<17x1xi1> to vector<17x32xi1>
    %240 = arith.select %239, %90, %237 : vector<17x32xi1>, vector<17x32xf32>
    %c1_159 = arith.constant 1 : index
    %c0_160 = arith.constant 0 : index
    %c0_161 = arith.constant 0 : index
    %241 = vector.load %arg3[%c1_159, %c0_160, %c0_161] : memref<2x1x32xf32, #tpu.memory_space<vmem>>, vector<1x1x32xf32>
    %242 = vector.shape_cast %241 : vector<1x1x32xf32> to vector<1x32xf32>
    %c1_162 = arith.constant 1 : index
    %c0_163 = arith.constant 0 : index
    %c0_164 = arith.constant 0 : index
    %243 = vector.load %arg4[%c1_162, %c0_163, %c0_164] : memref<2x1x32xf32, #tpu.memory_space<vmem>>, vector<1x1x32xf32>
    %244 = vector.shape_cast %243 : vector<1x1x32xf32> to vector<1x32xf32>
    %cst_165 = arith.constant dense<0.000000e+00> : vector<17xf32>
    %245 = vector.multi_reduction <add>, %240, %cst_165 [1] : vector<17x32xf32> to vector<17xf32>
    %246 = vector.shape_cast %245 : vector<17xf32> to vector<17x1xf32>
    %cst_166 = arith.constant 3.200000e+01 : f32
    %247 = vector.broadcast %cst_166 : f32 to vector<17x1xf32>
    %248 = arith.divf %246, %247 : vector<17x1xf32>
    %249 = vector.broadcast %248 : vector<17x1xf32> to vector<17x32xf32>
    %250 = arith.subf %240, %249 : vector<17x32xf32>
    %251 = arith.mulf %250, %250 : vector<17x32xf32>
    %cst_167 = arith.constant dense<0.000000e+00> : vector<17xf32>
    %252 = vector.multi_reduction <add>, %251, %cst_167 [1] : vector<17x32xf32> to vector<17xf32>
    %253 = vector.shape_cast %252 : vector<17xf32> to vector<17x1xf32>
    %cst_168 = arith.constant 3.200000e+01 : f32
    %254 = vector.broadcast %cst_168 : f32 to vector<17x1xf32>
    %255 = arith.divf %253, %254 : vector<17x1xf32>
    %256 = vector.broadcast %248 : vector<17x1xf32> to vector<17x32xf32>
    %257 = arith.subf %240, %256 : vector<17x32xf32>
    %cst_169 = arith.constant 9.99999974E-6 : f32
    %258 = vector.broadcast %cst_169 : f32 to vector<17x1xf32>
    %259 = arith.addf %255, %258 : vector<17x1xf32>
    %260 = math.rsqrt %259 : vector<17x1xf32>
    %261 = vector.broadcast %260 : vector<17x1xf32> to vector<17x32xf32>
    %262 = arith.mulf %257, %261 : vector<17x32xf32>
    %263 = vector.broadcast %242 : vector<1x32xf32> to vector<17x32xf32>
    %264 = arith.mulf %262, %263 : vector<17x32xf32>
    %265 = vector.broadcast %244 : vector<1x32xf32> to vector<17x32xf32>
    %266 = arith.addf %264, %265 : vector<17x32xf32>
    %267 = arith.truncf %266 : vector<17x32xf32> to vector<17x32xbf16>
    %268 = vector.shape_cast %267 : vector<17x32xbf16> to vector<1x17x32xbf16>
    %269 = vector.broadcast %268 : vector<1x17x32xbf16> to vector<2x17x32xbf16>
    %c3_170 = arith.constant 3 : index
    %c0_171 = arith.constant 0 : index
    %c0_172 = arith.constant 0 : index
    %c0_173 = arith.constant 0 : index
    %270 = vector.load %arg5[%c3_170, %c0_171, %c0_172, %c0_173] : memref<6x2x32x16xbf16, #tpu.memory_space<vmem>>, vector<1x2x32x16xbf16>
    %271 = vector.shape_cast %270 : vector<1x2x32x16xbf16> to vector<2x32x16xbf16>
    "tpu.trace_start"() <{level = 10 : i32, message = "hnd,hdk->hnk"}> : () -> ()
    %cst_174 = arith.constant dense<0.000000e+00> : vector<2x17x16xf32>
    %272 = tpu.matmul %269, %271, %cst_174 {dimension_numbers = #tpu.dot_dimension_numbers<[2], [1], [1], [2], [0, 0, 0, 1, 1, 2], [0], [0]>} : vector<2x17x32xbf16>, vector<2x32x16xbf16>, vector<2x17x16xf32> -> vector<2x17x16xf32>
    "tpu.trace_stop"() : () -> ()
    %c4_175 = arith.constant 4 : index
    %c0_176 = arith.constant 0 : index
    %c0_177 = arith.constant 0 : index
    %c0_178 = arith.constant 0 : index
    %273 = vector.load %arg5[%c4_175, %c0_176, %c0_177, %c0_178] : memref<6x2x32x16xbf16, #tpu.memory_space<vmem>>, vector<1x2x32x16xbf16>
    %274 = vector.shape_cast %273 : vector<1x2x32x16xbf16> to vector<2x32x16xbf16>
    "tpu.trace_start"() <{level = 10 : i32, message = "hnd,hdk->hnk"}> : () -> ()
    %cst_179 = arith.constant dense<0.000000e+00> : vector<2x17x16xf32>
    %275 = tpu.matmul %269, %274, %cst_179 {dimension_numbers = #tpu.dot_dimension_numbers<[2], [1], [1], [2], [0, 0, 0, 1, 1, 2], [0], [0]>} : vector<2x17x32xbf16>, vector<2x32x16xbf16>, vector<2x17x16xf32> -> vector<2x17x16xf32>
    "tpu.trace_stop"() : () -> ()
    %c5_180 = arith.constant 5 : index
    %c0_181 = arith.constant 0 : index
    %c0_182 = arith.constant 0 : index
    %c0_183 = arith.constant 0 : index
    %276 = vector.load %arg5[%c5_180, %c0_181, %c0_182, %c0_183] : memref<6x2x32x16xbf16, #tpu.memory_space<vmem>>, vector<1x2x32x16xbf16>
    %277 = vector.shape_cast %276 : vector<1x2x32x16xbf16> to vector<2x32x16xbf16>
    "tpu.trace_start"() <{level = 10 : i32, message = "hnd,hdk->hnk"}> : () -> ()
    %cst_184 = arith.constant dense<0.000000e+00> : vector<2x17x16xf32>
    %278 = tpu.matmul %269, %277, %cst_184 {dimension_numbers = #tpu.dot_dimension_numbers<[2], [1], [1], [2], [0, 0, 0, 1, 1, 2], [0], [0]>} : vector<2x17x32xbf16>, vector<2x32x16xbf16>, vector<2x17x16xf32> -> vector<2x17x16xf32>
    "tpu.trace_stop"() : () -> ()
    %279 = arith.truncf %272 : vector<2x17x16xf32> to vector<2x17x16xbf16>
    %280 = arith.truncf %275 : vector<2x17x16xf32> to vector<2x17x16xbf16>
    "tpu.trace_start"() <{level = 10 : i32, message = "hnd,hmd->hnm"}> : () -> ()
    %cst_185 = arith.constant dense<0.000000e+00> : vector<2x17x17xf32>
    %281 = tpu.matmul %279, %280, %cst_185 {dimension_numbers = #tpu.dot_dimension_numbers<[2], [2], [1], [1], [0, 0, 0, 1, 1, 1], [0], [0]>} : vector<2x17x16xbf16>, vector<2x17x16xbf16>, vector<2x17x17xf32> -> vector<2x17x17xf32>
    "tpu.trace_stop"() : () -> ()
    %cst_186 = arith.constant 2.500000e-01 : f32
    %282 = vector.broadcast %cst_186 : f32 to vector<2x17x17xf32>
    %283 = arith.mulf %281, %282 : vector<2x17x17xf32>
    %cst_187 = arith.constant dense<0xFF800000> : vector<2x17xf32>
    %284 = vector.multi_reduction <maximumf>, %283, %cst_187 [2] : vector<2x17x17xf32> to vector<2x17xf32>
    %285 = vector.shape_cast %284 : vector<2x17xf32> to vector<2x17x1xf32>
    %286 = vector.broadcast %285 : vector<2x17x1xf32> to vector<2x17x17xf32>
    %287 = arith.subf %283, %286 : vector<2x17x17xf32>
    %288 = math.exp %287 : vector<2x17x17xf32>
    %cst_188 = arith.constant dense<0.000000e+00> : vector<2x17xf32>
    %289 = vector.multi_reduction <add>, %288, %cst_188 [2] : vector<2x17x17xf32> to vector<2x17xf32>
    %290 = vector.shape_cast %289 : vector<2x17xf32> to vector<2x17x1xf32>
    %291 = tpu.reciprocal %290 {approx = true} : vector<2x17x1xf32> -> vector<2x17x1xf32>
    %292 = vector.broadcast %291 : vector<2x17x1xf32> to vector<2x17x17xf32>
    %293 = arith.mulf %288, %292 : vector<2x17x17xf32>
    %294 = arith.truncf %293 : vector<2x17x17xf32> to vector<2x17x17xbf16>
    %295 = arith.truncf %278 : vector<2x17x16xf32> to vector<2x17x16xbf16>
    "tpu.trace_start"() <{level = 10 : i32, message = "hnm,hmd->hnd"}> : () -> ()
    %cst_189 = arith.constant dense<0.000000e+00> : vector<2x17x16xf32>
    %296 = tpu.matmul %294, %295, %cst_189 {dimension_numbers = #tpu.dot_dimension_numbers<[2], [1], [1], [2], [0, 0, 0, 1, 1, 2], [0], [0]>} : vector<2x17x17xbf16>, vector<2x17x16xbf16>, vector<2x17x16xf32> -> vector<2x17x16xf32>
    "tpu.trace_stop"() : () -> ()
    %297 = arith.truncf %296 : vector<2x17x16xf32> to vector<2x17x16xbf16>
    %c1_190 = arith.constant 1 : index
    %c0_191 = arith.constant 0 : index
    %c0_192 = arith.constant 0 : index
    %c0_193 = arith.constant 0 : index
    %298 = vector.load %arg6[%c1_190, %c0_191, %c0_192, %c0_193] : memref<2x2x16x32xbf16, #tpu.memory_space<vmem>>, vector<1x2x16x32xbf16>
    %299 = vector.shape_cast %298 : vector<1x2x16x32xbf16> to vector<2x16x32xbf16>
    "tpu.trace_start"() <{level = 10 : i32, message = "hnd,hdk->hnk"}> : () -> ()
    %cst_194 = arith.constant dense<0.000000e+00> : vector<2x17x32xf32>
    %300 = tpu.matmul %297, %299, %cst_194 {dimension_numbers = #tpu.dot_dimension_numbers<[2], [1], [1], [2], [0, 0, 0, 1, 1, 2], [0], [0]>} : vector<2x17x16xbf16>, vector<2x16x32xbf16>, vector<2x17x32xf32> -> vector<2x17x32xf32>
    "tpu.trace_stop"() : () -> ()
    %cst_195 = arith.constant dense<0.000000e+00> : vector<17x32xf32>
    %301 = vector.multi_reduction <add>, %300, %cst_195 [0] : vector<2x17x32xf32> to vector<17x32xf32>
    %302 = arith.addf %240, %301 : vector<17x32xf32>
    %c1_196 = arith.constant 1 : index
    %c0_197 = arith.constant 0 : index
    %c0_198 = arith.constant 0 : index
    %303 = vector.load %arg7[%c1_196, %c0_197, %c0_198] : memref<2x1x32xf32, #tpu.memory_space<vmem>>, vector<1x1x32xf32>
    %304 = vector.shape_cast %303 : vector<1x1x32xf32> to vector<1x32xf32>
    %305 = vector.broadcast %304 : vector<1x32xf32> to vector<17x32xf32>
    %306 = arith.addf %302, %305 : vector<17x32xf32>
    %c1_199 = arith.constant 1 : index
    %c0_200 = arith.constant 0 : index
    %c0_201 = arith.constant 0 : index
    %307 = vector.load %arg8[%c1_199, %c0_200, %c0_201] : memref<2x1x32xf32, #tpu.memory_space<vmem>>, vector<1x1x32xf32>
    %308 = vector.shape_cast %307 : vector<1x1x32xf32> to vector<1x32xf32>
    %c1_202 = arith.constant 1 : index
    %c0_203 = arith.constant 0 : index
    %c0_204 = arith.constant 0 : index
    %309 = vector.load %arg9[%c1_202, %c0_203, %c0_204] : memref<2x1x32xf32, #tpu.memory_space<vmem>>, vector<1x1x32xf32>
    %310 = vector.shape_cast %309 : vector<1x1x32xf32> to vector<1x32xf32>
    %cst_205 = arith.constant dense<0.000000e+00> : vector<17xf32>
    %311 = vector.multi_reduction <add>, %306, %cst_205 [1] : vector<17x32xf32> to vector<17xf32>
    %312 = vector.shape_cast %311 : vector<17xf32> to vector<17x1xf32>
    %cst_206 = arith.constant 3.200000e+01 : f32
    %313 = vector.broadcast %cst_206 : f32 to vector<17x1xf32>
    %314 = arith.divf %312, %313 : vector<17x1xf32>
    %315 = vector.broadcast %314 : vector<17x1xf32> to vector<17x32xf32>
    %316 = arith.subf %306, %315 : vector<17x32xf32>
    %317 = arith.mulf %316, %316 : vector<17x32xf32>
    %cst_207 = arith.constant dense<0.000000e+00> : vector<17xf32>
    %318 = vector.multi_reduction <add>, %317, %cst_207 [1] : vector<17x32xf32> to vector<17xf32>
    %319 = vector.shape_cast %318 : vector<17xf32> to vector<17x1xf32>
    %cst_208 = arith.constant 3.200000e+01 : f32
    %320 = vector.broadcast %cst_208 : f32 to vector<17x1xf32>
    %321 = arith.divf %319, %320 : vector<17x1xf32>
    %322 = vector.broadcast %314 : vector<17x1xf32> to vector<17x32xf32>
    %323 = arith.subf %306, %322 : vector<17x32xf32>
    %cst_209 = arith.constant 9.99999974E-6 : f32
    %324 = vector.broadcast %cst_209 : f32 to vector<17x1xf32>
    %325 = arith.addf %321, %324 : vector<17x1xf32>
    %326 = math.rsqrt %325 : vector<17x1xf32>
    %327 = vector.broadcast %326 : vector<17x1xf32> to vector<17x32xf32>
    %328 = arith.mulf %323, %327 : vector<17x32xf32>
    %329 = vector.broadcast %308 : vector<1x32xf32> to vector<17x32xf32>
    %330 = arith.mulf %328, %329 : vector<17x32xf32>
    %331 = vector.broadcast %310 : vector<1x32xf32> to vector<17x32xf32>
    %332 = arith.addf %330, %331 : vector<17x32xf32>
    %333 = arith.truncf %332 : vector<17x32xf32> to vector<17x32xbf16>
    %c1_210 = arith.constant 1 : index
    %c0_211 = arith.constant 0 : index
    %c0_212 = arith.constant 0 : index
    %334 = vector.load %arg10[%c1_210, %c0_211, %c0_212] : memref<2x32x128xbf16, #tpu.memory_space<vmem>>, vector<1x32x128xbf16>
    %335 = vector.shape_cast %334 : vector<1x32x128xbf16> to vector<32x128xbf16>
    %cst_213 = arith.constant dense<0.000000e+00> : vector<17x128xf32>
    %336 = tpu.matmul %333, %335, %cst_213 {dimension_numbers = #tpu.dot_dimension_numbers<[1], [0], [0], [1], [0, 0, 1, 1], [], []>} : vector<17x32xbf16>, vector<32x128xbf16>, vector<17x128xf32> -> vector<17x128xf32>
    %c1_214 = arith.constant 1 : index
    %c0_215 = arith.constant 0 : index
    %c0_216 = arith.constant 0 : index
    %337 = vector.load %arg11[%c1_214, %c0_215, %c0_216] : memref<2x1x128xf32, #tpu.memory_space<vmem>>, vector<1x1x128xf32>
    %338 = vector.shape_cast %337 : vector<1x1x128xf32> to vector<1x128xf32>
    %339 = vector.broadcast %338 : vector<1x128xf32> to vector<17x128xf32>
    %340 = arith.addf %336, %339 : vector<17x128xf32>
    %cst_217 = arith.constant 3.000000e+00 : f32
    %341 = vector.broadcast %cst_217 : f32 to vector<17x128xf32>
    %342 = arith.addf %340, %341 : vector<17x128xf32>
    %cst_218 = arith.constant 0.000000e+00 : f32
    %cst_219 = arith.constant 6.000000e+00 : f32
    %343 = vector.broadcast %cst_218 : f32 to vector<17x128xf32>
    %344 = arith.maximumf %343, %342 : vector<17x128xf32>
    %345 = vector.broadcast %cst_219 : f32 to vector<17x128xf32>
    %346 = arith.minimumf %345, %344 : vector<17x128xf32>
    %347 = arith.mulf %340, %346 : vector<17x128xf32>
    %cst_220 = arith.constant 0.166666672 : f32
    %348 = vector.broadcast %cst_220 : f32 to vector<17x128xf32>
    %349 = arith.mulf %347, %348 : vector<17x128xf32>
    %c8_221 = arith.constant 8 : index
    %c0_222 = arith.constant 0 : index
    %350 = vector.load %arg19[%c8_221, %c0_222] : memref<33x128xf32, #tpu.memory_space<vmem>>, vector<17x128xf32>
    tpu.vector_store %arg19[%c8_221, %c0_222], %349 {strides = array<i32>} : memref<33x128xf32, #tpu.memory_space<vmem>>, vector<17x128xf32>,
    %cst_223 = arith.constant 0.000000e+00 : f32
    %351 = vector.broadcast %cst_223 : f32 to vector<17x128xf32>
    %c1_224 = arith.constant 1 : index
    %c0_225 = arith.constant 0 : index
    %c0_226 = arith.constant 0 : index
    %352 = vector.load %arg13[%c1_224, %c0_225, %c0_226] : memref<2x1x128xf32, #tpu.memory_space<vmem>>, vector<1x1x128xf32>
    %353 = vector.shape_cast %352 : vector<1x1x128xf32> to vector<1x128xf32>
    %354 = vector.broadcast %353 : vector<1x128xf32> to vector<17x128xf32>
    %355 = arith.addf %351, %354 : vector<17x128xf32>
    %c3_227 = arith.constant 3 : index
    %c0_228 = arith.constant 0 : index
    %356 = vector.load %arg19[%c3_227, %c0_228] : memref<33x128xf32, #tpu.memory_space<vmem>>, vector<17x128xf32>
    %357 = vector.broadcast %6 : vector<17x1xf32> to vector<17x128xf32>
    %358 = arith.mulf %356, %357 : vector<17x128xf32>
    %c1_229 = arith.constant 1 : index
    %c0_230 = arith.constant 0 : index
    %c0_231 = arith.constant 0 : index
    %c0_232 = arith.constant 0 : index
    %359 = vector.load %arg12[%c1_229, %c0_230, %c0_231, %c0_232] : memref<2x9x1x128xf32, #tpu.memory_space<vmem>>, vector<1x1x1x128xf32>
    %360 = vector.shape_cast %359 : vector<1x1x1x128xf32> to vector<1x128xf32>
    %361 = vector.broadcast %360 : vector<1x128xf32> to vector<17x128xf32>
    %362 = arith.mulf %358, %361 : vector<17x128xf32>
    %363 = arith.addf %355, %362 : vector<17x128xf32>
    %c4_233 = arith.constant 4 : index
    %c0_234 = arith.constant 0 : index
    %364 = vector.load %arg19[%c4_233, %c0_234] : memref<33x128xf32, #tpu.memory_space<vmem>>, vector<17x128xf32>
    %365 = vector.broadcast %8 : vector<17x1xf32> to vector<17x128xf32>
    %366 = arith.mulf %364, %365 : vector<17x128xf32>
    %c1_235 = arith.constant 1 : index
    %c1_236 = arith.constant 1 : index
    %c0_237 = arith.constant 0 : index
    %c0_238 = arith.constant 0 : index
    %367 = vector.load %arg12[%c1_235, %c1_236, %c0_237, %c0_238] : memref<2x9x1x128xf32, #tpu.memory_space<vmem>>, vector<1x1x1x128xf32>
    %368 = vector.shape_cast %367 : vector<1x1x1x128xf32> to vector<1x128xf32>
    %369 = vector.broadcast %368 : vector<1x128xf32> to vector<17x128xf32>
    %370 = arith.mulf %366, %369 : vector<17x128xf32>
    %371 = arith.addf %363, %370 : vector<17x128xf32>
    %c5_239 = arith.constant 5 : index
    %c0_240 = arith.constant 0 : index
    %372 = vector.load %arg19[%c5_239, %c0_240] : memref<33x128xf32, #tpu.memory_space<vmem>>, vector<17x128xf32>
    %373 = vector.broadcast %10 : vector<17x1xf32> to vector<17x128xf32>
    %374 = arith.mulf %372, %373 : vector<17x128xf32>
    %c1_241 = arith.constant 1 : index
    %c2_242 = arith.constant 2 : index
    %c0_243 = arith.constant 0 : index
    %c0_244 = arith.constant 0 : index
    %375 = vector.load %arg12[%c1_241, %c2_242, %c0_243, %c0_244] : memref<2x9x1x128xf32, #tpu.memory_space<vmem>>, vector<1x1x1x128xf32>
    %376 = vector.shape_cast %375 : vector<1x1x1x128xf32> to vector<1x128xf32>
    %377 = vector.broadcast %376 : vector<1x128xf32> to vector<17x128xf32>
    %378 = arith.mulf %374, %377 : vector<17x128xf32>
    %379 = arith.addf %371, %378 : vector<17x128xf32>
    %c7_245 = arith.constant 7 : index
    %c0_246 = arith.constant 0 : index
    %380 = vector.load %arg19[%c7_245, %c0_246] : memref<33x128xf32, #tpu.memory_space<vmem>>, vector<17x128xf32>
    %381 = vector.broadcast %12 : vector<17x1xf32> to vector<17x128xf32>
    %382 = arith.mulf %380, %381 : vector<17x128xf32>
    %c1_247 = arith.constant 1 : index
    %c3_248 = arith.constant 3 : index
    %c0_249 = arith.constant 0 : index
    %c0_250 = arith.constant 0 : index
    %383 = vector.load %arg12[%c1_247, %c3_248, %c0_249, %c0_250] : memref<2x9x1x128xf32, #tpu.memory_space<vmem>>, vector<1x1x1x128xf32>
    %384 = vector.shape_cast %383 : vector<1x1x1x128xf32> to vector<1x128xf32>
    %385 = vector.broadcast %384 : vector<1x128xf32> to vector<17x128xf32>
    %386 = arith.mulf %382, %385 : vector<17x128xf32>
    %387 = arith.addf %379, %386 : vector<17x128xf32>
    %c8_251 = arith.constant 8 : index
    %c0_252 = arith.constant 0 : index
    %388 = vector.load %arg19[%c8_251, %c0_252] : memref<33x128xf32, #tpu.memory_space<vmem>>, vector<17x128xf32>
    %389 = vector.broadcast %14 : vector<17x1xf32> to vector<17x128xf32>
    %390 = arith.mulf %388, %389 : vector<17x128xf32>
    %c1_253 = arith.constant 1 : index
    %c4_254 = arith.constant 4 : index
    %c0_255 = arith.constant 0 : index
    %c0_256 = arith.constant 0 : index
    %391 = vector.load %arg12[%c1_253, %c4_254, %c0_255, %c0_256] : memref<2x9x1x128xf32, #tpu.memory_space<vmem>>, vector<1x1x1x128xf32>
    %392 = vector.shape_cast %391 : vector<1x1x1x128xf32> to vector<1x128xf32>
    %393 = vector.broadcast %392 : vector<1x128xf32> to vector<17x128xf32>
    %394 = arith.mulf %390, %393 : vector<17x128xf32>
    %395 = arith.addf %387, %394 : vector<17x128xf32>
    %c9_257 = arith.constant 9 : index
    %c0_258 = arith.constant 0 : index
    %396 = vector.load %arg19[%c9_257, %c0_258] : memref<33x128xf32, #tpu.memory_space<vmem>>, vector<17x128xf32>
    %397 = vector.broadcast %16 : vector<17x1xf32> to vector<17x128xf32>
    %398 = arith.mulf %396, %397 : vector<17x128xf32>
    %c1_259 = arith.constant 1 : index
    %c5_260 = arith.constant 5 : index
    %c0_261 = arith.constant 0 : index
    %c0_262 = arith.constant 0 : index
    %399 = vector.load %arg12[%c1_259, %c5_260, %c0_261, %c0_262] : memref<2x9x1x128xf32, #tpu.memory_space<vmem>>, vector<1x1x1x128xf32>
    %400 = vector.shape_cast %399 : vector<1x1x1x128xf32> to vector<1x128xf32>
    %401 = vector.broadcast %400 : vector<1x128xf32> to vector<17x128xf32>
    %402 = arith.mulf %398, %401 : vector<17x128xf32>
    %403 = arith.addf %395, %402 : vector<17x128xf32>
    %c11_263 = arith.constant 11 : index
    %c0_264 = arith.constant 0 : index
    %404 = vector.load %arg19[%c11_263, %c0_264] : memref<33x128xf32, #tpu.memory_space<vmem>>, vector<17x128xf32>
    %405 = vector.broadcast %18 : vector<17x1xf32> to vector<17x128xf32>
    %406 = arith.mulf %404, %405 : vector<17x128xf32>
    %c1_265 = arith.constant 1 : index
    %c6_266 = arith.constant 6 : index
    %c0_267 = arith.constant 0 : index
    %c0_268 = arith.constant 0 : index
    %407 = vector.load %arg12[%c1_265, %c6_266, %c0_267, %c0_268] : memref<2x9x1x128xf32, #tpu.memory_space<vmem>>, vector<1x1x1x128xf32>
    %408 = vector.shape_cast %407 : vector<1x1x1x128xf32> to vector<1x128xf32>
    %409 = vector.broadcast %408 : vector<1x128xf32> to vector<17x128xf32>
    %410 = arith.mulf %406, %409 : vector<17x128xf32>
    %411 = arith.addf %403, %410 : vector<17x128xf32>
    %c12_269 = arith.constant 12 : index
    %c0_270 = arith.constant 0 : index
    %412 = vector.load %arg19[%c12_269, %c0_270] : memref<33x128xf32, #tpu.memory_space<vmem>>, vector<17x128xf32>
    %413 = vector.broadcast %20 : vector<17x1xf32> to vector<17x128xf32>
    %414 = arith.mulf %412, %413 : vector<17x128xf32>
    %c1_271 = arith.constant 1 : index
    %c7_272 = arith.constant 7 : index
    %c0_273 = arith.constant 0 : index
    %c0_274 = arith.constant 0 : index
    %415 = vector.load %arg12[%c1_271, %c7_272, %c0_273, %c0_274] : memref<2x9x1x128xf32, #tpu.memory_space<vmem>>, vector<1x1x1x128xf32>
    %416 = vector.shape_cast %415 : vector<1x1x1x128xf32> to vector<1x128xf32>
    %417 = vector.broadcast %416 : vector<1x128xf32> to vector<17x128xf32>
    %418 = arith.mulf %414, %417 : vector<17x128xf32>
    %419 = arith.addf %411, %418 : vector<17x128xf32>
    %c13_275 = arith.constant 13 : index
    %c0_276 = arith.constant 0 : index
    %420 = vector.load %arg19[%c13_275, %c0_276] : memref<33x128xf32, #tpu.memory_space<vmem>>, vector<17x128xf32>
    %421 = vector.broadcast %22 : vector<17x1xf32> to vector<17x128xf32>
    %422 = arith.mulf %420, %421 : vector<17x128xf32>
    %c1_277 = arith.constant 1 : index
    %c8_278 = arith.constant 8 : index
    %c0_279 = arith.constant 0 : index
    %c0_280 = arith.constant 0 : index
    %423 = vector.load %arg12[%c1_277, %c8_278, %c0_279, %c0_280] : memref<2x9x1x128xf32, #tpu.memory_space<vmem>>, vector<1x1x1x128xf32>
    %424 = vector.shape_cast %423 : vector<1x1x1x128xf32> to vector<1x128xf32>
    %425 = vector.broadcast %424 : vector<1x128xf32> to vector<17x128xf32>
    %426 = arith.mulf %422, %425 : vector<17x128xf32>
    %427 = arith.addf %419, %426 : vector<17x128xf32>
    %428 = arith.truncf %427 : vector<17x128xf32> to vector<17x128xbf16>
    %c1_281 = arith.constant 1 : index
    %c0_282 = arith.constant 0 : index
    %c0_283 = arith.constant 0 : index
    %429 = vector.load %arg14[%c1_281, %c0_282, %c0_283] : memref<2x128x128xbf16, #tpu.memory_space<vmem>>, vector<1x128x128xbf16>
    %430 = vector.shape_cast %429 : vector<1x128x128xbf16> to vector<128x128xbf16>
    %cst_284 = arith.constant dense<0.000000e+00> : vector<17x128xf32>
    %431 = tpu.matmul %428, %430, %cst_284 {dimension_numbers = #tpu.dot_dimension_numbers<[1], [0], [0], [1], [0, 0, 1, 1], [], []>} : vector<17x128xbf16>, vector<128x128xbf16>, vector<17x128xf32> -> vector<17x128xf32>
    %c1_285 = arith.constant 1 : index
    %c0_286 = arith.constant 0 : index
    %c0_287 = arith.constant 0 : index
    %432 = vector.load %arg15[%c1_285, %c0_286, %c0_287] : memref<2x1x128xf32, #tpu.memory_space<vmem>>, vector<1x1x128xf32>
    %433 = vector.shape_cast %432 : vector<1x1x128xf32> to vector<1x128xf32>
    %434 = vector.broadcast %433 : vector<1x128xf32> to vector<17x128xf32>
    %435 = arith.addf %431, %434 : vector<17x128xf32>
    %cst_288 = arith.constant 3.000000e+00 : f32
    %436 = vector.broadcast %cst_288 : f32 to vector<17x128xf32>
    %437 = arith.addf %435, %436 : vector<17x128xf32>
    %cst_289 = arith.constant 0.000000e+00 : f32
    %cst_290 = arith.constant 6.000000e+00 : f32
    %438 = vector.broadcast %cst_289 : f32 to vector<17x128xf32>
    %439 = arith.maximumf %438, %437 : vector<17x128xf32>
    %440 = vector.broadcast %cst_290 : f32 to vector<17x128xf32>
    %441 = arith.minimumf %440, %439 : vector<17x128xf32>
    %442 = arith.mulf %435, %441 : vector<17x128xf32>
    %cst_291 = arith.constant 0.166666672 : f32
    %443 = vector.broadcast %cst_291 : f32 to vector<17x128xf32>
    %444 = arith.mulf %442, %443 : vector<17x128xf32>
    %445 = arith.truncf %444 : vector<17x128xf32> to vector<17x128xbf16>
    %c1_292 = arith.constant 1 : index
    %c0_293 = arith.constant 0 : index
    %c0_294 = arith.constant 0 : index
    %446 = vector.load %arg16[%c1_292, %c0_293, %c0_294] : memref<2x128x32xbf16, #tpu.memory_space<vmem>>, vector<1x128x32xbf16>
    %447 = vector.shape_cast %446 : vector<1x128x32xbf16> to vector<128x32xbf16>
    %cst_295 = arith.constant dense<0.000000e+00> : vector<17x32xf32>
    %448 = tpu.matmul %445, %447, %cst_295 {dimension_numbers = #tpu.dot_dimension_numbers<[1], [0], [0], [1], [0, 0, 1, 1], [], []>} : vector<17x128xbf16>, vector<128x32xbf16>, vector<17x32xf32> -> vector<17x32xf32>
    %c1_296 = arith.constant 1 : index
    %c0_297 = arith.constant 0 : index
    %c0_298 = arith.constant 0 : index
    %449 = vector.load %arg17[%c1_296, %c0_297, %c0_298] : memref<2x1x32xf32, #tpu.memory_space<vmem>>, vector<1x1x32xf32>
    %450 = vector.shape_cast %449 : vector<1x1x32xf32> to vector<1x32xf32>
    %451 = vector.broadcast %450 : vector<1x32xf32> to vector<17x32xf32>
    %452 = arith.addf %448, %451 : vector<17x32xf32>
    %453 = arith.addf %306, %452 : vector<17x32xf32>
    %454 = vector.shape_cast %4 : vector<17x1xi1> to vector<17x1xi1>
    %455 = vector.broadcast %454 : vector<17x1xi1> to vector<17x32xi1>
    %456 = arith.select %455, %306, %453 : vector<17x32xi1>, vector<17x32xf32>
    %c0_299 = arith.constant 0 : index
    %c0_300 = arith.constant 0 : index
    %c0_301 = arith.constant 0 : index
    %457 = vector.load %arg18[%c0_299, %c0_300, %c0_301] : memref<1x17x32xf32, #tpu.memory_space<vmem>>, vector<1x17x32xf32>
    %458 = vector.shape_cast %457 : vector<1x17x32xf32> to vector<17x32xf32>
    %459 = vector.shape_cast %456 : vector<17x32xf32> to vector<1x17x32xf32>
    tpu.vector_store %arg18[%c0_299, %c0_300, %c0_301], %459 {strides = array<i32>} : memref<1x17x32xf32, #tpu.memory_space<vmem>>, vector<1x17x32xf32>,
    return
  }
  func.func @transform_0(%arg0: i32) -> (i32, i32, i32) {
    %c0_i32 = arith.constant 0 : i32
    %c0_i32_0 = arith.constant 0 : i32
    %c0_i32_1 = arith.constant 0 : i32
    return %arg0, %c0_i32, %c0_i32_0 : i32, i32, i32
  }
  func.func @transform_1(%arg0: i32) -> (i32, i32, i32) {
    %c0_i32 = arith.constant 0 : i32
    %c0_i32_0 = arith.constant 0 : i32
    %c0_i32_1 = arith.constant 0 : i32
    %c0_i32_2 = arith.constant 0 : i32
    return %c0_i32, %c0_i32_0, %c0_i32_1 : i32, i32, i32
  }
  func.func @transform_2(%arg0: i32) -> (i32, i32, i32) {
    %c0_i32 = arith.constant 0 : i32
    %c0_i32_0 = arith.constant 0 : i32
    %c0_i32_1 = arith.constant 0 : i32
    %c0_i32_2 = arith.constant 0 : i32
    return %c0_i32, %c0_i32_0, %c0_i32_1 : i32, i32, i32
  }
  func.func @transform_3(%arg0: i32) -> (i32, i32, i32) {
    %c0_i32 = arith.constant 0 : i32
    %c0_i32_0 = arith.constant 0 : i32
    %c0_i32_1 = arith.constant 0 : i32
    %c0_i32_2 = arith.constant 0 : i32
    return %c0_i32, %c0_i32_0, %c0_i32_1 : i32, i32, i32
  }
  func.func @transform_4(%arg0: i32) -> (i32, i32, i32, i32) {
    %c0_i32 = arith.constant 0 : i32
    %c0_i32_0 = arith.constant 0 : i32
    %c0_i32_1 = arith.constant 0 : i32
    %c0_i32_2 = arith.constant 0 : i32
    %c0_i32_3 = arith.constant 0 : i32
    return %c0_i32, %c0_i32_0, %c0_i32_1, %c0_i32_2 : i32, i32, i32, i32
  }
  func.func @transform_5(%arg0: i32) -> (i32, i32, i32, i32) {
    %c0_i32 = arith.constant 0 : i32
    %c0_i32_0 = arith.constant 0 : i32
    %c0_i32_1 = arith.constant 0 : i32
    %c0_i32_2 = arith.constant 0 : i32
    %c0_i32_3 = arith.constant 0 : i32
    return %c0_i32, %c0_i32_0, %c0_i32_1, %c0_i32_2 : i32, i32, i32, i32
  }
  func.func @transform_6(%arg0: i32) -> (i32, i32, i32) {
    %c0_i32 = arith.constant 0 : i32
    %c0_i32_0 = arith.constant 0 : i32
    %c0_i32_1 = arith.constant 0 : i32
    %c0_i32_2 = arith.constant 0 : i32
    return %c0_i32, %c0_i32_0, %c0_i32_1 : i32, i32, i32
  }
  func.func @transform_7(%arg0: i32) -> (i32, i32, i32) {
    %c0_i32 = arith.constant 0 : i32
    %c0_i32_0 = arith.constant 0 : i32
    %c0_i32_1 = arith.constant 0 : i32
    %c0_i32_2 = arith.constant 0 : i32
    return %c0_i32, %c0_i32_0, %c0_i32_1 : i32, i32, i32
  }
  func.func @transform_8(%arg0: i32) -> (i32, i32, i32) {
    %c0_i32 = arith.constant 0 : i32
    %c0_i32_0 = arith.constant 0 : i32
    %c0_i32_1 = arith.constant 0 : i32
    %c0_i32_2 = arith.constant 0 : i32
    return %c0_i32, %c0_i32_0, %c0_i32_1 : i32, i32, i32
  }
  func.func @transform_9(%arg0: i32) -> (i32, i32, i32) {
    %c0_i32 = arith.constant 0 : i32
    %c0_i32_0 = arith.constant 0 : i32
    %c0_i32_1 = arith.constant 0 : i32
    %c0_i32_2 = arith.constant 0 : i32
    return %c0_i32, %c0_i32_0, %c0_i32_1 : i32, i32, i32
  }
  func.func @transform_10(%arg0: i32) -> (i32, i32, i32) {
    %c0_i32 = arith.constant 0 : i32
    %c0_i32_0 = arith.constant 0 : i32
    %c0_i32_1 = arith.constant 0 : i32
    %c0_i32_2 = arith.constant 0 : i32
    return %c0_i32, %c0_i32_0, %c0_i32_1 : i32, i32, i32
  }
  func.func @transform_11(%arg0: i32) -> (i32, i32, i32, i32) {
    %c0_i32 = arith.constant 0 : i32
    %c0_i32_0 = arith.constant 0 : i32
    %c0_i32_1 = arith.constant 0 : i32
    %c0_i32_2 = arith.constant 0 : i32
    %c0_i32_3 = arith.constant 0 : i32
    return %c0_i32, %c0_i32_0, %c0_i32_1, %c0_i32_2 : i32, i32, i32, i32
  }
  func.func @transform_12(%arg0: i32) -> (i32, i32, i32) {
    %c0_i32 = arith.constant 0 : i32
    %c0_i32_0 = arith.constant 0 : i32
    %c0_i32_1 = arith.constant 0 : i32
    %c0_i32_2 = arith.constant 0 : i32
    return %c0_i32, %c0_i32_0, %c0_i32_1 : i32, i32, i32
  }
  func.func @transform_13(%arg0: i32) -> (i32, i32, i32) {
    %c0_i32 = arith.constant 0 : i32
    %c0_i32_0 = arith.constant 0 : i32
    %c0_i32_1 = arith.constant 0 : i32
    %c0_i32_2 = arith.constant 0 : i32
    return %c0_i32, %c0_i32_0, %c0_i32_1 : i32, i32, i32
  }
  func.func @transform_14(%arg0: i32) -> (i32, i32, i32) {
    %c0_i32 = arith.constant 0 : i32
    %c0_i32_0 = arith.constant 0 : i32
    %c0_i32_1 = arith.constant 0 : i32
    %c0_i32_2 = arith.constant 0 : i32
    return %c0_i32, %c0_i32_0, %c0_i32_1 : i32, i32, i32
  }
  func.func @transform_15(%arg0: i32) -> (i32, i32, i32) {
    %c0_i32 = arith.constant 0 : i32
    %c0_i32_0 = arith.constant 0 : i32
    %c0_i32_1 = arith.constant 0 : i32
    %c0_i32_2 = arith.constant 0 : i32
    return %c0_i32, %c0_i32_0, %c0_i32_1 : i32, i32, i32
  }
  func.func @transform_16(%arg0: i32) -> (i32, i32, i32) {
    %c0_i32 = arith.constant 0 : i32
    %c0_i32_0 = arith.constant 0 : i32
    %c0_i32_1 = arith.constant 0 : i32
    %c0_i32_2 = arith.constant 0 : i32
    return %c0_i32, %c0_i32_0, %c0_i32_1 : i32, i32, i32
  }
  func.func @transform_17(%arg0: i32) -> (i32, i32, i32) {
    %c0_i32 = arith.constant 0 : i32
    %c0_i32_0 = arith.constant 0 : i32
    %c0_i32_1 = arith.constant 0 : i32
    return %arg0, %c0_i32, %c0_i32_0 : i32, i32, i32
  }
}

</mosaic_0001>

<bundles_post_ra>
// kernel: transformer_forward.1
= control target key start
LH: loop header
LB: loop body
LE: loop exit
PB: predicated region body
PF: predicated region fallthrough
CT: control target
= control target key end

     0   :  { %s4850_s24 = smov 0   ;;  %s5612_s0 = inlined_call_operand.vmem [shape: f32[2,17,32], index: 0, kind: input, shape index: {}]   ;;  %s5613_s1 = inlined_call_operand.vmem [shape: f32[9,17,1], index: 1, kind: input, shape index: {}]   ;;  %s5614_s2 = inlined_call_operand.vmem [shape: f32[2,1,32], index: 2, kind: input, shape index: {}]   ;;  %s5615_s3 = inlined_call_operand.vmem [shape: f32[2,1,32], index: 3, kind: input, shape index: {}]   ;;  %s5616_s4 = inlined_call_operand.vmem [shape: bf16[6,2,32,16], index: 4, kind: input, shape index: {}]   ;;  %s5617_s5 = inlined_call_operand.vmem [shape: bf16[2,2,16,32], index: 5, kind: input, shape index: {}]   ;;  %s5618_s6 = inlined_call_operand.vmem [shape: f32[2,1,32], index: 6, kind: input, shape index: {}]   ;;  %s5619_s7 = inlined_call_operand.vmem [shape: f32[2,1,32], index: 7, kind: input, shape index: {}]   ;;  %s5620_s8 = inlined_call_operand.vmem [shape: f32[2,1,32], index: 8, kind: input, shape index: {}]   ;;  %s5621_s9 = inlined_call_operand.vmem [shape: bf16[2,32,128], index: 9, kind: input, shape index: {}]   ;;  %s5622_s10 = inlined_call_operand.vmem [shape: f32[2,1,128], index: 10, kind: input, shape index: {}]   ;;  %s5623_s11 = inlined_call_operand.vmem [shape: f32[2,9,1,128], index: 11, kind: input, shape index: {}]   ;;  %s5624_s12 = inlined_call_operand.vmem [shape: f32[2,1,128], index: 12, kind: input, shape index: {}]   ;;  %s5625_s13 = inlined_call_operand.vmem [shape: bf16[2,128,128], index: 13, kind: input, shape index: {}]   ;;  %s5626_s14 = inlined_call_operand.vmem [shape: f32[2,1,128], index: 14, kind: input, shape index: {}]   ;;  %s5627_s15 = inlined_call_operand.vmem [shape: bf16[2,128,32], index: 15, kind: input, shape index: {}]   ;;  %s5628_s16 = inlined_call_operand.vmem [shape: f32[2,1,32], index: 16, kind: input, shape index: {}]   ;;  %s5629_s17 = inlined_call_operand.vmem [shape: f32[2,17,32], index: 17, kind: output, shape index: {}]  }
   0x1   :  { %5634 = sst [smem:[#allocation6_spill]] %s5612_s0 }
   0x2   :  { %5635 = sst [smem:[#allocation7_spill]] %s5613_s1 }
   0x3 LB: > { %s3882_s25 = sadd.s32 4294967295, %s4756_s24   ;;  %p3886_p0 = scmp.ge.s32.totalorder %s4756_s24, 1  ;;  %s4756_s24 = sphi %s4850_s24, %s27_s24  }
   0x4   : > { %p487_p1 = scmp.lt.s32.totalorder %s4756_s24, 3 }
   0x6   : > { %p488_p2 = pnand %p3886_p0, %p487_p1 }
   0x8   : > { %491 = sbr.rel (%p488_p2) target bundleno = 4900 (0x1324), region = 88 }
   0xd   : > { %p539_p3 = scmp.lt.s32.totalorder %s3882_s25, 1  ;;  %vm602_vm0 = vcmask 261120   ;;  %vm609_vm1 = vcmask 253952   ;;  %s5636_s29 = sld [smem:[#allocation6_spill]]  ;;  %v4614_v21 = vld [vmem:[%s5616_s4 + $0x8] sm:$0xff]   ;;  %v4615_v22 = vld [vmem:[%s5616_s4 + $0x18] sm:$0xff]  }
   0xe   : > { %4313 = vmatprep.subr.bf16.mxu0 %v4614_v21  ;;  %4321 = vmatprep.subr.bf16.mxu1 %v4615_v22  ;;  %v4616_v23 = vld [vmem:[%s5616_s4] sm:$0xff]   ;;  %v4617_v24 = vld [vmem:[%s5616_s4 + $0x10] sm:$0xff]   ;;  %v4618_v25 = vld [vmem:[%s5616_s4 + $0x28] sm:$0xff]   ;;  %v4758_v58 = vmov 0   ;;  %vm1064_vm2 = vcmask 130048   ;;  %vm1273_vm3 = vcmask 1040384  }
   0xf   : > { %s5645_s25 = smov (!%p539_p3, %s3882_s25), 1  ;;  %4314 = vmatpush3.bf16.msra.mxu0 %v4614_v21  ;;  %4322 = vmatpush3.bf16.msra.mxu1 %v4615_v22  ;;  %v4619_v26 = vld [vmem:[%s5616_s4 + $0x38] sm:$0xff]   ;;  %v3913_v38 = vld [vmem:[%s5614_s2] ss:$0 sm:$0xff]  ;;  %v4621_v53 = vld [vmem:[%s5616_s4 + $0x30] sm:$0xff]   ;;  %vm1191_vm4 = vcmask 138240  }
  0x10   : > { %s4601_s26 = smul.u32 24, %s5645_s25  ;;  %4315 = vmatprep.subr.bf16.mxu0 %v4616_v23  ;;  %4323 = vmatprep.subr.bf16.mxu1 %v4617_v24  ;;  %v3914_v45 = vld [vmem:[%s5615_s3] ss:$0 sm:$0xff]  ;;  %v4622_v54 = vld [vmem:[%s5616_s4 + $0x48] sm:$0xff]   ;;  %v4623_v55 = vld [vmem:[%s5616_s4 + $0x58] sm:$0xff]   ;;  %vm1198_vm5 = vcmask 131072  }
  0x11   : > { %v4620_v52 = vld [vmem:[%s5616_s4 + $0x20] sm:$0xff]   ;;  %v4625_v57 = vld [vmem:[%s5616_s4 + $0x50] sm:$0xff]   ;;  %4613 = vset.pattern.permute.xlu1 %v4758_v58  ;;  %4612 = vset.pattern.permute.xlu0 %v4758_v58  ;;  %s5637_s30 = sld [smem:[#allocation7_spill]] }
  0x12   : > { %v4624_v56 = vld [vmem:[%s5616_s4 + $0x40] sm:$0xff]   ;;  %s548_s18 = scalar_lea.vmem %s5629_s17, %s4601_s26 }
  0x13   : > { %s543_s0 = scalar_lea.vmem %s5636_s29, %s4601_s26  ;;  %4316 = vmatpush3.bf16.msra.mxu0 %v4616_v23  ;;  %4324 = vmatpush3.bf16.msra.mxu1 %v4617_v24  ;;  %v4944_v23 = vsel %vm1273_vm3, 65535, %v4758_v58 }
  0x14   : > { %v4866_v0 = vld [vmem:[%s543_s0] sm:$0xff]  ;;  %v4868_v1 = vld [vmem:[%s543_s0 + $0x10] sm:$0x1]  ;;  %v4870_v2 = vld [vmem:[%s543_s0 + $0x8] sm:$0xff]  ;;  %4329 = vmatprep.subr.bf16.mxu0 %v4618_v25  ;;  %4337 = vmatprep.subr.bf16.mxu1 %v4619_v26 }
  0x15   : > { %v603_v3 = vsel %vm602_vm0, %v4866_v0, 0.0  ;;  %v610_v4 = vsel %vm609_vm1, %v4868_v1, 0.0  ;;  %v606_v5 = vsel %vm602_vm0, %v4870_v2, 0.0 }
  0x16   : > { %604 = vadd.xlane.f32.xlu0 %v603_v3  ;;  %611 = vadd.xlane.f32.xlu1 %v610_v4 }
  0x1a   : > { %607 = vadd.xlane.f32.xlu0 %v606_v5 }
  0x9f   : > { %v605_v6 = vpop.xlane.xlu0 %604  ;;  %v612_v7 = vpop.xlane.xlu1 %611 }
  0xa0   : > { %v614_v8 = vmul.f32 0.03125, %v605_v6  ;;  %v616_v9 = vmul.f32 0.03125, %v612_v7 }
  0xa2   : > { %v617_v10 = vsub.f32 %v4866_v0, %v614_v8  ;;  %v619_v11 = vsub.f32 %v4868_v1, %v616_v9 }
  0xa3   : > { %v608_v12 = vpop.xlane.xlu0 %607 }
  0xa4   : > { %v615_v13 = vmul.f32 0.03125, %v608_v12  ;;  %v620_v14 = vmul.f32 %v617_v10, %v617_v10  ;;  %v622_v15 = vmul.f32 %v619_v11, %v619_v11 }
  0xa6   : > { %v618_v16 = vsub.f32 %v4870_v2, %v615_v13  ;;  %v623_v17 = vsel %vm602_vm0, %v620_v14, 0.0  ;;  %v629_v18 = vsel %vm609_vm1, %v622_v15, 0.0 }
  0xa7   : > { %624 = vadd.xlane.f32.xlu1 %v623_v17 }
  0xa8   : > { %v621_v19 = vmul.f32 %v618_v16, %v618_v16 }
  0xaa   : > { %v626_v20 = vsel %vm602_vm0, %v621_v19, 0.0 }
  0xab   : > { %630 = vadd.xlane.f32.xlu1 %v629_v18  ;;  %627 = vadd.xlane.f32.xlu0 %v626_v20 }
 0x130   : > { %v625_v27 = vpop.xlane.xlu1 %624 }
 0x131   : > { %v632_v28 = vmul.f32 0.03125, %v625_v27 }
 0x133   : > { %v635_v29 = vadd.f32 1e-05, %v632_v28 }
 0x134   : > { %v631_v30 = vpop.xlane.xlu1 %630  ;;  %v628_v31 = vpop.xlane.xlu0 %627 }
 0x135   : > { %4678 = vrsqrt.f32 %v635_v29  ;;  %v634_v32 = vmul.f32 0.03125, %v631_v30  ;;  %v633_v33 = vmul.f32 0.03125, %v628_v31 }
 0x137   : > { %v637_v34 = vadd.f32 1e-05, %v634_v32  ;;  %v636_v35 = vadd.f32 1e-05, %v633_v33 }
 0x139   : > { %4680 = vrsqrt.f32 %v637_v34 }
 0x13a   : > { %4682 = vrsqrt.f32 %v636_v35 }
 0x142   : > { %v4679_v36 = vpop.eup %4678 }
 0x143   : > { %v641_v37 = vmul.f32 %v4679_v36, %v617_v10 }
 0x145   : > { %v650_v42 = vmul.f32 %v3913_v38, %v641_v37 }
 0x146   : > { %v4681_v39 = vpop.eup %4680 }
 0x147   : > { %v4683_v40 = vpop.eup %4682  ;;  %v643_v41 = vmul.f32 %v4681_v39, %v619_v11  ;;  %v659_v48 = vadd.f32 %v3914_v45, %v650_v42 }
 0x148   : > { %v642_v43 = vmul.f32 %v4683_v40, %v618_v16 }
 0x149   : > { %v652_v44 = vmul.f32 %v3913_v38, %v643_v41 }
 0x14a   : > { %v651_v46 = vmul.f32 %v3913_v38, %v642_v43 }
 0x14b   : > { %v661_v47 = vadd.f32 %v3914_v45, %v652_v44 }
 0x14c   : > { %v660_v49 = vadd.f32 %v3914_v45, %v651_v46 }
 0x14d   : > { %v663_v50 = vpack.c.bf16 %v661_v47, %v661_v47 }
 0x14e   : > { %v662_v51 = vpack.c.bf16 %v660_v49, %v659_v48 }
 0x150   : > { %4317 = vmatprep.mubr.msk.bf16.mxu0 %vm602_vm0, %v662_v51  ;;  %4325 = vmatprep.mubr.msk.bf16.mxu1 %vm602_vm0, %v662_v51 }
 0x151   : > { %4318 = vmatmul.mubr.msk.bf16.vlgmr.msra.gmra.mxu0 %vm602_vm0, %v663_v50  ;;  %4326 = vmatmul.mubr.msk.bf16.vlgmr.msra.gmra.mxu1 %vm602_vm0, %v663_v50 }
 0x152   : > { %4330 = vmatpush3.bf16.msra.mxu0 %v4618_v25  ;;  %4333 = vmatprep.mubr.msk.bf16.mxu0 %vm602_vm0, %v662_v51 }
 0x153   : > { %4338 = vmatpush3.bf16.msra.mxu1 %v4619_v26  ;;  %4341 = vmatprep.mubr.msk.bf16.mxu1 %vm602_vm0, %v662_v51 }
 0x154   : > { %4331 = vmatprep.subr.bf16.mxu0 %v4620_v52  ;;  %4339 = vmatprep.subr.bf16.mxu1 %v4621_v53 }
 0x156   : > { %4332 = vmatpush3.bf16.msra.mxu0 %v4620_v52 }
 0x157   : > { %4340 = vmatpush3.bf16.msra.mxu1 %v4621_v53  ;;  %4345 = vmatprep.subr.bf16.mxu0 %v4622_v54 }
 0x158   : > { %4353 = vmatprep.subr.bf16.mxu1 %v4623_v55 }
 0x159   : > { %4334 = vmatmul.mubr.msk.bf16.vlgmr.msra.gmra.mxu0 %vm602_vm0, %v663_v50 }
 0x15a   : > { %4342 = vmatmul.mubr.msk.bf16.vlgmr.msra.gmra.mxu1 %vm602_vm0, %v663_v50  ;;  %4346 = vmatpush3.bf16.msra.mxu0 %v4622_v54 }
 0x15b   : > { %4349 = vmatprep.mubr.msk.bf16.mxu0 %vm602_vm0, %v662_v51  ;;  %4354 = vmatpush3.bf16.msra.mxu1 %v4623_v55 }
 0x15c   : > { %4357 = vmatprep.mubr.msk.bf16.mxu1 %vm602_vm0, %v662_v51  ;;  %4347 = vmatprep.subr.bf16.mxu0 %v4624_v56 }
 0x15d   : > { %4355 = vmatprep.subr.bf16.mxu1 %v4625_v57 }
 0x15e   : > { %4348 = vmatpush3.bf16.msra.mxu0 %v4624_v56 }
 0x15f   : > { %4356 = vmatpush3.bf16.msra.mxu1 %v4625_v57 }
 0x161   : > { %4350 = vmatmul.mubr.msk.bf16.vlgmr.msra.gmra.mxu0 %vm602_vm0, %v663_v50 }
 0x162   : > { %4358 = vmatmul.mubr.msk.bf16.vlgmr.msra.gmra.mxu1 %vm602_vm0, %v663_v50 }
 0x211   : > { %v4319_v59 = vpop.f32.mrf.mxu0  ;;  %v4327_v60 = vpop.f32.mrf.mxu1 }
 0x212   : > { %v1057_v36 = vpack.c.bf16 %v4319_v59, %v4319_v59  ;;  %v1059_v38 = vpack.c.bf16 %v4327_v60, %v4327_v60 }
 0x213   : > { %v724_v61 = vpop.f32.mrf.mxu0  ;;  %v784_v62 = vpop.f32.mrf.mxu1 }
 0x215   : > { %v4320_v63 = vpop.f32.mrf.mxu0  ;;  %v4328_v3 = vpop.f32.mrf.mxu1 }
 0x217   : > { %v727_v4 = vpop.f32.mrf.mxu0  ;;  %v787_v5 = vpop.f32.mrf.mxu1 }
 0x218   : > { %v1056_v6 = vpack.c.bf16 %v727_v4, %v724_v61  ;;  %v1058_v7 = vpack.c.bf16 %v787_v5, %v784_v62 }
 0x219   : > { %v4335_v8 = vpop.f32.mrf.mxu0 }
 0x21a   : > { %v1061_v9 = vpack.c.bf16 %v4335_v8, %v4335_v8  ;;  %v4343_v10 = vpop.f32.mrf.mxu1  ;;  %4365 = vmatprep.mubr.msk.bf16.mxu0 %vm1064_vm2, %v1056_v6  ;;  %4373 = vmatprep.mubr.msk.bf16.mxu1 %vm1064_vm2, %v1058_v7 }
 0x21b   : > { %v1063_v11 = vpack.c.bf16 %v4343_v10, %v4343_v10  ;;  %v853_v12 = vpop.f32.mrf.mxu0 }
 0x21c   : > { %v1075_v13 = vsel %vm1064_vm2, %v1061_v9, 0  ;;  %v913_v14 = vpop.f32.mrf.mxu1  ;;  %4593 = vmatprep.subr.msk.bf16.mxu0 %vm1064_vm2, %v1061_v9 }
 0x21d   : > { %v1135_v15 = vsel %vm1064_vm2, %v1063_v11, 0  ;;  %4595 = vmatprep.subr.msk.bf16.mxu1 %vm1064_vm2, %v1063_v11  ;;  %v4336_v16 = vpop.f32.mrf.mxu0  ;;  %4362 = vmatpush3.bf16.xpose.msra.mxu0 %v1075_v13 }
 0x21e   : > { %v4344_v17 = vpop.f32.mrf.mxu1  ;;  %4370 = vmatpush3.bf16.xpose.msra.mxu1 %v1135_v15 }
 0x21f   : > { %v856_v18 = vpop.f32.mrf.mxu0 }
 0x220   : > { %v1060_v19 = vpack.c.bf16 %v856_v18, %v853_v12  ;;  %v916_v20 = vpop.f32.mrf.mxu1 }
 0x221   : > { %v1062_v21 = vpack.c.bf16 %v916_v20, %v913_v14  ;;  %v4351_v22 = vpop.f32.mrf.mxu0 }
 0x222   : > { %v1264_v24 = vpack.c.bf16 %v4351_v22, %v4351_v22  ;;  %v4359_v25 = vpop.f32.mrf.mxu1  ;;  %4594 = vmatprep.subr.msk.bf16.mxu0 %vm1064_vm2, %v1060_v19  ;;  %v1072_v28 = vsel %vm1064_vm2, %v1060_v19, 0 }
 0x223   : > { %v1266_v26 = vpack.c.bf16 %v4359_v25, %v4359_v25  ;;  %4596 = vmatprep.subr.msk.bf16.mxu1 %vm1064_vm2, %v1062_v21  ;;  %v982_v27 = vpop.f32.mrf.mxu0  ;;  %v1132_v31 = vsel %vm1064_vm2, %v1062_v21, 0 }
 0x224   : > { %v1277_v29 = vand.u32 %v4944_v23, %v1264_v24  ;;  %v1042_v30 = vpop.f32.mrf.mxu1 }
 0x225   : > { %v1334_v32 = vand.u32 %v4944_v23, %v1266_v26  ;;  %v4352_v33 = vpop.f32.mrf.mxu0  ;;  %4364 = vmatpush3.bf16.xpose.msra.mxu0 %v1072_v28 }
 0x226   : > { %v4360_v34 = vpop.f32.mrf.mxu1  ;;  %4372 = vmatpush3.bf16.xpose.msra.mxu1 %v1132_v31  ;;  %4377 = vmatprep.subr.bf16.mxu0 %v1277_v29 }
 0x227   : > { %4385 = vmatprep.subr.bf16.mxu1 %v1334_v32  ;;  %v985_v35 = vpop.f32.mrf.mxu0 }
 0x228   : > { %v1045_v37 = vpop.f32.mrf.mxu1  ;;  %v1263_v39 = vpack.c.bf16 %v985_v35, %v982_v27 }
 0x229   : > { %v1265_v40 = vpack.c.bf16 %v1045_v37, %v1042_v30 }
 0x22c   : > { %4366 = vmatmul.mubr.msk.bf16.vlgmr.msra.gmra.mxu0 %vm1064_vm2, %v1057_v36 }
 0x22d   : > { %4374 = vmatmul.mubr.msk.bf16.vlgmr.msra.gmra.mxu1 %vm1064_vm2, %v1059_v38  ;;  %4378 = vmatpush3.bf16.msra.mxu0 %v1277_v29 }
 0x22e   : > { %4386 = vmatpush3.bf16.msra.mxu1 %v1334_v32  ;;  %4379 = vmatprep.subr.bf16.mxu0 %v1263_v39 }
 0x22f   : > { %4387 = vmatprep.subr.bf16.mxu1 %v1265_v40 }
 0x231   : > { %4380 = vmatpush3.bf16.msra.mxu0 %v1263_v39 }
 0x232   : > { %4388 = vmatpush3.bf16.msra.mxu1 %v1265_v40 }
 0x2ec   : > { %v4367_v41 = vpop.f32.mrf.mxu0 }
 0x2ed   : > { %v4375_v42 = vpop.f32.mrf.mxu1  ;;  %v1187_v53 = vmul.f32 0.25, %v4367_v41 }
 0x2ee   : > { %v1111_v43 = vpop.f32.mrf.mxu0  ;;  %v1190_v57 = vmul.f32 0.25, %v4375_v42 }
 0x2ef   : > { %v1185_v44 = vmul.f32 0.25, %v1111_v43  ;;  %v1171_v45 = vpop.f32.mrf.mxu1  ;;  %v1199_v58 = vsel %vm1198_vm5, %v1187_v53, -inf }
 0x2f0   : > { %v4368_v46 = vpop.f32.mrf.mxu0  ;;  %v1188_v47 = vmul.f32 0.25, %v1171_v45  ;;  %v1208_v60 = vsel %vm1198_vm5, %v1190_v57, -inf }
 0x2f1   : > { %v4376_v48 = vpop.f32.mrf.mxu1  ;;  %v1192_v49 = vsel %vm1191_vm4, %v1185_v44, -inf }
 0x2f2   : > { %1193 = vmax.xlane.f32.xlu0 %v1192_v49  ;;  %v1114_v50 = vpop.f32.mrf.mxu0  ;;  %v1202_v55 = vsel %vm1191_vm4, %v1188_v47, -inf }
 0x2f3   : > { %v1174_v51 = vpop.f32.mrf.mxu1  ;;  %v1186_v52 = vmul.f32 0.25, %v1114_v50 }
 0x2f4   : > { %v1189_v54 = vmul.f32 0.25, %v1174_v51 }
 0x2f5   : > { %v1195_v56 = vsel %vm1191_vm4, %v1186_v52, -inf }
 0x2f6   : > { %1203 = vmax.xlane.f32.xlu0 %v1202_v55  ;;  %1196 = vmax.xlane.f32.xlu1 %v1195_v56  ;;  %v1205_v59 = vsel %vm1191_vm4, %v1189_v54, -inf }
 0x2fa   : > { %1200 = vmax.xlane.f32.xlu0 %v1199_v58  ;;  %1206 = vmax.xlane.f32.xlu1 %v1205_v59 }
 0x2fe   : > { %1209 = vmax.xlane.f32.xlu1 %v1208_v60 }
 0x37b   : > { %v1194_v61 = vpop.xlane.xlu0 %1193 }
 0x37c   : > { %v1211_v62 = vsub.f32 %v1185_v44, %v1194_v61 }
 0x37e   : > { %v1217_v63 = vmul.f32 1.442695, %v1211_v62 }
 0x37f   : > { %v1204_v3 = vpop.xlane.xlu0 %1203  ;;  %v1197_v4 = vpop.xlane.xlu1 %1196 }
 0x380   : > { %4684 = vpow2.f32 %v1217_v63  ;;  %v1214_v5 = vsub.f32 %v1188_v47, %v1204_v3  ;;  %v1212_v6 = vsub.f32 %v1186_v52, %v1197_v4 }
 0x382   : > { %v1223_v7 = vmul.f32 1.442695, %v1214_v5  ;;  %v1219_v8 = vmul.f32 1.442695, %v1212_v6 }
 0x383   : > { %v1201_v9 = vpop.xlane.xlu0 %1200  ;;  %v1207_v10 = vpop.xlane.xlu1 %1206 }
 0x384   : > { %4686 = vpow2.f32 %v1223_v7  ;;  %v1213_v11 = vsub.f32 %v1187_v53, %v1201_v9  ;;  %v1215_v12 = vsub.f32 %v1189_v54, %v1207_v10  ;;  %v4626_v53 = vld [vmem:[%s5617_s5] sm:$0xff]   ;;  %v4627_v54 = vld [vmem:[%s5617_s5 + $0x8] sm:$0xff]  }
 0x385   : > { %4688 = vpow2.f32 %v1219_v8  ;;  %4393 = vmatprep.subr.bf16.mxu0 %v4626_v53  ;;  %4399 = vmatprep.subr.bf16.mxu1 %v4627_v54 }
 0x386   : > { %v1221_v13 = vmul.f32 1.442695, %v1213_v11  ;;  %v1225_v14 = vmul.f32 1.442695, %v1215_v12 }
 0x387   : > { %v1210_v15 = vpop.xlane.xlu1 %1209 }
 0x388   : > { %4690 = vpow2.f32 %v1221_v13  ;;  %v1216_v16 = vsub.f32 %v1190_v57, %v1210_v15 }
 0x389   : > { %4692 = vpow2.f32 %v1225_v14 }
 0x38a   : > { %v1227_v17 = vmul.f32 1.442695, %v1216_v16 }
 0x38c   : > { %4694 = vpow2.f32 %v1227_v17 }
 0x38d   : > { %v4685_v18 = vpop.eup %4684 }
 0x38e   : > { %v1229_v19 = vsel %vm1191_vm4, %v4685_v18, 0.0 }
 0x38f   : > { %1230 = vadd.xlane.f32.xlu0 %v1229_v19 }
 0x391   : > { %v4687_v20 = vpop.eup %4686 }
 0x392   : > { %v4689_v21 = vpop.eup %4688  ;;  %v1238_v22 = vsel %vm1191_vm4, %v4687_v20, 0.0 }
 0x393   : > { %1239 = vadd.xlane.f32.xlu0 %v1238_v22  ;;  %v1232_v24 = vsel %vm1191_vm4, %v4689_v21, 0.0 }
 0x394   : > { %1233 = vadd.xlane.f32.xlu1 %v1232_v24  ;;  %v3969_v24 = vld [vmem:[%s5618_s6] ss:$0 sm:$0xff] }
 0x395   : > { %v4691_v25 = vpop.eup %4690 }
 0x396   : > { %v4693_v26 = vpop.eup %4692  ;;  %v1235_v27 = vsel %vm1198_vm5, %v4691_v25, 0.0 }
 0x397   : > { %1236 = vadd.xlane.f32.xlu0 %v1235_v27  ;;  %v1241_v28 = vsel %vm1191_vm4, %v4693_v26, 0.0 }
 0x398   : > { %1242 = vadd.xlane.f32.xlu1 %v1241_v28 }
 0x399   : > { %v4695_v29 = vpop.eup %4694 }
 0x39a   : > { %v1244_v30 = vsel %vm1198_vm5, %v4695_v29, 0.0 }
 0x39c   : > { %1245 = vadd.xlane.f32.xlu1 %v1244_v30 }
 0x418   : > { %v1231_v31 = vpop.xlane.xlu0 %1230 }
 0x419   : > { %4696 = vrcp.f32 %v1231_v31 }
 0x41c   : > { %v1240_v32 = vpop.xlane.xlu0 %1239 }
 0x41d   : > { %v1234_v33 = vpop.xlane.xlu1 %1233 }
 0x41e   : > { %4698 = vrcp.f32 %v1234_v33 }
 0x41f   : > { %4700 = vrcp.f32 %v1240_v32 }
 0x420   : > { %v1237_v34 = vpop.xlane.xlu0 %1236 }
 0x421   : > { %4702 = vrcp.f32 %v1237_v34  ;;  %v1243_v35 = vpop.xlane.xlu1 %1242 }
 0x422   : > { %4704 = vrcp.f32 %v1243_v35 }
 0x425   : > { %v1246_v36 = vpop.xlane.xlu1 %1245 }
 0x426   : > { %4706 = vrcp.f32 %v1246_v36  ;;  %v4697_v37 = vpop.eup %4696 }
 0x427   : > { %v1253_v39 = vmul.f32 %v4697_v37, %v4685_v18 }
 0x42b   : > { %v4699_v38 = vpop.eup %4698 }
 0x42c   : > { %v1254_v40 = vmul.f32 %v4699_v38, %v4689_v21  ;;  %v4701_v41 = vpop.eup %4700 }
 0x42d   : > { %v1256_v46 = vmul.f32 %v4701_v41, %v4687_v20 }
 0x42e   : > { %v4703_v42 = vpop.eup %4702  ;;  %v1259_v43 = vpack.c.bf16 %v1254_v40, %v1253_v39 }
 0x42f   : > { %v4705_v44 = vpop.eup %4704  ;;  %v1255_v45 = vmul.f32 %v4703_v42, %v4691_v25 }
 0x430   : > { %4381 = vmatprep.mubr.msk.bf16.mxu0 %vm1191_vm4, %v1259_v43  ;;  %v1257_v47 = vmul.f32 %v4705_v44, %v4693_v26 }
 0x431   : > { %v1260_v48 = vpack.c.bf16 %v1255_v45, %v1255_v45 }
 0x432   : > { %v1261_v49 = vpack.c.bf16 %v1257_v47, %v1256_v46  ;;  %v561_v46 = vld [vmem:[%s5637_s30 + $0x8] sm:$0xff]  ;;  %v562_v47 = vld [vmem:[%s5637_s30 + $0x10] sm:$0x1] }
 0x433   : > { %v4707_v50 = vpop.eup %4706  ;;  %4382 = vmatmul.mubr.msk.bf16.vlgmr.msra.gmra.mxu0 %vm1191_vm4, %v1260_v48  ;;  %v4628_v48 = vld [vmem:[%s5621_s9 + $0x8] sm:$0xff]  }
 0x434   : > { %4389 = vmatprep.mubr.msk.bf16.mxu1 %vm1191_vm4, %v1261_v49  ;;  %v1258_v51 = vmul.f32 %v4707_v50, %v4695_v29  ;;  %4394 = vmatpush3.bf16.msra.mxu0 %v4626_v53  ;;  %v3889_v49 = vld [vmem:[%s5637_s30 + $0x18] sm:$0xff]  ;;  %v4629_v50 = vld [vmem:[%s5621_s9] sm:$0xff]   ;;  %v3892_v53 = vld [vmem:[%s5637_s30 + $0x30] sm:$0xff] }
 0x435   : > { %4405 = vmatprep.subr.bf16.mxu0 %v4628_v48 }
 0x436   : > { %v1262_v52 = vpack.c.bf16 %v1258_v51, %v1258_v51  ;;  %v3890_v51 = vld [vmem:[%s5637_s30 + $0x20] sm:$0xff] }
 0x438   : > { %4390 = vmatmul.mubr.msk.bf16.vlgmr.msra.gmra.mxu1 %vm1191_vm4, %v1262_v52  ;;  %v3891_v52 = vld [vmem:[%s5637_s30 + $0x28] sm:$0x1] }
 0x439   : > { %4400 = vmatpush3.bf16.msra.mxu1 %v4627_v54  ;;  %v560_v54 = vld [vmem:[%s5637_s30] sm:$0xff] }
 0x4f3   : > { %v4383_v55 = vpop.f32.mrf.mxu0 }
 0x4f4   : > { %v1385_v62 = vpack.c.bf16 %v4383_v55, %v4383_v55  ;;  %v3895_v55 = vld [vmem:[%s5637_s30 + $0x48] sm:$0xff] }
 0x4f5   : > { %v1313_v56 = vpop.f32.mrf.mxu0 }
 0x4f7   : > { %v4384_v57 = vpop.f32.mrf.mxu0 }
 0x4f8   : > { %v4391_v58 = vpop.f32.mrf.mxu1  ;;  %v3897_v57 = vld [vmem:[%s5637_s30 + $0x58] sm:$0x1] }
 0x4f9   : > { %v1316_v59 = vpop.f32.mrf.mxu0  ;;  %v1387_v5 = vpack.c.bf16 %v4391_v58, %v4391_v58  ;;  %v3894_v58 = vld [vmem:[%s5637_s30 + $0x40] sm:$0x1] }
 0x4fa   : > { %v1384_v60 = vpack.c.bf16 %v1316_v59, %v1313_v56  ;;  %v1370_v61 = vpop.f32.mrf.mxu1  ;;  %v3893_v56 = vld [vmem:[%s5637_s30 + $0x38] sm:$0xff]  ;;  %v3899_v59 = vld [vmem:[%s5637_s30 + $0x68] sm:$0xff] }
 0x4fc   : > { %v4392_v63 = vpop.f32.mrf.mxu1  ;;  %4395 = vmatprep.mubr.msk.bf16.mxu0 %vm1064_vm2, %v1384_v60  ;;  %v3896_v60 = vld [vmem:[%s5637_s30 + $0x50] sm:$0xff] }
 0x4fd   : > { %4396 = vmatmul.mubr.msk.bf16.vlgmr.msra.gmra.mxu0 %vm1064_vm2, %v1385_v62  ;;  %v3898_v62 = vld [vmem:[%s5637_s30 + $0x60] sm:$0xff]  ;;  %v3903_v63 = vld [vmem:[%s5637_s30 + $0x88] sm:$0x1] }
 0x4fe   : > { %v1373_v3 = vpop.f32.mrf.mxu1  ;;  %4406 = vmatpush3.bf16.msra.mxu0 %v4628_v48  ;;  %v4637_v48 = vld [vmem:[%s5625_s13] sm:$0xff]  }
 0x4ff   : > { %v1386_v4 = vpack.c.bf16 %v1373_v3, %v1370_v61  ;;  %4407 = vmatprep.subr.bf16.mxu0 %v4629_v50  ;;  %v3901_v61 = vld [vmem:[%s5637_s30 + $0x78] sm:$0xff]  ;;  %v3900_v3 = vld [vmem:[%s5637_s30 + $0x70] sm:$0x1] }
 0x501   : > { %4401 = vmatprep.mubr.msk.bf16.mxu1 %vm1064_vm2, %v1386_v4  ;;  %v3905_v4 = vld [vmem:[%s5637_s30 + $0x98] sm:$0xff] }
 0x502   : > { %4402 = vmatmul.mubr.msk.bf16.vlgmr.msra.gmra.mxu1 %vm1064_vm2, %v1387_v5  ;;  %4408 = vmatpush3.bf16.msra.mxu0 %v4629_v50  ;;  %v3902_v5 = vld [vmem:[%s5637_s30 + $0x80] sm:$0xff]  ;;  %v4639_v50 = vld [vmem:[%s5627_s15 + $0x30] sm:$0xff]  }
 0x5bd   : > { %v4397_v6 = vpop.f32.mrf.mxu0 }
 0x5be   : > { %v1518_v10 = vsel %vm609_vm1, %v4397_v6, 0.0  ;;  %v3907_v6 = vld [vmem:[%s5637_s30 + $0xa8] sm:$0xff] }
 0x5bf   : > { %v1438_v7 = vpop.f32.mrf.mxu0 }
 0x5c0   : > { %v1512_v14 = vsel %vm602_vm0, %v1438_v7, 0.0  ;;  %v4759_v7 = vmov 0.0  }
 0x5c1   : > { %v4398_v8 = vpop.f32.mrf.mxu0  ;;  %595 = vst [vmem:[#allocation2] sm:$0xff] %v4759_v7  ;;  %598 = vst [vmem:[#allocation2 + $0x18] sm:$0xff] %v4759_v7 }
 0x5c2   : > { %v4403_v9 = vpop.f32.mrf.mxu1  ;;  %v3904_v8 = vld [vmem:[%s5637_s30 + $0x90] sm:$0xff] }
 0x5c3   : > { %v1519_v11 = vsel %vm609_vm1, %v4403_v9, 0.0  ;;  %v1441_v16 = vpop.f32.mrf.mxu0  ;;  %v3909_v9 = vld [vmem:[%s5637_s30 + $0xb8] sm:$0x1] }
 0x5c4   : > { %v1520_v12 = vadd.f32 %v1519_v11, %v1518_v10  ;;  %v1498_v13 = vpop.f32.mrf.mxu1  ;;  %v1515_v22 = vsel %vm602_vm0, %v1441_v16, 0.0  ;;  %v3906_v10 = vld [vmem:[%s5637_s30 + $0xa0] sm:$0x1]  ;;  %v3911_v11 = vld [vmem:[%s5637_s30 + $0xc8] sm:$0xff] }
 0x5c5   : > { %v1513_v15 = vsel %vm602_vm0, %v1498_v13, 0.0  ;;  %v3910_v13 = vld [vmem:[%s5637_s30 + $0xc0] sm:$0xff] }
 0x5c6   : > { %v1514_v17 = vadd.f32 %v1513_v15, %v1512_v14  ;;  %v4404_v18 = vpop.f32.mrf.mxu1  ;;  %v1523_v19 = vadd.f32 %v1520_v12, %v4868_v1  ;;  %v3908_v12 = vld [vmem:[%s5637_s30 + $0xb0] sm:$0xff] }
 0x5c7   : > { %v3912_v14 = vld [vmem:[%s5637_s30 + $0xd0] sm:$0x1] }
 0x5c8   : > { %v1521_v20 = vadd.f32 %v1514_v17, %v4866_v0  ;;  %v1501_v21 = vpop.f32.mrf.mxu1  ;;  %v4996_v1 = vadd.f32 %v3969_v24, %v1523_v19 }
 0x5c9   : > { %v1516_v25 = vsel %vm602_vm0, %v1501_v21, 0.0 }
 0x5ca   : > { %v4991_v26 = vadd.f32 %v3969_v24, %v1521_v20  ;;  %v1517_v27 = vadd.f32 %v1516_v25, %v1515_v22  ;;  %v1542_v30 = vsel %vm609_vm1, %v4996_v1, 0.0 }
 0x5cc   : > { %v1522_v28 = vadd.f32 %v1517_v27, %v4870_v2  ;;  %v1536_v29 = vsel %vm602_vm0, %v4991_v26, 0.0 }
 0x5cd   : > { %1537 = vadd.xlane.f32.xlu0 %v1536_v29 }
 0x5ce   : > { %v4998_v0 = vadd.f32 %v3969_v24, %v1522_v28  ;;  %v3970_v28 = vld [vmem:[%s5619_s7] ss:$0 sm:$0xff] }
 0x5d0   : > { %v1539_v31 = vsel %vm602_vm0, %v4998_v0, 0.0 }
 0x5d1   : > { %1543 = vadd.xlane.f32.xlu0 %v1542_v30  ;;  %1540 = vadd.xlane.f32.xlu1 %v1539_v31 }
 0x656   : > { %v1538_v32 = vpop.xlane.xlu0 %1537 }
 0x657   : > { %v1545_v33 = vmul.f32 0.03125, %v1538_v32 }
 0x659   : > { %v5005_v2 = vsub.f32 %v4991_v26, %v1545_v33 }
 0x65a   : > { %v1544_v34 = vpop.xlane.xlu0 %1543  ;;  %v1541_v35 = vpop.xlane.xlu1 %1540 }
 0x65b   : > { %v1547_v36 = vmul.f32 0.03125, %v1544_v34  ;;  %v1546_v37 = vmul.f32 0.03125, %v1541_v35  ;;  %v1551_v38 = vmul.f32 %v5005_v2, %v5005_v2  ;;  %v3971_v34 = vld [vmem:[%s5620_s8] ss:$0 sm:$0xff] }
 0x65d   : > { %v5010_v39 = vsub.f32 %v4996_v1, %v1547_v36  ;;  %v5013_v40 = vsub.f32 %v4998_v0, %v1546_v37  ;;  %v1554_v41 = vsel %vm602_vm0, %v1551_v38, 0.0 }
 0x65e   : > { %1555 = vadd.xlane.f32.xlu1 %v1554_v41 }
 0x65f   : > { %v1553_v42 = vmul.f32 %v5010_v39, %v5010_v39  ;;  %v1552_v43 = vmul.f32 %v5013_v40, %v5013_v40 }
 0x661   : > { %v1560_v44 = vsel %vm609_vm1, %v1553_v42, 0.0  ;;  %v1557_v45 = vsel %vm602_vm0, %v1552_v43, 0.0  ;;  %v4632_v43 = vld [vmem:[%s5625_s13 + $0x28] sm:$0xff]  }
 0x662   : > { %1561 = vadd.xlane.f32.xlu1 %v1560_v44  ;;  %1558 = vadd.xlane.f32.xlu0 %v1557_v45  ;;  %v4633_v44 = vld [vmem:[%s5625_s13 + $0x20] sm:$0xff]   ;;  %v4634_v45 = vld [vmem:[%s5625_s13 + $0x18] sm:$0xff]  }
 0x673   : > { %1708 = vperm.xlu1 %4613, %v561_v46   ;;  %v4635_v46 = vld [vmem:[%s5625_s13 + $0x10] sm:$0xff]  }
 0x677   : > { %1713 = vperm.xlu1 %4613, %v562_v47   ;;  %v4636_v47 = vld [vmem:[%s5625_s13 + $0x8] sm:$0xff]  }
 0x678   : > { %1703 = vperm.xlu0 %4612, %v560_v54  }
 0x67b   : > { %1737 = vperm.xlu1 %4613, %v3889_v49   ;;  %v4638_v49 = vld [vmem:[%s5627_s15 + $0x38] sm:$0xff]  }
 0x67c   : > { %1807 = vperm.xlu0 %4612, %v3895_v55   ;;  %4433 = vmatprep.subr.bf16.mxu0 %v4638_v49 }
 0x67f   : > { %1742 = vperm.xlu1 %4613, %v3890_v51   ;;  %v4640_v51 = vld [vmem:[%s5627_s15 + $0x28] sm:$0xff]  }
 0x680   : > { %1817 = vperm.xlu0 %4612, %v3897_v57  }
 0x683   : > { %1747 = vperm.xlu1 %4613, %v3891_v52  }
 0x684   : > { %1847 = vperm.xlu0 %4612, %v3899_v59  }
 0x687   : > { %1772 = vperm.xlu1 %4613, %v3892_v53  }
 0x688   : > { %1877 = vperm.xlu0 %4612, %v3901_v61  }
 0x68b   : > { %1777 = vperm.xlu1 %4613, %v3893_v56  }
 0x68c   : > { %1887 = vperm.xlu0 %4612, %v3903_v63  }
 0x68f   : > { %1782 = vperm.xlu1 %4613, %v3894_v58  }
 0x690   : > { %1917 = vperm.xlu0 %4612, %v3905_v4  }
 0x693   : > { %1812 = vperm.xlu1 %4613, %v3896_v60  }
 0x694   : > { %1947 = vperm.xlu0 %4612, %v3907_v6  }
 0x697   : > { %1842 = vperm.xlu1 %4613, %v3898_v62  }
 0x698   : > { %1957 = vperm.xlu0 %4612, %v3909_v9  }
 0x69b   : > { %1852 = vperm.xlu1 %4613, %v3900_v3   ;;  %v3972_v3 = vld [vmem:[%s5622_s10] ss:$0 sm:$0xff] }
 0x69c   : > { %1987 = vperm.xlu0 %4612, %v3911_v11  }
 0x69f   : > { %1882 = vperm.xlu1 %4613, %v3902_v5  }
 0x6a3   : > { %1912 = vperm.xlu1 %4613, %v3904_v8  }
 0x6a7   : > { %1922 = vperm.xlu1 %4613, %v3906_v10  }
 0x6ab   : > { %1952 = vperm.xlu1 %4613, %v3908_v12  }
 0x6af   : > { %1982 = vperm.xlu1 %4613, %v3910_v13  }
 0x6b3   : > { %1992 = vperm.xlu1 %4613, %v3912_v14  }
 0x6e7   : > { %v1556_v15 = vpop.xlane.xlu1 %1555 }
 0x6e8   : > { %v1563_v16 = vmul.f32 0.03125, %v1556_v15 }
 0x6ea   : > { %v1566_v17 = vadd.f32 1e-05, %v1563_v16 }
 0x6eb   : > { %v1559_v18 = vpop.xlane.xlu0 %1558  ;;  %v1562_v19 = vpop.xlane.xlu1 %1561 }
 0x6ec   : > { %4708 = vrsqrt.f32 %v1566_v17  ;;  %v1564_v20 = vmul.f32 0.03125, %v1559_v18  ;;  %v1565_v21 = vmul.f32 0.03125, %v1562_v19 }
 0x6ee   : > { %v1567_v22 = vadd.f32 1e-05, %v1564_v20  ;;  %v1568_v24 = vadd.f32 1e-05, %v1565_v21 }
 0x6ef   : > { %v5153_v52 = vpop.permute.xlu1 %1708 }
 0x6f0   : > { %4710 = vrsqrt.f32 %v1567_v22 }
 0x6f1   : > { %4712 = vrsqrt.f32 %v1568_v24 }
 0x6f3   : > { %v5155_v53 = vpop.permute.xlu1 %1713  ;;  %v5167_v59 = vpop.permute.xlu0 %1703 }
 0x6f7   : > { %v5157_v54 = vpop.permute.xlu1 %1737  ;;  %v5171_v61 = vpop.permute.xlu0 %1807 }
 0x6f9   : > { %v4709_v25 = vpop.eup %4708 }
 0x6fa   : > { %v1572_v27 = vmul.f32 %v4709_v25, %v5005_v2 }
 0x6fb   : > { %v5159_v55 = vpop.permute.xlu1 %1742  ;;  %v5175_v63 = vpop.permute.xlu0 %1817 }
 0x6fc   : > { %v1581_v32 = vmul.f32 %v3970_v28, %v1572_v27 }
 0x6fd   : > { %v4711_v29 = vpop.eup %4710 }
 0x6fe   : > { %v4713_v30 = vpop.eup %4712  ;;  %v1573_v31 = vmul.f32 %v4711_v29, %v5013_v40  ;;  %v1590_v37 = vadd.f32 %v3971_v34, %v1581_v32  ;;  %v4630_v40 = vld [vmem:[%s5625_s13 + $0x38] sm:$0xff]  }
 0x6ff   : > { %v1574_v33 = vmul.f32 %v4713_v30, %v5010_v39  ;;  %v4631_v39 = vld [vmem:[%s5625_s13 + $0x30] sm:$0xff]   ;;  %4413 = vmatprep.subr.bf16.mxu1 %v4630_v40  ;;  %v5161_v56 = vpop.permute.xlu1 %1747  ;;  %v5182_v8 = vpop.permute.xlu0 %1847 }
 0x700   : > { %v1582_v35 = vmul.f32 %v3970_v28, %v1573_v31  ;;  %4414 = vmatpush3.bf16.msra.mxu1 %v4630_v40 }
 0x701   : > { %v1583_v36 = vmul.f32 %v3970_v28, %v1574_v33  ;;  %4415 = vmatprep.subr.bf16.mxu1 %v4631_v39 }
 0x702   : > { %v1591_v38 = vadd.f32 %v3971_v34, %v1582_v35 }
 0x703   : > { %v1592_v2 = vadd.f32 %v3971_v34, %v1583_v36  ;;  %v5163_v57 = vpop.permute.xlu1 %1772  ;;  %v5186_v19 = vpop.permute.xlu0 %1877  ;;  %v3978_v36 = vld [vmem:[%s5623_s11] ss:$0 sm:$0xff] }
 0x704   : > { %v1593_v41 = vpack.c.bf16 %v1591_v38, %v1590_v37  ;;  %4416 = vmatpush3.bf16.msra.mxu1 %v4631_v39  ;;  %5638 = vst [vmem:[#allocation3_spill] sm:$0xff] %v5186_v19  ;;  %v5204_v39 = vld [vmem:[%s5624_s12] ss:$0 sm:$0xff] }
 0x705   : > { %v1594_v42 = vpack.c.bf16 %v1592_v2, %v1592_v2  ;;  %4417 = vmatprep.subr.bf16.mxu1 %v4632_v43 }
 0x706   : > { %4409 = vmatprep.mubr.msk.bf16.mxu0 %vm602_vm0, %v1593_v41 }
 0x707   : > { %4410 = vmatmul.mubr.msk.bf16.vlgmr.msra.gmra.mxu0 %vm602_vm0, %v1594_v42  ;;  %v5165_v58 = vpop.permute.xlu1 %1777  ;;  %v5190_v31 = vpop.permute.xlu0 %1887 }
 0x708   : > { %4418 = vmatpush3.bf16.msra.mxu1 %v4632_v43  ;;  %4434 = vmatpush3.bf16.msra.mxu0 %v4638_v49  ;;  %v3980_v43 = vld [vmem:[%s5623_s11 + $0x1] ss:$0 sm:$0xff] }
 0x709   : > { %4419 = vmatprep.subr.bf16.mxu1 %v4633_v44  ;;  %4435 = vmatprep.subr.bf16.mxu0 %v4639_v50 }
 0x70b   : > { %v5169_v60 = vpop.permute.xlu1 %1782  ;;  %v5194_v35 = vpop.permute.xlu0 %1917 }
 0x70c   : > { %4420 = vmatpush3.bf16.msra.mxu1 %v4633_v44  ;;  %4436 = vmatpush3.bf16.msra.mxu0 %v4639_v50 }
 0x70d   : > { %4421 = vmatprep.subr.bf16.mxu1 %v4634_v45  ;;  %4437 = vmatprep.subr.bf16.mxu0 %v4640_v51 }
 0x70f   : > { %v5173_v62 = vpop.permute.xlu1 %1812 }
 0x710   : > { %4422 = vmatpush3.bf16.msra.mxu1 %v4634_v45  ;;  %4438 = vmatpush3.bf16.msra.mxu0 %v4640_v51 }
 0x711   : > { %4423 = vmatprep.subr.bf16.mxu1 %v4635_v46 }
 0x713   : > { %v5180_v6 = vpop.permute.xlu1 %1842 }
 0x714   : > { %4424 = vmatpush3.bf16.msra.mxu1 %v4635_v46  ;;  %v5213_v46 = vld [vmem:[%s5623_s11 + $0x2] ss:$0 sm:$0xff] }
 0x715   : > { %4425 = vmatprep.subr.bf16.mxu1 %v4636_v47 }
 0x717   : > { %v5184_v18 = vpop.permute.xlu1 %1852 }
 0x718   : > { %4426 = vmatpush3.bf16.msra.mxu1 %v4636_v47 }
 0x719   : > { %4427 = vmatprep.subr.bf16.mxu1 %v4637_v48 }
 0x71b   : > { %v5188_v30 = vpop.permute.xlu1 %1882 }
 0x71c   : > { %4428 = vmatpush3.bf16.msra.mxu1 %v4637_v48  ;;  %5639 = vst [vmem:[#allocation4_spill] sm:$0xff] %v5188_v30 }
 0x71f   : > { %v5192_v34 = vpop.permute.xlu1 %1912 }
 0x720   : > { %5640 = vst [vmem:[#allocation5_spill] sm:$0xff] %v5192_v34 }
 0x723   : > { %v5215_v47 = vpop.permute.xlu1 %1922 }
 0x7c7   : > { %v4411_v4 = vpop.f32.mrf.mxu0 }
 0x7c8   : > { %v1667_v5 = vadd.f32 %v4411_v4, %v3972_v3 }
 0x7c9   : > { %v1658_v7 = vpop.f32.mrf.mxu0 }
 0x7ca   : > { %v1674_v9 = vadd.f32 3.0, %v1667_v5  ;;  %v1659_v10 = vadd.f32 %v3972_v3, %v1658_v7 }
 0x7cb   : > { %v4412_v11 = vpop.f32.mrf.mxu0 }
 0x7cc   : > { %v1677_v12 = vmax.f32 %v1674_v9, 0.0  ;;  %v1672_v13 = vadd.f32 3.0, %v1659_v10 }
 0x7cd   : > { %v1661_v14 = vpop.f32.mrf.mxu0 }
 0x7ce   : > { %v1680_v15 = vmin.f32 %v1677_v12, 6.0  ;;  %v1675_v16 = vmax.f32 %v1672_v13, 0.0  ;;  %v1662_v17 = vadd.f32 %v3972_v3, %v1661_v14  ;;  %v5220_v3 = vpop.permute.xlu0 %1947  ;;  %v5228_v12 = vld [vmem:[%s5623_s11 + $0x3] ss:$0 sm:$0xff] }
 0x7d0   : > { %v1683_v20 = vmul.f32 %v1680_v15, %v1667_v5  ;;  %v1678_v21 = vmin.f32 %v1675_v16, 6.0  ;;  %v1673_v22 = vadd.f32 3.0, %v1662_v17 }
 0x7d2   : > { %v1686_v24 = vmul.f32 0.16666667, %v1683_v20  ;;  %v1681_v25 = vmul.f32 %v1678_v21, %v1659_v10  ;;  %v1676_v27 = vmax.f32 %v1673_v22, 0.0  ;;  %v5238_v21 = vld [vmem:[%s5623_s11 + $0x4] ss:$0 sm:$0xff] }
 0x7d4   : > { %1689 = vst [vmem:[#allocation2 + $0x18] sm:$0x1] %v1686_v24  ;;  %v1684_v28 = vmul.f32 0.16666667, %v1681_v25  ;;  %v1679_v29 = vmin.f32 %v1676_v27, 6.0 }
 0x7d6   : > { %1687 = vst [vmem:[#allocation2 + $0x8] sm:$0xff] %v1684_v28  ;;  %v1682_v32 = vmul.f32 %v1679_v29, %v1662_v17  ;;  %v1855_v13 = vmul.f32 %v5180_v6, %v1684_v28 }
 0x7d8   : > { %v1685_v33 = vmul.f32 0.16666667, %v1682_v32 }
 0x7da   : > { %1688 = vst [vmem:[#allocation2 + $0x10] sm:$0xff] %v1685_v33  ;;  %v1856_v14 = vmul.f32 %v5182_v8, %v1685_v33 }
 0x7dd   : > { %v1698_v37 = vld [vmem:[#allocation2 + $0x3] sm:$0xff] }
 0x7de   : > { %v1732_v38 = vld [vmem:[#allocation2 + $0x4] sm:$0xff]  ;;  %v1716_v41 = vmul.f32 %v5167_v59, %v1698_v37 }
 0x7df   : > { %v1767_v2 = vld [vmem:[#allocation2 + $0x5] sm:$0xff]  ;;  %v1750_v42 = vmul.f32 %v5157_v54, %v1732_v38  ;;  %v5244_v38 = vpop.permute.xlu1 %1952 }
 0x7e0   : > { %v1802_v40 = vld [vmem:[#allocation2 + $0x7] sm:$0xff]  ;;  %v1726_v44 = vmul.f32 %v3978_v36, %v1716_v41  ;;  %v1785_v45 = vmul.f32 %v5163_v57, %v1767_v2  ;;  %v1866_v2 = vmul.f32 %v5238_v21, %v1855_v13  ;;  %v1867_v41 = vmul.f32 %v5238_v21, %v1856_v14 }
 0x7e1   : > { %v1699_v48 = vld [vmem:[#allocation2 + $0xb] sm:$0xff]  ;;  %v1820_v51 = vmul.f32 %v5171_v61, %v1802_v40  ;;  %v1761_v9 = vmul.f32 %v3980_v43, %v1750_v42  ;;  %v1700_v25 = vld [vmem:[#allocation2 + $0x13] sm:$0x1]  ;;  %v1734_v37 = vld [vmem:[#allocation2 + $0x14] sm:$0x1] }
 0x7e2   : > { %v1733_v49 = vld [vmem:[#allocation2 + $0xc] sm:$0xff]  ;;  %v1717_v4 = vmul.f32 %v5153_v52, %v1699_v48  ;;  %v1729_v5 = vadd.f32 %v5204_v39, %v1726_v44  ;;  %v1796_v20 = vmul.f32 %v5213_v46, %v1785_v45  ;;  %v1925_v42 = vmul.f32 %v5192_v34, %v1699_v48  ;;  %v1769_v40 = vld [vmem:[#allocation2 + $0x15] sm:$0x1]  ;;  %v3988_v44 = vld [vmem:[%s5623_s11 + $0x5] ss:$0 sm:$0xff]  ;;  %v5252_v45 = vpop.permute.xlu0 %1957 }
 0x7e3   : > { %v5217_v50 = vld [vmem:[#allocation2 + $0xd] sm:$0xff]  ;;  %v1751_v7 = vmul.f32 %v5159_v55, %v1733_v49  ;;  %v1831_v32 = vmul.f32 %v5228_v12, %v1820_v51  ;;  %v1752_v48 = vmul.f32 %v5161_v56, %v1734_v37  ;;  %v1804_v14 = vld [vmem:[#allocation2 + $0x17] sm:$0x1] }
 0x7e4   : > { %v1803_v10 = vld [vmem:[#allocation2 + $0xf] sm:$0xff]  ;;  %v1727_v15 = vmul.f32 %v3978_v36, %v1717_v4  ;;  %v1764_v16 = vadd.f32 %v1761_v9, %v1729_v5  ;;  %v1786_v17 = vmul.f32 %v5165_v58, %v5217_v50  ;;  %v1718_v9 = vmul.f32 %v5155_v53, %v1700_v25 }
 0x7e5   : > { %v1872_v11 = vld [vmem:[#allocation2 + $0x9] sm:$0xff]  ;;  %v1821_v22 = vmul.f32 %v5173_v62, %v1803_v10  ;;  %v1762_v28 = vmul.f32 %v3980_v43, %v1751_v7  ;;  %v1873_v33 = vld [vmem:[#allocation2 + $0x11] sm:$0xff] }
 0x7e6   : > { %v1890_v24 = vmul.f32 %v5186_v19, %v1872_v11  ;;  %v1730_v27 = vadd.f32 %v5204_v39, %v1727_v15  ;;  %v1799_v29 = vadd.f32 %v1796_v20, %v1764_v16  ;;  %v1797_v51 = vmul.f32 %v5213_v46, %v1786_v17  ;;  %v1908_v7 = vld [vmem:[#allocation2 + $0x13] sm:$0xff]  ;;  %v3990_v15 = vld [vmem:[%s5623_s11 + $0x6] ss:$0 sm:$0xff] }
 0x7e7   : > { %v1832_v10 = vmul.f32 %v5228_v12, %v1821_v22  ;;  %v1891_v11 = vmul.f32 %v5188_v30, %v1873_v33  ;;  %v1728_v17 = vmul.f32 %v3978_v36, %v1718_v9  ;;  %v1926_v25 = vmul.f32 %v5194_v35, %v1908_v7  ;;  %v1874_v33 = vld [vmem:[#allocation2 + $0x19] sm:$0x1] }
 0x7e8   : > { %v1765_v4 = vadd.f32 %v1762_v28, %v1730_v27  ;;  %v1834_v5 = vadd.f32 %v1831_v32, %v1799_v29  ;;  %v1901_v13 = vmul.f32 %v3988_v44, %v1890_v24  ;;  %v1943_v27 = vld [vmem:[#allocation2 + $0x14] sm:$0xff]  ;;  %v1787_v28 = vmul.f32 %v5169_v60, %v1769_v40 }
 0x7e9   : > { %v1839_v29 = vld [vmem:[#allocation2 + $0x18] sm:$0x1]  ;;  %v1936_v22 = vmul.f32 %v3990_v15, %v1925_v42  ;;  %v1960_v32 = vmul.f32 %v5220_v3, %v1733_v49  ;;  %v1763_v24 = vmul.f32 %v3980_v43, %v1752_v48  ;;  %v1731_v19 = vadd.f32 %v5204_v39, %v1728_v17  ;;  %v5271_v42 = vpop.permute.xlu0 %1987  ;;  %v3992_v39 = vld [vmem:[%s5623_s11 + $0x7] ss:$0 sm:$0xff] }
 0x7ea   : > { %v1800_v16 = vadd.f32 %v1797_v51, %v1765_v4  ;;  %v1869_v20 = vadd.f32 %v1866_v2, %v1834_v5  ;;  %v1978_v34 = vld [vmem:[#allocation2 + $0x15] sm:$0xff]  ;;  %v1822_v4 = vmul.f32 %v5175_v63, %v1804_v14  ;;  %v5267_v2 = vpop.permute.xlu1 %1982  ;;  %v1902_v36 = vmul.f32 %v3988_v44, %v1891_v11 }
 0x7eb   : > { %v1961_v40 = vmul.f32 %v5244_v38, %v1943_v27  ;;  %v1857_v51 = vmul.f32 %v5184_v18, %v1839_v29  ;;  %v1909_v5 = vld [vmem:[#allocation2 + $0x1b] sm:$0x1]  ;;  %v1766_v7 = vadd.f32 %v1763_v24, %v1731_v19  ;;  %v1798_v9 = vmul.f32 %v5213_v46, %v1787_v28  ;;  %v1944_v14 = vld [vmem:[#allocation2 + $0x1c] sm:$0x1] }
 0x7ec   : > { %v1835_v37 = vadd.f32 %v1832_v10, %v1800_v16  ;;  %v1904_v30 = vadd.f32 %v1901_v13, %v1869_v20  ;;  %v1892_v10 = vmul.f32 %v5190_v31, %v1874_v33  ;;  %v1937_v13 = vmul.f32 %v3990_v15, %v1926_v25  ;;  %v1979_v25 = vld [vmem:[#allocation2 + $0x1d] sm:$0x1] }
 0x7ed   : > { %v1995_v11 = vmul.f32 %v5267_v2, %v5217_v50  ;;  %v1996_v48 = vmul.f32 %v5271_v42, %v1978_v34  ;;  %v1971_v20 = vmul.f32 %v3992_v39, %v1960_v32  ;;  %v1833_v19 = vmul.f32 %v5228_v12, %v1822_v4  ;;  %v3994_v50 = vld [vmem:[%s5623_s11 + $0x8] ss:$0 sm:$0xff] }
 0x7ee   : > { %v1870_v49 = vadd.f32 %v1867_v41, %v1835_v37  ;;  %v1939_v43 = vadd.f32 %v1936_v22, %v1904_v30  ;;  %v1801_v41 = vadd.f32 %v1798_v9, %v1766_v7  ;;  %v1927_v30 = vmul.f32 %v5215_v47, %v1909_v5  ;;  %v5287_v34 = vpop.permute.xlu1 %1992 }
 0x7ef   : > { %v1868_v46 = vmul.f32 %v5238_v21, %v1857_v51  ;;  %v1972_v17 = vmul.f32 %v3992_v39, %v1961_v40  ;;  %v1903_v22 = vmul.f32 %v3988_v44, %v1892_v10  ;;  %v1962_v32 = vmul.f32 %v5252_v45, %v1944_v14  ;;  %v4641_v10 = vld [vmem:[%s5627_s15 + $0x20] sm:$0xff]  }
 0x7f0   : > { %v1905_v16 = vadd.f32 %v1902_v36, %v1870_v49  ;;  %v1974_v28 = vadd.f32 %v1971_v20, %v1939_v43  ;;  %v1836_v29 = vadd.f32 %v1833_v19, %v1801_v41  ;;  %v2006_v12 = vmul.f32 %v3994_v50, %v1995_v11  ;;  %4439 = vmatprep.subr.bf16.mxu0 %v4641_v10  ;;  %v4644_v11 = vld [vmem:[%s5627_s15 + $0x8] sm:$0xff]   ;;  %v3995_v14 = vld [vmem:[%s5626_s14] ss:$0 sm:$0xff] }
 0x7f1   : > { %v2007_v33 = vmul.f32 %v3994_v50, %v1996_v48  ;;  %v1938_v4 = vmul.f32 %v3990_v15, %v1927_v30  ;;  %v1997_v21 = vmul.f32 %v5287_v34, %v1979_v25  ;;  %v1973_v5 = vmul.f32 %v3992_v39, %v1962_v32  ;;  %4440 = vmatpush3.bf16.msra.mxu0 %v4641_v10  ;;  %v4642_v15 = vld [vmem:[%s5627_s15 + $0x18] sm:$0xff]   ;;  %v4643_v39 = vld [vmem:[%s5627_s15 + $0x10] sm:$0xff]   ;;  %v4645_v48 = vld [vmem:[%s5627_s15] sm:$0xff]  }
 0x7f2   : > { %v1940_v27 = vadd.f32 %v1937_v13, %v1905_v16  ;;  %v1871_v37 = vadd.f32 %v1868_v46, %v1836_v29  ;;  %v2009_v36 = vadd.f32 %v2006_v12, %v1974_v28  ;;  %4441 = vmatprep.subr.bf16.mxu0 %v4642_v15 }
 0x7f3   : > { %v2008_v7 = vmul.f32 %v3994_v50, %v1997_v21 }
 0x7f4   : > { %v1975_v24 = vadd.f32 %v1972_v17, %v1940_v27  ;;  %v1906_v51 = vadd.f32 %v1903_v22, %v1871_v37 }
 0x7f5   : > { %4442 = vmatpush3.bf16.msra.mxu0 %v4642_v15 }
 0x7f6   : > { %v2010_v40 = vadd.f32 %v2007_v33, %v1975_v24  ;;  %v1941_v43 = vadd.f32 %v1938_v4, %v1906_v51  ;;  %4443 = vmatprep.subr.bf16.mxu0 %v4643_v39 }
 0x7f8   : > { %v2012_v49 = vpack.c.bf16 %v2010_v40, %v2009_v36  ;;  %v1976_v9 = vadd.f32 %v1973_v5, %v1941_v43 }
 0x7f9   : > { %4444 = vmatpush3.bf16.msra.mxu0 %v4643_v39 }
 0x7fa   : > { %4429 = vmatprep.mubr.bf16.mxu1 %v2012_v49  ;;  %v2011_v13 = vadd.f32 %v2008_v7, %v1976_v9  ;;  %4445 = vmatprep.subr.bf16.mxu0 %v4644_v11  ;;  %v553_v49 = vlaneseq  ;;  %v4004_v9 = vld [vmem:[%s5628_s16] ss:$0 sm:$0xff] }
 0x7fc   : > { %v2013_v44 = vpack.c.bf16 %v2011_v13, %v2011_v13  ;;  %v5309_v7 = vshrl.u32 %v553_v49, 7 }
 0x7fd   : > { %4446 = vmatpush3.bf16.msra.mxu0 %v4644_v11 }
 0x7fe   : > { %4430 = vmatmul.mubr.bf16.vlgmr.msra.gmra.mxu1 %v2013_v44  ;;  %4447 = vmatprep.subr.bf16.mxu0 %v4645_v48  ;;  %vm557_vm6 = vcmp.eq.s32.totalorder %v5309_v7, 0 }
 0x801   : > { %4448 = vmatpush3.bf16.msra.mxu0 %v4645_v48 }
 0x8be   : > { %v4431_v16 = vpop.f32.mrf.mxu1 }
 0x8bf   : > { %v2128_v20 = vadd.f32 %v4431_v16, %v3995_v14 }
 0x8c0   : > { %v2119_v41 = vpop.f32.mrf.mxu1 }
 0x8c1   : > { %v2135_v19 = vadd.f32 3.0, %v2128_v20  ;;  %v2120_v30 = vadd.f32 %v3995_v14, %v2119_v41 }
 0x8c2   : > { %v4432_v46 = vpop.f32.mrf.mxu1 }
 0x8c3   : > { %v2138_v27 = vmax.f32 %v2135_v19, 0.0  ;;  %v2133_v17 = vadd.f32 3.0, %v2120_v30 }
 0x8c4   : > { %v2122_v28 = vpop.f32.mrf.mxu1 }
 0x8c5   : > { %v2136_v29 = vmax.f32 %v2133_v17, 0.0  ;;  %v2123_v25 = vadd.f32 %v3995_v14, %v2122_v28  ;;  %v2141_v50 = vmin.f32 %v2138_v27, 6.0 }
 0x8c7   : > { %v2139_v22 = vmin.f32 %v2136_v29, 6.0  ;;  %v2134_v32 = vadd.f32 3.0, %v2123_v25  ;;  %v2144_v12 = vmul.f32 %v2141_v50, %v2128_v20 }
 0x8c9   : > { %v2137_v24 = vmax.f32 %v2134_v32, 0.0  ;;  %v2142_v33 = vmul.f32 %v2139_v22, %v2120_v30  ;;  %v2147_v21 = vmul.f32 0.16666667, %v2144_v12 }
 0x8cb   : > { %v2140_v37 = vmin.f32 %v2137_v24, 6.0  ;;  %v2145_v36 = vmul.f32 0.16666667, %v2142_v33  ;;  %v2149_v5 = vpack.c.bf16 %v2147_v21, %v2147_v21  ;;  %v4648_v21 = vld [vmem:[%s5616_s4 + $0x60] sm:$0xff]  }
 0x8cd   : > { %v2143_v4 = vmul.f32 %v2140_v37, %v2123_v25  ;;  %v4646_v37 = vld [vmem:[%s5616_s4 + $0x68] sm:$0xff]  }
 0x8ce   : > { %4453 = vmatprep.subr.bf16.mxu1 %v4646_v37 }
 0x8cf   : > { %v2146_v40 = vmul.f32 0.16666667, %v2143_v4  ;;  %v4647_v4 = vld [vmem:[%s5616_s4 + $0x78] sm:$0xff]   ;;  %4454 = vmatpush3.bf16.msra.mxu1 %v4646_v37  ;;  %v4656_v37 = vld [vmem:[%s5616_s4 + $0xa0] sm:$0xff]  }
 0x8d0   : > { %4461 = vmatprep.subr.bf16.mxu0 %v4647_v4  ;;  %4455 = vmatprep.subr.bf16.mxu1 %v4648_v21 }
 0x8d1   : > { %v2148_v51 = vpack.c.bf16 %v2146_v40, %v2145_v36  ;;  %v4649_v36 = vld [vmem:[%s5616_s4 + $0x70] sm:$0xff]   ;;  %v4650_v40 = vld [vmem:[%s5616_s4 + $0x88] sm:$0xff]  }
 0x8d3   : > { %4449 = vmatprep.mubr.bf16.mxu0 %v2148_v51  ;;  %4456 = vmatpush3.bf16.msra.mxu1 %v4648_v21  ;;  %v4651_v51 = vld [vmem:[%s5616_s4 + $0x98] sm:$0xff]  }
 0x8d4   : > { %4450 = vmatmul.mubr.bf16.vlgmr.msra.gmra.mxu0 %v2149_v5  ;;  %4469 = vmatprep.subr.bf16.mxu1 %v4650_v40 }
 0x8d5   : > { %4462 = vmatpush3.bf16.msra.mxu0 %v4647_v4  ;;  %v4657_v4 = vld [vmem:[%s5616_s4 + $0xb0] sm:$0xff]  }
 0x8d6   : > { %4463 = vmatprep.subr.bf16.mxu0 %v4649_v36 }
 0x8d9   : > { %4464 = vmatpush3.bf16.msra.mxu0 %v4649_v36 }
 0x8da   : > { %4477 = vmatprep.subr.bf16.mxu0 %v4651_v51 }
 0x994   : > { %v4451_v43 = vpop.f32.mrf.mxu0 }
 0x995   : > { %v2264_v10 = vadd.f32 %v4451_v43, %v4004_v9 }
 0x996   : > { %v2255_v13 = vpop.f32.mrf.mxu0 }
 0x997   : > { %v2256_v44 = vadd.f32 %v4004_v9, %v2255_v13  ;;  %v5322_v16 = vadd.f32 %v2264_v10, %v4996_v1 }
 0x998   : > { %v4452_v15 = vpop.f32.mrf.mxu0 }
 0x999   : > { %v2269_v39 = vadd.f32 %v2256_v44, %v4991_v26  ;;  %v2291_v30 = vsel %vm609_vm1, %v5322_v16, 0.0 }
 0x99a   : > { %v2258_v11 = vpop.f32.mrf.mxu0 }
 0x99b   : > { %v2259_v48 = vadd.f32 %v4004_v9, %v2258_v11  ;;  %v5319_v14 = vsel %vm557_vm6, %v4991_v26, %v2269_v39 }
 0x99c   : > { %v2285_v20 = vsel %vm602_vm0, %v5319_v14, 0.0 }
 0x99d   : > { %v5327_v41 = vadd.f32 %v2259_v48, %v4998_v0  ;;  %2286 = vadd.xlane.f32.xlu0 %v2285_v20  ;;  %v4015_v48 = vld [vmem:[%s5614_s2 + $0x1] ss:$0 sm:$0xff] }
 0x99f   : > { %v2288_v19 = vsel %vm602_vm0, %v5327_v41, 0.0 }
 0x9a0   : > { %2289 = vadd.xlane.f32.xlu1 %v2288_v19 }
 0x9a1   : > { %2292 = vadd.xlane.f32.xlu0 %v2291_v30 }
 0xa26   : > { %v2287_v26 = vpop.xlane.xlu0 %2286 }
 0xa27   : > { %v2294_v46 = vmul.f32 0.03125, %v2287_v26 }
 0xa29   : > { %v2297_v1 = vsub.f32 %v5319_v14, %v2294_v46  ;;  %v2290_v27 = vpop.xlane.xlu1 %2289 }
 0xa2a   : > { %v2295_v17 = vmul.f32 0.03125, %v2290_v27  ;;  %v2293_v28 = vpop.xlane.xlu0 %2292 }
 0xa2b   : > { %v2296_v29 = vmul.f32 0.03125, %v2293_v28  ;;  %v2300_v25 = vmul.f32 %v2297_v1, %v2297_v1 }
 0xa2c   : > { %v2298_v0 = vsub.f32 %v5327_v41, %v2295_v17  ;;  %v4016_v17 = vld [vmem:[%s5615_s3 + $0x1] ss:$0 sm:$0xff] }
 0xa2d   : > { %v2299_v50 = vsub.f32 %v5322_v16, %v2296_v29  ;;  %v2303_v22 = vsel %vm602_vm0, %v2300_v25, 0.0 }
 0xa2e   : > { %2304 = vadd.xlane.f32.xlu0 %v2303_v22  ;;  %v2301_v32 = vmul.f32 %v2298_v0, %v2298_v0 }
 0xa2f   : > { %v2302_v24 = vmul.f32 %v2299_v50, %v2299_v50 }
 0xa30   : > { %v2306_v12 = vsel %vm602_vm0, %v2301_v32, 0.0 }
 0xa31   : > { %2307 = vadd.xlane.f32.xlu1 %v2306_v12  ;;  %v2309_v33 = vsel %vm609_vm1, %v2302_v24, 0.0 }
 0xa32   : > { %2310 = vadd.xlane.f32.xlu0 %v2309_v33  ;;  %v4655_v33 = vld [vmem:[%s5616_s4 + $0xb8] sm:$0xff]  }
 0xab7   : > { %v2305_v5 = vpop.xlane.xlu0 %2304 }
 0xab8   : > { %v2312_v49 = vmul.f32 0.03125, %v2305_v5 }
 0xaba   : > { %v2315_v43 = vadd.f32 1e-05, %v2312_v49  ;;  %v2308_v9 = vpop.xlane.xlu1 %2307 }
 0xabb   : > { %v2313_v13 = vmul.f32 0.03125, %v2308_v9  ;;  %v2311_v44 = vpop.xlane.xlu0 %2310 }
 0xabc   : > { %4714 = vrsqrt.f32 %v2315_v43  ;;  %v2314_v10 = vmul.f32 0.03125, %v2311_v44 }
 0xabd   : > { %v2316_v15 = vadd.f32 1e-05, %v2313_v13 }
 0xabe   : > { %v2317_v39 = vadd.f32 1e-05, %v2314_v10 }
 0xabf   : > { %4716 = vrsqrt.f32 %v2316_v15 }
 0xac0   : > { %4718 = vrsqrt.f32 %v2317_v39 }
 0xac9   : > { %v4715_v11 = vpop.eup %4714 }
 0xaca   : > { %v2321_v20 = vmul.f32 %v4715_v11, %v2297_v1  ;;  %v4652_v1 = vld [vmem:[%s5616_s4 + $0x80] sm:$0xff]  }
 0xacc   : > { %v4717_v19 = vpop.eup %4716  ;;  %v2330_v26 = vmul.f32 %v4015_v48, %v2321_v20 }
 0xacd   : > { %v4719_v30 = vpop.eup %4718  ;;  %v2322_v46 = vmul.f32 %v4717_v19, %v2298_v0  ;;  %v4653_v0 = vld [vmem:[%s5616_s4 + $0x90] sm:$0xff]  }
 0xace   : > { %v2323_v27 = vmul.f32 %v4719_v30, %v2299_v50  ;;  %v2339_v25 = vadd.f32 %v4016_v17, %v2330_v26  ;;  %v4654_v50 = vld [vmem:[%s5616_s4 + $0xa8] sm:$0xff]  }
 0xacf   : > { %v2331_v28 = vmul.f32 %v4015_v48, %v2322_v46 }
 0xad0   : > { %v2332_v29 = vmul.f32 %v4015_v48, %v2323_v27 }
 0xad1   : > { %v2340_v22 = vadd.f32 %v4016_v17, %v2331_v28 }
 0xad2   : > { %v2341_v32 = vadd.f32 %v4016_v17, %v2332_v29 }
 0xad3   : > { %v2342_v24 = vpack.c.bf16 %v2340_v22, %v2339_v25 }
 0xad4   : > { %v2343_v12 = vpack.c.bf16 %v2341_v32, %v2341_v32 }
 0xad5   : > { %4457 = vmatprep.mubr.msk.bf16.mxu1 %vm602_vm0, %v2342_v24  ;;  %4465 = vmatprep.mubr.msk.bf16.mxu0 %vm602_vm0, %v2342_v24 }
 0xad6   : > { %4458 = vmatmul.mubr.msk.bf16.vlgmr.msra.gmra.mxu1 %vm602_vm0, %v2343_v12  ;;  %4466 = vmatmul.mubr.msk.bf16.vlgmr.msra.gmra.mxu0 %vm602_vm0, %v2343_v12 }
 0xad7   : > { %4470 = vmatpush3.bf16.msra.mxu1 %v4650_v40  ;;  %4473 = vmatprep.mubr.msk.bf16.mxu1 %vm602_vm0, %v2342_v24 }
 0xad8   : > { %4478 = vmatpush3.bf16.msra.mxu0 %v4651_v51  ;;  %4481 = vmatprep.mubr.msk.bf16.mxu0 %vm602_vm0, %v2342_v24 }
 0xad9   : > { %4471 = vmatprep.subr.bf16.mxu1 %v4652_v1  ;;  %4479 = vmatprep.subr.bf16.mxu0 %v4653_v0 }
 0xadb   : > { %4472 = vmatpush3.bf16.msra.mxu1 %v4652_v1 }
 0xadc   : > { %4480 = vmatpush3.bf16.msra.mxu0 %v4653_v0  ;;  %4485 = vmatprep.subr.bf16.mxu1 %v4654_v50 }
 0xadd   : > { %4493 = vmatprep.subr.bf16.mxu0 %v4655_v33 }
 0xade   : > { %4474 = vmatmul.mubr.msk.bf16.vlgmr.msra.gmra.mxu1 %vm602_vm0, %v2343_v12 }
 0xadf   : > { %4482 = vmatmul.mubr.msk.bf16.vlgmr.msra.gmra.mxu0 %vm602_vm0, %v2343_v12  ;;  %4486 = vmatpush3.bf16.msra.mxu1 %v4654_v50 }
 0xae0   : > { %4489 = vmatprep.mubr.msk.bf16.mxu1 %vm602_vm0, %v2342_v24  ;;  %4494 = vmatpush3.bf16.msra.mxu0 %v4655_v33 }
 0xae1   : > { %4497 = vmatprep.mubr.msk.bf16.mxu0 %vm602_vm0, %v2342_v24  ;;  %4487 = vmatprep.subr.bf16.mxu1 %v4656_v37 }
 0xae2   : > { %4495 = vmatprep.subr.bf16.mxu0 %v4657_v4 }
 0xae3   : > { %4488 = vmatpush3.bf16.msra.mxu1 %v4656_v37 }
 0xae4   : > { %4496 = vmatpush3.bf16.msra.mxu0 %v4657_v4 }
 0xae6   : > { %4490 = vmatmul.mubr.msk.bf16.vlgmr.msra.gmra.mxu1 %vm602_vm0, %v2343_v12 }
 0xae7   : > { %4498 = vmatmul.mubr.msk.bf16.vlgmr.msra.gmra.mxu0 %vm602_vm0, %v2343_v12 }
 0xb96   : > { %v4459_v21 = vpop.f32.mrf.mxu1  ;;  %v4467_v36 = vpop.f32.mrf.mxu0 }
 0xb98   : > { %v2405_v40 = vpop.f32.mrf.mxu1  ;;  %v2465_v51 = vpop.f32.mrf.mxu0 }
 0xb9a   : > { %v4460_v5 = vpop.f32.mrf.mxu1  ;;  %v4468_v49 = vpop.f32.mrf.mxu0 }
 0xb9b   : > { %v2738_v5 = vpack.c.bf16 %v4459_v21, %v4459_v21 }
 0xb9c   : > { %v2408_v43 = vpop.f32.mrf.mxu1  ;;  %v2468_v9 = vpop.f32.mrf.mxu0 }
 0xb9d   : > { %v2737_v13 = vpack.c.bf16 %v2408_v43, %v2405_v40  ;;  %v2739_v44 = vpack.c.bf16 %v2468_v9, %v2465_v51  ;;  %v2740_v43 = vpack.c.bf16 %v4467_v36, %v4467_v36 }
 0xb9e   : > { %v4475_v10 = vpop.f32.mrf.mxu1 }
 0xb9f   : > { %v2742_v15 = vpack.c.bf16 %v4475_v10, %v4475_v10  ;;  %v4483_v39 = vpop.f32.mrf.mxu0  ;;  %4505 = vmatprep.mubr.msk.bf16.mxu1 %vm1064_vm2, %v2737_v13  ;;  %4513 = vmatprep.mubr.msk.bf16.mxu0 %vm1064_vm2, %v2739_v44 }
 0xba0   : > { %v2744_v11 = vpack.c.bf16 %v4483_v39, %v4483_v39  ;;  %v2534_v48 = vpop.f32.mrf.mxu1 }
 0xba1   : > { %v2755_v20 = vsel %vm1064_vm2, %v2742_v15, 0  ;;  %v2594_v19 = vpop.f32.mrf.mxu0  ;;  %4597 = vmatprep.subr.msk.bf16.mxu1 %vm1064_vm2, %v2742_v15 }
 0xba2   : > { %v2815_v30 = vsel %vm1064_vm2, %v2744_v11, 0  ;;  %4599 = vmatprep.subr.msk.bf16.mxu0 %vm1064_vm2, %v2744_v11  ;;  %v4476_v26 = vpop.f32.mrf.mxu1  ;;  %4502 = vmatpush3.bf16.xpose.msra.mxu1 %v2755_v20 }
 0xba3   : > { %v4484_v46 = vpop.f32.mrf.mxu0  ;;  %4510 = vmatpush3.bf16.xpose.msra.mxu0 %v2815_v30 }
 0xba4   : > { %v2537_v27 = vpop.f32.mrf.mxu1 }
 0xba5   : > { %v2741_v17 = vpack.c.bf16 %v2537_v27, %v2534_v48  ;;  %v2597_v28 = vpop.f32.mrf.mxu0 }
 0xba6   : > { %v2743_v29 = vpack.c.bf16 %v2597_v28, %v2594_v19  ;;  %v4491_v25 = vpop.f32.mrf.mxu1 }
 0xba7   : > { %v2942_v22 = vpack.c.bf16 %v4491_v25, %v4491_v25  ;;  %v4499_v32 = vpop.f32.mrf.mxu0  ;;  %4598 = vmatprep.subr.msk.bf16.mxu1 %vm1064_vm2, %v2741_v17  ;;  %v2752_v1 = vsel %vm1064_vm2, %v2741_v17, 0 }
 0xba8   : > { %v2944_v24 = vpack.c.bf16 %v4499_v32, %v4499_v32  ;;  %4600 = vmatprep.subr.msk.bf16.mxu0 %vm1064_vm2, %v2743_v29  ;;  %v2663_v12 = vpop.f32.mrf.mxu1  ;;  %v2812_v33 = vsel %vm1064_vm2, %v2743_v29, 0 }
 0xba9   : > { %v2952_v0 = vand.u32 %v2942_v22, %v4944_v23  ;;  %v2723_v50 = vpop.f32.mrf.mxu0 }
 0xbaa   : > { %v3009_v37 = vand.u32 %v2944_v24, %v4944_v23  ;;  %v4492_v4 = vpop.f32.mrf.mxu1  ;;  %4504 = vmatpush3.bf16.xpose.msra.mxu1 %v2752_v1 }
 0xbab   : > { %v4500_v40 = vpop.f32.mrf.mxu0  ;;  %4512 = vmatpush3.bf16.xpose.msra.mxu0 %v2812_v33  ;;  %4517 = vmatprep.subr.bf16.mxu1 %v2952_v0 }
 0xbac   : > { %4525 = vmatprep.subr.bf16.mxu0 %v3009_v37  ;;  %v2666_v51 = vpop.f32.mrf.mxu1 }
 0xbad   : > { %v2726_v49 = vpop.f32.mrf.mxu0  ;;  %v2941_v9 = vpack.c.bf16 %v2666_v51, %v2663_v12 }
 0xbae   : > { %v2943_v13 = vpack.c.bf16 %v2726_v49, %v2723_v50 }
 0xbb1   : > { %4506 = vmatmul.mubr.msk.bf16.vlgmr.msra.gmra.mxu1 %vm1064_vm2, %v2738_v5 }
 0xbb2   : > { %4514 = vmatmul.mubr.msk.bf16.vlgmr.msra.gmra.mxu0 %vm1064_vm2, %v2740_v43  ;;  %4518 = vmatpush3.bf16.msra.mxu1 %v2952_v0 }
 0xbb3   : > { %4526 = vmatpush3.bf16.msra.mxu0 %v3009_v37  ;;  %4519 = vmatprep.subr.bf16.mxu1 %v2941_v9 }
 0xbb4   : > { %4527 = vmatprep.subr.bf16.mxu0 %v2943_v13 }
 0xbb6   : > { %4520 = vmatpush3.bf16.msra.mxu1 %v2941_v9 }
 0xbb7   : > { %4528 = vmatpush3.bf16.msra.mxu0 %v2943_v13 }
 0xc71   : > { %v4507_v23 = vpop.f32.mrf.mxu1 }
 0xc72   : > { %v4515_v44 = vpop.f32.mrf.mxu0  ;;  %v2867_v26 = vmul.f32 0.25, %v4507_v23 }
 0xc73   : > { %v2791_v10 = vpop.f32.mrf.mxu1  ;;  %v2870_v28 = vmul.f32 0.25, %v4515_v44 }
 0xc74   : > { %v2865_v15 = vmul.f32 0.25, %v2791_v10  ;;  %v2851_v39 = vpop.f32.mrf.mxu0  ;;  %v2877_v29 = vsel %vm1198_vm5, %v2867_v26, -inf }
 0xc75   : > { %v4508_v21 = vpop.f32.mrf.mxu1  ;;  %v2868_v11 = vmul.f32 0.25, %v2851_v39  ;;  %v2886_v22 = vsel %vm1198_vm5, %v2870_v28, -inf }
 0xc76   : > { %v4516_v36 = vpop.f32.mrf.mxu0  ;;  %v2871_v48 = vsel %vm1191_vm4, %v2865_v15, -inf }
 0xc77   : > { %2872 = vmax.xlane.f32.xlu1 %v2871_v48  ;;  %v2794_v20 = vpop.f32.mrf.mxu1  ;;  %v2880_v27 = vsel %vm1191_vm4, %v2868_v11, -inf }
 0xc78   : > { %v2854_v19 = vpop.f32.mrf.mxu0  ;;  %v2866_v30 = vmul.f32 0.25, %v2794_v20 }
 0xc79   : > { %v2869_v46 = vmul.f32 0.25, %v2854_v19 }
 0xc7a   : > { %v2874_v17 = vsel %vm1191_vm4, %v2866_v30, -inf }
 0xc7b   : > { %2881 = vmax.xlane.f32.xlu1 %v2880_v27  ;;  %2875 = vmax.xlane.f32.xlu0 %v2874_v17  ;;  %v2883_v25 = vsel %vm1191_vm4, %v2869_v46, -inf }
 0xc7f   : > { %2878 = vmax.xlane.f32.xlu1 %v2877_v29  ;;  %2884 = vmax.xlane.f32.xlu0 %v2883_v25 }
 0xc83   : > { %2887 = vmax.xlane.f32.xlu0 %v2886_v22 }
 0xd00   : > { %v2873_v32 = vpop.xlane.xlu1 %2872 }
 0xd01   : > { %v2889_v24 = vsub.f32 %v2865_v15, %v2873_v32 }
 0xd03   : > { %v2895_v12 = vmul.f32 1.442695, %v2889_v24 }
 0xd04   : > { %v2882_v1 = vpop.xlane.xlu1 %2881  ;;  %v2876_v0 = vpop.xlane.xlu0 %2875 }
 0xd05   : > { %4720 = vpow2.f32 %v2895_v12  ;;  %v2892_v50 = vsub.f32 %v2868_v11, %v2882_v1  ;;  %v2890_v33 = vsub.f32 %v2866_v30, %v2876_v0 }
 0xd07   : > { %v2901_v37 = vmul.f32 1.442695, %v2892_v50  ;;  %v2897_v4 = vmul.f32 1.442695, %v2890_v33 }
 0xd08   : > { %v2879_v40 = vpop.xlane.xlu1 %2878  ;;  %v2885_v51 = vpop.xlane.xlu0 %2884 }
 0xd09   : > { %4722 = vpow2.f32 %v2901_v37  ;;  %v2891_v5 = vsub.f32 %v2867_v26, %v2879_v40  ;;  %v2893_v49 = vsub.f32 %v2869_v46, %v2885_v51 }
 0xd0a   : > { %4724 = vpow2.f32 %v2897_v4 }
 0xd0b   : > { %v2899_v43 = vmul.f32 1.442695, %v2891_v5  ;;  %v2903_v9 = vmul.f32 1.442695, %v2893_v49 }
 0xd0c   : > { %v2888_v13 = vpop.xlane.xlu0 %2887 }
 0xd0d   : > { %4726 = vpow2.f32 %v2899_v43  ;;  %v2894_v23 = vsub.f32 %v2870_v28, %v2888_v13 }
 0xd0e   : > { %4728 = vpow2.f32 %v2903_v9 }
 0xd0f   : > { %v2905_v44 = vmul.f32 1.442695, %v2894_v23  ;;  %v4658_v23 = vld [vmem:[%s5617_s5 + $0x10] sm:$0xff]  }
 0xd10   : > { %4533 = vmatprep.subr.bf16.mxu1 %v4658_v23 }
 0xd11   : > { %4730 = vpow2.f32 %v2905_v44  ;;  %v4659_v44 = vld [vmem:[%s5617_s5 + $0x18] sm:$0xff]  }
 0xd12   : > { %v4721_v10 = vpop.eup %4720  ;;  %4539 = vmatprep.subr.bf16.mxu0 %v4659_v44 }
 0xd13   : > { %v2907_v15 = vsel %vm1191_vm4, %v4721_v10, 0.0 }
 0xd14   : > { %2908 = vadd.xlane.f32.xlu1 %v2907_v15 }
 0xd16   : > { %v4723_v39 = vpop.eup %4722 }
 0xd17   : > { %v4725_v21 = vpop.eup %4724  ;;  %v2916_v11 = vsel %vm1191_vm4, %v4723_v39, 0.0 }
 0xd18   : > { %2917 = vadd.xlane.f32.xlu1 %v2916_v11  ;;  %v2910_v36 = vsel %vm1191_vm4, %v4725_v21, 0.0 }
 0xd19   : > { %2911 = vadd.xlane.f32.xlu0 %v2910_v36 }
 0xd1a   : > { %v4727_v48 = vpop.eup %4726 }
 0xd1b   : > { %v4729_v20 = vpop.eup %4728  ;;  %v2913_v19 = vsel %vm1198_vm5, %v4727_v48, 0.0 }
 0xd1c   : > { %2914 = vadd.xlane.f32.xlu1 %v2913_v19  ;;  %v2919_v30 = vsel %vm1191_vm4, %v4729_v20, 0.0 }
 0xd1d   : > { %2920 = vadd.xlane.f32.xlu0 %v2919_v30 }
 0xd1e   : > { %v4731_v26 = vpop.eup %4730 }
 0xd1f   : > { %v2922_v46 = vsel %vm1198_vm5, %v4731_v26, 0.0 }
 0xd21   : > { %2923 = vadd.xlane.f32.xlu0 %v2922_v46 }
 0xd9d   : > { %v2909_v27 = vpop.xlane.xlu1 %2908 }
 0xd9e   : > { %4732 = vrcp.f32 %v2909_v27 }
 0xda1   : > { %v2918_v17 = vpop.xlane.xlu1 %2917 }
 0xda2   : > { %v2912_v28 = vpop.xlane.xlu0 %2911 }
 0xda3   : > { %4734 = vrcp.f32 %v2912_v28 }
 0xda4   : > { %4736 = vrcp.f32 %v2918_v17 }
 0xda5   : > { %v2915_v29 = vpop.xlane.xlu1 %2914 }
 0xda6   : > { %4738 = vrcp.f32 %v2915_v29  ;;  %v2921_v25 = vpop.xlane.xlu0 %2920 }
 0xda7   : > { %4740 = vrcp.f32 %v2921_v25 }
 0xdaa   : > { %v2924_v22 = vpop.xlane.xlu0 %2923 }
 0xdab   : > { %4742 = vrcp.f32 %v2924_v22  ;;  %v4733_v32 = vpop.eup %4732 }
 0xdac   : > { %v2931_v12 = vmul.f32 %v4733_v32, %v4721_v10 }
 0xdb0   : > { %v4735_v24 = vpop.eup %4734 }
 0xdb1   : > { %v2932_v1 = vmul.f32 %v4735_v24, %v4725_v21  ;;  %v4737_v0 = vpop.eup %4736 }
 0xdb2   : > { %v2934_v40 = vmul.f32 %v4737_v0, %v4723_v39 }
 0xdb3   : > { %v4739_v50 = vpop.eup %4738  ;;  %v2937_v33 = vpack.c.bf16 %v2932_v1, %v2931_v12 }
 0xdb4   : > { %v4741_v37 = vpop.eup %4740  ;;  %v2933_v4 = vmul.f32 %v4739_v50, %v4727_v48 }
 0xdb5   : > { %4521 = vmatprep.mubr.msk.bf16.mxu1 %vm1191_vm4, %v2937_v33  ;;  %v2935_v51 = vmul.f32 %v4741_v37, %v4729_v20 }
 0xdb6   : > { %v2938_v5 = vpack.c.bf16 %v2933_v4, %v2933_v4 }
 0xdb7   : > { %v2939_v49 = vpack.c.bf16 %v2935_v51, %v2934_v40 }
 0xdb8   : > { %v4743_v43 = vpop.eup %4742  ;;  %4522 = vmatmul.mubr.msk.bf16.vlgmr.msra.gmra.mxu1 %vm1191_vm4, %v2938_v5  ;;  %v4084_v5 = vld [vmem:[%s5618_s6 + $0x1] ss:$0 sm:$0xff] }
 0xdb9   : > { %4529 = vmatprep.mubr.msk.bf16.mxu0 %vm1191_vm4, %v2939_v49  ;;  %v2936_v9 = vmul.f32 %v4743_v43, %v4731_v26  ;;  %4534 = vmatpush3.bf16.msra.mxu1 %v4658_v23 }
 0xdbb   : > { %v2940_v13 = vpack.c.bf16 %v2936_v9, %v2936_v9 }
 0xdbd   : > { %4530 = vmatmul.mubr.msk.bf16.vlgmr.msra.gmra.mxu0 %vm1191_vm4, %v2940_v13 }
 0xdbe   : > { %4540 = vmatpush3.bf16.msra.mxu0 %v4659_v44 }
 0xe78   : > { %v4523_v10 = vpop.f32.mrf.mxu1 }
 0xe79   : > { %v3060_v20 = vpack.c.bf16 %v4523_v10, %v4523_v10 }
 0xe7a   : > { %v2988_v15 = vpop.f32.mrf.mxu1 }
 0xe7c   : > { %v4524_v39 = vpop.f32.mrf.mxu1 }
 0xe7d   : > { %v4531_v21 = vpop.f32.mrf.mxu0 }
 0xe7e   : > { %v2991_v11 = vpop.f32.mrf.mxu1  ;;  %v3062_v46 = vpack.c.bf16 %v4531_v21, %v4531_v21 }
 0xe7f   : > { %v3059_v36 = vpack.c.bf16 %v2991_v11, %v2988_v15  ;;  %v3045_v48 = vpop.f32.mrf.mxu0 }
 0xe81   : > { %v4532_v19 = vpop.f32.mrf.mxu0  ;;  %4535 = vmatprep.mubr.msk.bf16.mxu1 %vm1064_vm2, %v3059_v36 }
 0xe82   : > { %4536 = vmatmul.mubr.msk.bf16.vlgmr.msra.gmra.mxu1 %vm1064_vm2, %v3060_v20 }
 0xe83   : > { %v3048_v30 = vpop.f32.mrf.mxu0 }
 0xe84   : > { %v3061_v26 = vpack.c.bf16 %v3048_v30, %v3045_v48 }
 0xe86   : > { %4541 = vmatprep.mubr.msk.bf16.mxu0 %vm1064_vm2, %v3061_v26 }
 0xe87   : > { %4542 = vmatmul.mubr.msk.bf16.vlgmr.msra.gmra.mxu0 %vm1064_vm2, %v3062_v46 }
 0xf42   : > { %v4537_v27 = vpop.f32.mrf.mxu1 }
 0xf43   : > { %v3194_v25 = vsel %vm609_vm1, %v4537_v27, 0.0 }
 0xf44   : > { %v3114_v17 = vpop.f32.mrf.mxu1 }
 0xf45   : > { %v3188_v12 = vsel %vm602_vm0, %v3114_v17, 0.0 }
 0xf46   : > { %v4538_v28 = vpop.f32.mrf.mxu1 }
 0xf47   : > { %v4543_v29 = vpop.f32.mrf.mxu0 }
 0xf48   : > { %v3195_v22 = vsel %vm609_vm1, %v4543_v29, 0.0  ;;  %v3117_v0 = vpop.f32.mrf.mxu1  ;;  %v4660_v29 = vld [vmem:[%s5621_s9 + $0x18] sm:$0xff]  }
 0xf49   : > { %v3196_v32 = vadd.f32 %v3195_v22, %v3194_v25  ;;  %v3174_v24 = vpop.f32.mrf.mxu0  ;;  %v3191_v51 = vsel %vm602_vm0, %v3117_v0, 0.0  ;;  %v4661_v25 = vld [vmem:[%s5621_s9 + $0x10] sm:$0xff]   ;;  %4545 = vmatprep.subr.bf16.mxu1 %v4660_v29 }
 0xf4a   : > { %v3189_v1 = vsel %vm602_vm0, %v3174_v24, 0.0  ;;  %4546 = vmatpush3.bf16.msra.mxu1 %v4660_v29  ;;  %v4671_v29 = vld [vmem:[%s5627_s15 + $0x70] sm:$0xff]  }
 0xf4b   : > { %v3190_v50 = vadd.f32 %v3189_v1, %v3188_v12  ;;  %v4544_v33 = vpop.f32.mrf.mxu0  ;;  %v3199_v37 = vadd.f32 %v3196_v32, %v5322_v16  ;;  %4547 = vmatprep.subr.bf16.mxu1 %v4661_v25 }
 0xf4d   : > { %v3197_v4 = vadd.f32 %v3190_v50, %v5319_v14  ;;  %v3177_v40 = vpop.f32.mrf.mxu0  ;;  %v5449_v16 = vadd.f32 %v4084_v5, %v3199_v37 }
 0xf4e   : > { %v3192_v49 = vsel %vm602_vm0, %v3177_v40, 0.0  ;;  %4548 = vmatpush3.bf16.msra.mxu1 %v4661_v25  ;;  %v4672_v25 = vld [vmem:[%s5627_s15 + $0x68] sm:$0xff]  }
 0xf4f   : > { %v5444_v43 = vadd.f32 %v4084_v5, %v3197_v4  ;;  %v3193_v9 = vadd.f32 %v3192_v49, %v3191_v51  ;;  %v3221_v44 = vsel %vm609_vm1, %v5449_v16, 0.0  ;;  %v4087_v51 = vld [vmem:[%s5619_s7 + $0x1] ss:$0 sm:$0xff] }
 0xf51   : > { %v3198_v13 = vadd.f32 %v3193_v9, %v5327_v41  ;;  %v3215_v23 = vsel %vm602_vm0, %v5444_v43, 0.0 }
 0xf52   : > { %3216 = vadd.xlane.f32.xlu1 %v3215_v23 }
 0xf53   : > { %v5451_v14 = vadd.f32 %v4084_v5, %v3198_v13 }
 0xf55   : > { %v3218_v10 = vsel %vm602_vm0, %v5451_v14, 0.0 }
 0xf56   : > { %3222 = vadd.xlane.f32.xlu1 %v3221_v44  ;;  %3219 = vadd.xlane.f32.xlu0 %v3218_v10  ;;  %v4088_v44 = vld [vmem:[%s5620_s8 + $0x1] ss:$0 sm:$0xff] }
 0xfdb   : > { %v3217_v15 = vpop.xlane.xlu1 %3216 }
 0xfdc   : > { %v3224_v39 = vmul.f32 0.03125, %v3217_v15 }
 0xfde   : > { %v3227_v41 = vsub.f32 %v5444_v43, %v3224_v39 }
 0xfdf   : > { %v3223_v21 = vpop.xlane.xlu1 %3222  ;;  %v3220_v11 = vpop.xlane.xlu0 %3219 }
 0xfe0   : > { %v3226_v36 = vmul.f32 0.03125, %v3223_v21  ;;  %v3225_v48 = vmul.f32 0.03125, %v3220_v11  ;;  %v3230_v20 = vmul.f32 %v3227_v41, %v3227_v41 }
 0xfe2   : > { %v3229_v19 = vsub.f32 %v5449_v16, %v3226_v36  ;;  %v3228_v30 = vsub.f32 %v5451_v14, %v3225_v48  ;;  %v3233_v26 = vsel %vm602_vm0, %v3230_v20, 0.0  ;;  %v4662_v48 = vld [vmem:[%s5625_s13 + $0x78] sm:$0xff]   ;;  %v4663_v20 = vld [vmem:[%s5625_s13 + $0x70] sm:$0xff]  }
 0xfe3   : > { %3234 = vadd.xlane.f32.xlu0 %v3233_v26  ;;  %4553 = vmatprep.subr.bf16.mxu0 %v4662_v48  ;;  %v4666_v26 = vld [vmem:[%s5625_s13 + $0x58] sm:$0xff]  }
 0xfe4   : > { %v3232_v46 = vmul.f32 %v3229_v19, %v3229_v19  ;;  %v3231_v27 = vmul.f32 %v3228_v30, %v3228_v30  ;;  %4554 = vmatpush3.bf16.msra.mxu0 %v4662_v48 }
 0xfe5   : > { %4555 = vmatprep.subr.bf16.mxu0 %v4663_v20 }
 0xfe6   : > { %v3239_v17 = vsel %vm609_vm1, %v3232_v46, 0.0  ;;  %v3236_v28 = vsel %vm602_vm0, %v3231_v27, 0.0  ;;  %v4667_v46 = vld [vmem:[%s5625_s13 + $0x50] sm:$0xff]   ;;  %v4668_v27 = vld [vmem:[%s5625_s13 + $0x48] sm:$0xff]  }
 0xfe7   : > { %3240 = vadd.xlane.f32.xlu0 %v3239_v17  ;;  %3237 = vadd.xlane.f32.xlu1 %v3236_v28  ;;  %v4669_v17 = vld [vmem:[%s5625_s13 + $0x40] sm:$0xff]   ;;  %v4670_v28 = vld [vmem:[%s5627_s15 + $0x78] sm:$0xff]  }
 0xfe8   : > { %4556 = vmatpush3.bf16.msra.mxu0 %v4663_v20  ;;  %4573 = vmatprep.subr.bf16.mxu1 %v4670_v28 }
0x106c   : > { %v3235_v22 = vpop.xlane.xlu0 %3234 }
0x106d   : > { %v3242_v32 = vmul.f32 0.03125, %v3235_v22  ;;  %v4094_v22 = vld [vmem:[%s5622_s10 + $0x1] ss:$0 sm:$0xff] }
0x106f   : > { %v3245_v24 = vadd.f32 1e-05, %v3242_v32 }
0x1070   : > { %v3238_v12 = vpop.xlane.xlu1 %3237  ;;  %v3241_v1 = vpop.xlane.xlu0 %3240 }
0x1071   : > { %4744 = vrsqrt.f32 %v3245_v24  ;;  %v3243_v0 = vmul.f32 0.03125, %v3238_v12  ;;  %v3244_v50 = vmul.f32 0.03125, %v3241_v1 }
0x1073   : > { %v3246_v33 = vadd.f32 1e-05, %v3243_v0  ;;  %v3247_v37 = vadd.f32 1e-05, %v3244_v50 }
0x1075   : > { %4746 = vrsqrt.f32 %v3246_v33 }
0x1076   : > { %4748 = vrsqrt.f32 %v3247_v37 }
0x107e   : > { %v4745_v4 = vpop.eup %4744 }
0x107f   : > { %v3251_v40 = vmul.f32 %v4745_v4, %v3227_v41 }
0x1081   : > { %v3260_v13 = vmul.f32 %v4087_v51, %v3251_v40 }
0x1082   : > { %v4747_v5 = vpop.eup %4746 }
0x1083   : > { %v4749_v49 = vpop.eup %4748  ;;  %v3252_v9 = vmul.f32 %v4747_v5, %v3228_v30  ;;  %v3269_v39 = vadd.f32 %v4088_v44, %v3260_v13  ;;  %v4665_v30 = vld [vmem:[%s5625_s13 + $0x60] sm:$0xff]  }
0x1084   : > { %v3253_v23 = vmul.f32 %v4749_v49, %v3229_v19  ;;  %v4664_v19 = vld [vmem:[%s5625_s13 + $0x68] sm:$0xff]  }
0x1085   : > { %v3261_v10 = vmul.f32 %v4087_v51, %v3252_v9  ;;  %4557 = vmatprep.subr.bf16.mxu0 %v4664_v19 }
0x1086   : > { %v3262_v15 = vmul.f32 %v4087_v51, %v3253_v23  ;;  %4558 = vmatpush3.bf16.msra.mxu0 %v4664_v19 }
0x1087   : > { %v3270_v21 = vadd.f32 %v4088_v44, %v3261_v10  ;;  %4559 = vmatprep.subr.bf16.mxu0 %v4665_v30 }
0x1088   : > { %v3271_v11 = vadd.f32 %v4088_v44, %v3262_v15 }
0x1089   : > { %v3272_v36 = vpack.c.bf16 %v3270_v21, %v3269_v39 }
0x108a   : > { %v3273_v41 = vpack.c.bf16 %v3271_v11, %v3271_v11  ;;  %4560 = vmatpush3.bf16.msra.mxu0 %v4665_v30 }
0x108b   : > { %4549 = vmatprep.mubr.msk.bf16.mxu1 %vm602_vm0, %v3272_v36  ;;  %4561 = vmatprep.subr.bf16.mxu0 %v4666_v26  ;;  %v4102_v36 = vld [vmem:[%s5623_s11 + $0x9] ss:$0 sm:$0xff] }
0x108c   : > { %4550 = vmatmul.mubr.msk.bf16.vlgmr.msra.gmra.mxu1 %vm602_vm0, %v3273_v41 }
0x108d   : > { %4574 = vmatpush3.bf16.msra.mxu1 %v4670_v28 }
0x108e   : > { %4562 = vmatpush3.bf16.msra.mxu0 %v4666_v26  ;;  %4575 = vmatprep.subr.bf16.mxu1 %v4671_v29  ;;  %v4104_v26 = vld [vmem:[%s5623_s11 + $0xa] ss:$0 sm:$0xff] }
0x108f   : > { %4563 = vmatprep.subr.bf16.mxu0 %v4667_v46 }
0x1091   : > { %4576 = vmatpush3.bf16.msra.mxu1 %v4671_v29  ;;  %v4106_v29 = vld [vmem:[%s5623_s11 + $0xb] ss:$0 sm:$0xff] }
0x1092   : > { %4564 = vmatpush3.bf16.msra.mxu0 %v4667_v46  ;;  %4577 = vmatprep.subr.bf16.mxu1 %v4672_v25 }
0x1093   : > { %4565 = vmatprep.subr.bf16.mxu0 %v4668_v27 }
0x1095   : > { %4578 = vmatpush3.bf16.msra.mxu1 %v4672_v25 }
0x1096   : > { %4566 = vmatpush3.bf16.msra.mxu0 %v4668_v27  ;;  %v4100_v27 = vld [vmem:[%s5624_s12 + $0x1] ss:$0 sm:$0xff] }
0x1097   : > { %4567 = vmatprep.subr.bf16.mxu0 %v4669_v17 }
0x109a   : > { %4568 = vmatpush3.bf16.msra.mxu0 %v4669_v17 }
0x114c   : > { %v4551_v32 = vpop.f32.mrf.mxu1 }
0x114d   : > { %v3348_v24 = vadd.f32 %v4551_v32, %v4094_v22 }
0x114e   : > { %v3339_v12 = vpop.f32.mrf.mxu1 }
0x114f   : > { %v3355_v1 = vadd.f32 3.0, %v3348_v24  ;;  %v3340_v0 = vadd.f32 %v4094_v22, %v3339_v12 }
0x1150   : > { %v4552_v50 = vpop.f32.mrf.mxu1 }
0x1151   : > { %v3358_v33 = vmax.f32 %v3355_v1, 0.0  ;;  %v3353_v37 = vadd.f32 3.0, %v3340_v0 }
0x1152   : > { %v3342_v4 = vpop.f32.mrf.mxu1 }
0x1153   : > { %v3361_v40 = vmin.f32 %v3358_v33, 6.0  ;;  %v3356_v51 = vmax.f32 %v3353_v37, 0.0  ;;  %v3343_v5 = vadd.f32 %v4094_v22, %v3342_v4 }
0x1155   : > { %v3364_v49 = vmul.f32 %v3361_v40, %v3348_v24  ;;  %v3359_v9 = vmin.f32 %v3356_v51, 6.0  ;;  %v3354_v13 = vadd.f32 3.0, %v3343_v5 }
0x1157   : > { %v3367_v23 = vmul.f32 0.16666667, %v3364_v49  ;;  %v3362_v44 = vmul.f32 %v3359_v9, %v3340_v0  ;;  %v3357_v10 = vmax.f32 %v3354_v13, 0.0 }
0x1159   : > { %3370 = vst [vmem:[#allocation2 + $0x18] sm:$0x1] %v3367_v23  ;;  %v3365_v15 = vmul.f32 0.16666667, %v3362_v44  ;;  %v3360_v39 = vmin.f32 %v3357_v10, 6.0 }
0x115b   : > { %3368 = vst [vmem:[#allocation2 + $0x8] sm:$0xff] %v3365_v15  ;;  %v3363_v21 = vmul.f32 %v3360_v39, %v3343_v5  ;;  %v3463_v4 = vmul.f32 %v3365_v15, %v5180_v6  ;;  %v5641_v39 = vld [vmem:[#allocation3_spill] sm:$0xff] }
0x115d   : > { %v3366_v11 = vmul.f32 0.16666667, %v3363_v21 }
0x115f   : > { %3369 = vst [vmem:[#allocation2 + $0x10] sm:$0xff] %v3366_v11  ;;  %v3464_v40 = vmul.f32 %v3366_v11, %v5182_v8 }
0x1160   : > { %v3462_v11 = vld [vmem:[#allocation2 + $0x18] sm:$0x1] }
0x1162   : > { %v3380_v41 = vld [vmem:[#allocation2 + $0x3] sm:$0xff] }
0x1163   : > { %v3400_v48 = vld [vmem:[#allocation2 + $0x4] sm:$0xff]  ;;  %v3383_v19 = vmul.f32 %v3380_v41, %v5167_v59 }
0x1164   : > { %v3420_v20 = vld [vmem:[#allocation2 + $0x5] sm:$0xff]  ;;  %v3403_v30 = vmul.f32 %v3400_v48, %v5157_v54 }
0x1165   : > { %v3440_v46 = vld [vmem:[#allocation2 + $0x7] sm:$0xff]  ;;  %v3394_v17 = vmul.f32 %v4102_v36, %v3383_v19  ;;  %v3423_v28 = vmul.f32 %v3420_v20, %v5163_v57 }
0x1166   : > { %v3381_v25 = vld [vmem:[#allocation2 + $0xb] sm:$0xff]  ;;  %v3382_v59 = vld [vmem:[#allocation2 + $0x13] sm:$0x1]  ;;  %v3414_v54 = vmul.f32 %v4104_v26, %v3403_v30  ;;  %v3443_v32 = vmul.f32 %v3440_v46, %v5171_v61  ;;  %v3402_v0 = vld [vmem:[#allocation2 + $0x14] sm:$0x1] }
0x1167   : > { %v3401_v22 = vld [vmem:[#allocation2 + $0xc] sm:$0xff]  ;;  %v3384_v24 = vmul.f32 %v3381_v25, %v5153_v52  ;;  %v3385_v12 = vmul.f32 %v3382_v59, %v5155_v53  ;;  %v3397_v1 = vadd.f32 %v4100_v27, %v3394_v17  ;;  %v3422_v5 = vld [vmem:[#allocation2 + $0x15] sm:$0x1]  ;;  %v3434_v49 = vmul.f32 %v4106_v29, %v3423_v28  ;;  %v5642_v46 = vld [vmem:[#allocation5_spill] sm:$0xff] }
0x1168   : > { %v3404_v50 = vmul.f32 %v3401_v22, %v5159_v55  ;;  %v5532_v33 = vld [vmem:[#allocation2 + $0xd] sm:$0xff]  ;;  %v4108_v57 = vld [vmem:[%s5623_s11 + $0xc] ss:$0 sm:$0xff]  ;;  %v3405_v13 = vmul.f32 %v3402_v0, %v5161_v56  ;;  %v3502_v56 = vmul.f32 %v3381_v25, %v5642_v46  ;;  %v3442_v17 = vld [vmem:[#allocation2 + $0x17] sm:$0x1] }
0x1169   : > { %v3441_v37 = vld [vmem:[#allocation2 + $0xf] sm:$0xff]  ;;  %v3395_v51 = vmul.f32 %v4102_v36, %v3384_v24  ;;  %v3417_v52 = vadd.f32 %v3414_v54, %v3397_v1  ;;  %v3424_v53 = vmul.f32 %v5532_v33, %v5165_v58  ;;  %v4110_v55 = vld [vmem:[%s5623_s11 + $0xd] ss:$0 sm:$0xff]  ;;  %v3396_v9 = vmul.f32 %v4102_v36, %v3385_v12 }
0x116a   : > { %v3480_v61 = vld [vmem:[#allocation2 + $0x9] sm:$0xff]  ;;  %v3444_v23 = vmul.f32 %v3441_v37, %v5173_v62  ;;  %v3454_v6 = vmul.f32 %v4108_v57, %v3443_v32  ;;  %v3415_v8 = vmul.f32 %v4104_v26, %v3404_v50  ;;  %v3481_v15 = vld [vmem:[#allocation2 + $0x11] sm:$0xff]  ;;  %v3425_v58 = vmul.f32 %v3422_v5, %v5169_v60  ;;  %v3482_v60 = vld [vmem:[#allocation2 + $0x19] sm:$0x1] }
0x116b   : > { %v3398_v44 = vadd.f32 %v4100_v27, %v3395_v51  ;;  %v3437_v10 = vadd.f32 %v3434_v49, %v3417_v52  ;;  %v3483_v21 = vmul.f32 %v3480_v61, %v5641_v39  ;;  %v3474_v41 = vmul.f32 %v4110_v55, %v3463_v4  ;;  %v3500_v36 = vld [vmem:[#allocation2 + $0x13] sm:$0xff]  ;;  %v4112_v62 = vld [vmem:[%s5623_s11 + $0xe] ss:$0 sm:$0xff]  ;;  %v4114_v25 = vld [vmem:[%s5623_s11 + $0xf] ss:$0 sm:$0xff] }
0x116c   : > { %v3475_v48 = vmul.f32 %v4110_v55, %v3464_v40  ;;  %v3435_v19 = vmul.f32 %v4106_v29, %v3424_v53  ;;  %v3416_v28 = vmul.f32 %v4104_v26, %v3405_v13  ;;  %v3455_v59 = vmul.f32 %v4108_v57, %v3444_v23  ;;  %v5643_v54 = vld [vmem:[#allocation4_spill] sm:$0xff]  ;;  %v3501_v51 = vld [vmem:[#allocation2 + $0x1b] sm:$0x1]  ;;  %v3520_v23 = vld [vmem:[#allocation2 + $0x1c] sm:$0x1] }
0x116d   : > { %v3418_v20 = vadd.f32 %v3415_v8, %v3398_v44  ;;  %v3457_v30 = vadd.f32 %v3454_v6, %v3437_v10  ;;  %v3484_v32 = vmul.f32 %v3481_v15, %v5643_v54  ;;  %v3465_v24 = vmul.f32 %v3462_v11, %v5184_v18  ;;  %v3519_v50 = vld [vmem:[#allocation2 + $0x14] sm:$0xff]  ;;  %v3539_v15 = vld [vmem:[#allocation2 + $0x1d] sm:$0x1] }
0x116e   : > { %v3494_v0 = vmul.f32 %v4112_v62, %v3483_v21  ;;  %v3399_v37 = vadd.f32 %v4100_v27, %v3396_v9  ;;  %v3436_v4 = vmul.f32 %v4106_v29, %v3425_v58  ;;  %v3503_v40 = vmul.f32 %v3500_v36, %v5194_v35  ;;  %v3538_v9 = vld [vmem:[#allocation2 + $0x15] sm:$0xff]  ;;  %v4116_v35 = vld [vmem:[%s5623_s11 + $0x10] ss:$0 sm:$0xff] }
0x116f   : > { %v3438_v12 = vadd.f32 %v3435_v19, %v3418_v20  ;;  %v3477_v1 = vadd.f32 %v3474_v41, %v3457_v30  ;;  %v3521_v26 = vmul.f32 %v3401_v22, %v5220_v3  ;;  %v3445_v61 = vmul.f32 %v3442_v17, %v5175_v63 }
0x1170   : > { %v3513_v5 = vmul.f32 %v4114_v25, %v3502_v56  ;;  %v3419_v53 = vadd.f32 %v3416_v28, %v3399_v37  ;;  %v3485_v49 = vmul.f32 %v3482_v60, %v5190_v31  ;;  %v3495_v13 = vmul.f32 %v4112_v62, %v3484_v32  ;;  %v4673_v32 = vld [vmem:[%s5627_s15 + $0x60] sm:$0xff]   ;;  %v4676_v60 = vld [vmem:[%s5627_s15 + $0x48] sm:$0xff]  }
0x1171   : > { %v3458_v52 = vadd.f32 %v3455_v59, %v3438_v12  ;;  %v3497_v18 = vadd.f32 %v3494_v0, %v3477_v1  ;;  %v3522_v27 = vmul.f32 %v3519_v50, %v5244_v38  ;;  %v3456_v63 = vmul.f32 %v4108_v57, %v3445_v61  ;;  %4579 = vmatprep.subr.bf16.mxu1 %v4673_v32  ;;  %v4677_v12 = vld [vmem:[%s5627_s15 + $0x40] sm:$0xff]  }
0x1172   : > { %v3439_v22 = vadd.f32 %v3436_v4, %v3419_v53  ;;  %v3504_v6 = vmul.f32 %v3501_v51, %v5215_v47  ;;  %v3514_v44 = vmul.f32 %v4114_v25, %v3503_v40  ;;  %v3532_v8 = vmul.f32 %v4116_v35, %v3521_v26  ;;  %v4118_v47 = vld [vmem:[%s5623_s11 + $0x11] ss:$0 sm:$0xff]  ;;  %4580 = vmatpush3.bf16.msra.mxu1 %v4673_v32  ;;  %v4136_v1 = vld [vmem:[%s5626_s14 + $0x1] ss:$0 sm:$0xff] }
0x1173   : > { %v3478_v29 = vadd.f32 %v3475_v48, %v3458_v52  ;;  %v3516_v3 = vadd.f32 %v3513_v5, %v3497_v18  ;;  %v3476_v10 = vmul.f32 %v4110_v55, %v3465_v24  ;;  %v3540_v38 = vmul.f32 %v5532_v33, %v5267_v2  ;;  %v4675_v24 = vld [vmem:[%s5627_s15 + $0x50] sm:$0xff]  }
0x1174   : > { %v3541_v39 = vmul.f32 %v3538_v9, %v5271_v42  ;;  %v3459_v21 = vadd.f32 %v3456_v63, %v3439_v22  ;;  %v3496_v11 = vmul.f32 %v4112_v62, %v3485_v49  ;;  %v3523_v58 = vmul.f32 %v3520_v23, %v5252_v45 }
0x1175   : > { %v3498_v31 = vadd.f32 %v3495_v13, %v3478_v29  ;;  %v3533_v48 = vmul.f32 %v4116_v35, %v3522_v27  ;;  %v3535_v20 = vadd.f32 %v3532_v8, %v3516_v3  ;;  %v3515_v19 = vmul.f32 %v4114_v25, %v3504_v6 }
0x1176   : > { %v3479_v57 = vadd.f32 %v3476_v10, %v3459_v21  ;;  %v3542_v55 = vmul.f32 %v3539_v15, %v5287_v34  ;;  %v3551_v36 = vmul.f32 %v4118_v47, %v3540_v38  ;;  %v3552_v2 = vmul.f32 %v4118_v47, %v3541_v39  ;;  %v4674_v34 = vld [vmem:[%s5627_s15 + $0x58] sm:$0xff]  }
0x1177   : > { %v3517_v41 = vadd.f32 %v3514_v44, %v3498_v31  ;;  %v3534_v42 = vmul.f32 %v4116_v35, %v3523_v58  ;;  %4581 = vmatprep.subr.bf16.mxu1 %v4674_v34  ;;  %v4162_v44 = vld [vmem:[%s5628_s16 + $0x1] ss:$0 sm:$0xff] }
0x1178   : > { %v3499_v33 = vadd.f32 %v3496_v11, %v3479_v57  ;;  %v3554_v46 = vadd.f32 %v3551_v36, %v3535_v20  ;;  %v3553_v45 = vmul.f32 %v4118_v47, %v3542_v55  ;;  %4582 = vmatpush3.bf16.msra.mxu1 %v4674_v34 }
0x1179   : > { %v3536_v30 = vadd.f32 %v3533_v48, %v3517_v41  ;;  %4583 = vmatprep.subr.bf16.mxu1 %v4675_v24 }
0x117a   : > { %v3518_v17 = vadd.f32 %v3515_v19, %v3499_v33 }
0x117b   : > { %v3555_v56 = vadd.f32 %v3552_v2, %v3536_v30 }
0x117c   : > { %v3537_v28 = vadd.f32 %v3534_v42, %v3518_v17  ;;  %4584 = vmatpush3.bf16.msra.mxu1 %v4675_v24 }
0x117d   : > { %v3557_v62 = vpack.c.bf16 %v3555_v56, %v3554_v46  ;;  %4585 = vmatprep.subr.bf16.mxu1 %v4676_v60 }
0x117e   : > { %v3556_v59 = vadd.f32 %v3553_v45, %v3537_v28 }
0x117f   : > { %4569 = vmatprep.mubr.bf16.mxu0 %v3557_v62 }
0x1180   : > { %v3558_v54 = vpack.c.bf16 %v3556_v59, %v3556_v59  ;;  %4586 = vmatpush3.bf16.msra.mxu1 %v4676_v60 }
0x1181   : > { %4587 = vmatprep.subr.bf16.mxu1 %v4677_v12 }
0x1182   : > { %4570 = vmatmul.mubr.bf16.vlgmr.msra.gmra.mxu0 %v3558_v54 }
0x1184   : > { %4588 = vmatpush3.bf16.msra.mxu1 %v4677_v12 }
0x1242   : > { %v4571_v0 = vpop.f32.mrf.mxu0 }
0x1243   : > { %v3675_v50 = vadd.f32 %v4571_v0, %v4136_v1 }
0x1244   : > { %v3666_v37 = vpop.f32.mrf.mxu0 }
0x1245   : > { %v3682_v25 = vadd.f32 3.0, %v3675_v50  ;;  %v3667_v4 = vadd.f32 %v4136_v1, %v3666_v37 }
0x1246   : > { %v4572_v40 = vpop.f32.mrf.mxu0 }
0x1247   : > { %v3685_v26 = vmax.f32 %v3682_v25, 0.0  ;;  %v3680_v61 = vadd.f32 3.0, %v3667_v4 }
0x1248   : > { %v3669_v51 = vpop.f32.mrf.mxu0 }
0x1249   : > { %v3683_v52 = vmax.f32 %v3680_v61, 0.0  ;;  %v3670_v18 = vadd.f32 %v4136_v1, %v3669_v51  ;;  %v3688_v5 = vmin.f32 %v3685_v26, 6.0 }
0x124b   : > { %v3686_v53 = vmin.f32 %v3683_v52, 6.0  ;;  %v3681_v49 = vadd.f32 3.0, %v3670_v18  ;;  %v3691_v27 = vmul.f32 %v3688_v5, %v3675_v50 }
0x124d   : > { %v3684_v13 = vmax.f32 %v3681_v49, 0.0  ;;  %v3689_v9 = vmul.f32 %v3686_v53, %v3667_v4  ;;  %v3694_v29 = vmul.f32 0.16666667, %v3691_v27 }
0x124f   : > { %v3687_v23 = vmin.f32 %v3684_v13, 6.0  ;;  %v3692_v3 = vmul.f32 0.16666667, %v3689_v9  ;;  %v3696_v6 = vpack.c.bf16 %v3694_v29, %v3694_v29 }
0x1251   : > { %v3690_v35 = vmul.f32 %v3687_v23, %v3670_v18 }
0x1253   : > { %v3693_v22 = vmul.f32 0.16666667, %v3690_v35 }
0x1255   : > { %v3695_v63 = vpack.c.bf16 %v3693_v22, %v3692_v3 }
0x1257   : > { %4589 = vmatprep.mubr.bf16.mxu1 %v3695_v63 }
0x1258   : > { %4590 = vmatmul.mubr.bf16.vlgmr.msra.gmra.mxu1 %v3696_v6 }
0x1318   : > { %v4591_v8 = vpop.f32.mrf.mxu1 }
0x1319   : > { %v3813_v10 = vadd.f32 %v4591_v8, %v4162_v44 }
0x131a   : > { %v3804_v15 = vpop.f32.mrf.mxu1 }
0x131b   : > { %v3820_v31 = vadd.f32 %v3813_v10, %v5449_v16  ;;  %v3805_v38 = vadd.f32 %v4162_v44, %v3804_v15 }
0x131c   : > { %v4592_v39 = vpop.f32.mrf.mxu1 }
0x131d   : > { %3826 = vst.msk [vmem:[%s548_s18 + $0x10] sm:$0x1] %vm609_vm1, %v3820_v31  ;;  %v3818_v21 = vadd.f32 %v3805_v38, %v5444_v43 }
0x131e   : > { %v3807_v11 = vpop.f32.mrf.mxu1 }
0x131f   : > { %v3821_v58 = vsel %vm557_vm6, %v5444_v43, %v3818_v21  ;;  %v3808_v41 = vadd.f32 %v4162_v44, %v3807_v11 }
0x1320   : > { %3824 = vst.msk [vmem:[%s548_s18] sm:$0xff] %vm602_vm0, %v3821_v58 }
0x1321   : > { %v3819_v48 = vadd.f32 %v3808_v41, %v5451_v14 }
0x1323   : > { %3825 = vst.msk [vmem:[%s548_s18 + $0x8] sm:$0xff] %vm602_vm0, %v3819_v48 }
0x1324 PF: > { %s27_s24 = sadd.s32 1, %s4756_s24  }
0x1325   : > { %p24_p4 = scmp.ge.s32.totalorder %s27_s24, 4  }
0x1327   :  { %26 = sbr.rel (!%p24_p4) target bundleno = 3 (0x3), region = 161 }

</bundles_post_ra>
